<compile_context>
chip_gen: v7x
topology: tpu7x:2x2x1
jax: 0.10.0
libtpu: 0.0.40
codegen_flags: <defaults>
</compile_context>

<pallas_src>
import jax
import jax.numpy as jnp
import numpy as np
from jax.experimental import pallas as pl
from jax.experimental.pallas import tpu as pltpu


D_FEAT = 6
HIDDEN = 64          # H
NUM_LAYERS = 2       # hard-wired in the kernel below
HP = 128             # per-gate block width, padded to a full 128-lane vreg
G3 = 3 * HP          # fused gate width (r | z | n), each 128-lane aligned
W3 = 3 * G3          # fused per-step hidden matmul width: gh0 | gi1 | gh1


# ----------------------------------------------------------------------------
# GRU cell math (f32 element-wise; inputs are f32 MXU accumulations)
# ----------------------------------------------------------------------------
def _sigmoid(x):
    # sigmoid(x) = 0.5*tanh(0.5*x) + 0.5 : one EUP op + VPU fma (vs exp + reciprocal).
    return 0.5 * jnp.tanh(0.5 * x) + 0.5


def _cell(gi, gh, b_hn, h):
    """GRU cell. gi already holds (b_ir+b_hr | b_iz+b_hz | b_in); gh is the raw h-side
    matmul result; b_hn is added only to the n slice (inside the r * (...) term).

    Padded lanes 64..127 of each gate block are all-zero in weights/biases, which keeps
    h's padded lanes at exactly 0 (n_pad = tanh(0) = 0, so h_pad stays 0)."""
    r = _sigmoid(gi[:, 0 * HP:1 * HP] + gh[:, 0 * HP:1 * HP])
    z = _sigmoid(gi[:, 1 * HP:2 * HP] + gh[:, 1 * HP:2 * HP])
    n = jnp.tanh(gi[:, 2 * HP:3 * HP] + r * (gh[:, 2 * HP:3 * HP] + b_hn))
    return (1.0 - z) * n + z * h


# ----------------------------------------------------------------------------
# Pallas kernel
# ----------------------------------------------------------------------------
def gru_kernel(
    x_ref,        # (T*Np, Dp) f32, time-major flattened
    wih0_ref,     # (Dp, G3)   bf16  layer-0 input weights (gates 128-lane aligned)
    wbig_ref,     # (2*HP, W3) bf16  [[Whh0|Wih1|0],[0|0|Whh1]]
    b0i_ref,      # (1, G3) f32   layer-0 input-side fused bias (r/z hidden biases folded in)
    b0hn_ref,     # (1, HP) f32   layer-0 b_hn
    b1i_ref,      # (1, G3) f32   layer-1 input-side fused bias
    b1hn_ref,     # (1, HP) f32   layer-1 b_hn
    fcw_ref,      # (HP, 1) f32
    fcb_ref,      # (1, 1)  f32
    out_ref,      # (Np, 1) f32
    gi_ref,       # VMEM scratch (T*Np, G3) f32: hoisted layer-0 input projections
):
    Np = out_ref.shape[0]
    T = x_ref.shape[0] // Np

    # ---- Phase A: layer-0 input projection for ALL timesteps (one MXU call) ----
    gi_ref[...] = (
        jnp.dot(x_ref[...].astype(jnp.bfloat16), wih0_ref[...],
                preferred_element_type=jnp.float32)
        + b0i_ref[...]
    )

    b0hn = b0hn_ref[...]          # (1, HP) — broadcast against (Np, HP) slices
    b1i = b1i_ref[...]            # (1, G3)
    b1hn = b1hn_ref[...]          # (1, HP)
    wbig = wbig_ref[...]          # bf16, step-invariant

    zeros_h = jnp.zeros((Np, HP), jnp.float32)

    # ---- Prologue: layer-0 cell at t = 0 (previous hidden is 0 -> h-side matmul is 0) ----
    h0 = _cell(gi_ref[pl.ds(0, Np), :], jnp.zeros((Np, G3), jnp.float32), b0hn, zeros_h)
    h1 = zeros_h                  # h1_{-1}

    # ---- Skewed recurrence: iteration t does layer-0 @ t and layer-1 @ t-1 ----
    def step(t, carry):
        h0_prev, h1_prev = carry                                  # h0_{t-1}, h1_{t-2}
        lhs = jnp.concatenate([h0_prev, h1_prev], axis=1).astype(jnp.bfloat16)  # (Np, 256)
        fused = jnp.dot(lhs, wbig, preferred_element_type=jnp.float32)          # (Np, W3)
        gh0 = fused[:, 0 * G3:1 * G3]                             # h0_{t-1} @ Whh0
        gi1 = fused[:, 1 * G3:2 * G3] + b1i                       # h0_{t-1} @ Wih1 + b1i
        gh1 = fused[:, 2 * G3:3 * G3]                             # h1_{t-2} @ Whh1

        idx = pl.multiple_of(t * Np, Np)
        gi0 = gi_ref[pl.ds(idx, Np), :]

        h0_new = _cell(gi0, gh0, b0hn, h0_prev)                   # layer-0 cell at t
        h1_new = _cell(gi1, gh1, b1hn, h1_prev)                   # layer-1 cell at t-1
        return (h0_new, h1_new)

    # NOTE: unroll=True is fine for small T; switch to a bounded unroll for long sequences.
    h0_last, h1_prev = jax.lax.fori_loop(1, T, step, (h0, h1), unroll=True)

    # ---- Epilogue: layer-1 cell at t = T-1 ----
    lhs = jnp.concatenate([h0_last, h1_prev], axis=1).astype(jnp.bfloat16)
    fused = jnp.dot(lhs, wbig, preferred_element_type=jnp.float32)
    gi1 = fused[:, 1 * G3:2 * G3] + b1i
    gh1 = fused[:, 2 * G3:3 * G3]
    h1_final = _cell(gi1, gh1, b1hn, h1_prev)

    # ---- fc_out on the last timestep (fires once; narrow store is negligible) ----
    out_ref[...] = (
        jnp.dot(h1_final, fcw_ref[...], preferred_element_type=jnp.float32) + fcb_ref[...]
    )


# ----------------------------------------------------------------------------
# Parameter packing: per-gate weights fused into 128-lane-aligned blocks
# ----------------------------------------------------------------------------
def _fuse_w(w, din, din_pad):
    """w: (3, din, H) per-gate -> (din_pad, 3*HP); gate g at columns [g*HP, g*HP+H)."""
    out = jnp.zeros((din_pad, G3), jnp.float32)
    for g in range(3):
        out = out.at[:din, g * HP:g * HP + HIDDEN].set(w[g])
    return out


def _fuse_b(b_r, b_z, b_n):
    """each (1, H) -> (1, 3*HP) with 128-aligned gate slots."""
    out = jnp.zeros((1, G3), jnp.float32)
    for g, b in enumerate((b_r, b_z, b_n)):
        out = out.at[:, g * HP:g * HP + HIDDEN].set(jnp.reshape(b, (1, HIDDEN)))
    return out


def _pad_row(b):
    """(1, H) -> (1, HP) zero-padded."""
    out = jnp.zeros((1, HP), jnp.float32)
    return out.at[:, :HIDDEN].set(jnp.reshape(b, (1, HIDDEN)))


def pack_params(params, d_feat, d_pad):
    bih0, bhh0 = params["bih0"], params["bhh0"]
    bih1, bhh1 = params["bih1"], params["bhh1"]

    whh0 = _fuse_w(params["whh0"], HIDDEN, HP)
    wih1 = _fuse_w(params["wih1"], HIDDEN, HP)
    whh1 = _fuse_w(params["whh1"], HIDDEN, HP)

    # Fused per-step hidden-side RHS: [[Whh0 | Wih1 | 0], [0 | 0 | Whh1]]  (2*HP, 3*G3)
    wbig = jnp.zeros((2 * HP, W3), jnp.float32)
    wbig = wbig.at[:HP, 0 * G3:1 * G3].set(whh0)
    wbig = wbig.at[:HP, 1 * G3:2 * G3].set(wih1)
    wbig = wbig.at[HP:, 2 * G3:3 * G3].set(whh1)

    return dict(
        wih0=_fuse_w(params["wih0"], d_feat, d_pad).astype(jnp.bfloat16),
        wbig=wbig.astype(jnp.bfloat16),
        # r/z hidden biases fold into the input-side fused bias; b_hn stays on the h side.
        b0i=_fuse_b(bih0[0] + bhh0[0], bih0[1] + bhh0[1], bih0[2]),
        b0hn=_pad_row(bhh0[2]),
        b1i=_fuse_b(bih1[0] + bhh1[0], bih1[1] + bhh1[1], bih1[2]),
        b1hn=_pad_row(bhh1[2]),
        fcw=jnp.pad(params["fcw"], ((0, HP - HIDDEN), (0, 0))),      # (HP, 1)
        fcb=params["fcb"],                                           # (1, 1)
    )


# ----------------------------------------------------------------------------
# Wrapper
# ----------------------------------------------------------------------------
def gru_forward_pallas(x, params):
    """x: (N, T, D_FEAT) float32 -> (N,) float32  (matches GRUModel.forward)."""
    N, T, D = x.shape
    Np = max(8, ((N + 7) // 8) * 8)   # pad batch to a sublane multiple
    Dp = max(8, ((D + 7) // 8) * 8)   # pad feature dim to a sublane multiple

    kp = pack_params(params, D, Dp)

    # batch_first -> time-major, pad, flatten (time, batch) for the hoisted projection.
    # TODO(synk): at large N*T fold this re-layout into an index_map / in-kernel blocking
    # instead of a separate XLA transpose+pad pass.
    x_tm = jnp.transpose(x, (1, 0, 2))                        # (T, N, D)
    x_tm = jnp.pad(x_tm, ((0, 0), (0, Np - N), (0, Dp - D)))  # (T, Np, Dp)
    x_flat = x_tm.reshape(T * Np, Dp)

    vmem = pl.BlockSpec(memory_space=pltpu.MemorySpace.VMEM)

    out = pl.pallas_call(
        gru_kernel,
        out_shape=jax.ShapeDtypeStruct((Np, 1), jnp.float32),
        in_specs=[vmem] * 9,
        out_specs=vmem,
        scratch_shapes=[
            pltpu.VMEM((T * Np, G3), jnp.float32),   # hoisted layer-0 input projections
        ],
    )(
        x_flat,
        kp["wih0"], kp["wbig"],
        kp["b0i"], kp["b0hn"], kp["b1i"], kp["b1hn"],
        kp["fcw"], kp["fcb"],
    )
    return out[:N, 0]   # .squeeze() of (N, 1) -> (N,)


# ----------------------------------------------------------------------------
# Deterministic parameter init (PyTorch-style uniform(-1/sqrt(H), 1/sqrt(H)))
# ----------------------------------------------------------------------------
def init_params(key, d_feat=D_FEAT, hidden=HIDDEN):
    H = hidden
    bound = 1.0 / np.sqrt(H)
    keys = jax.random.split(key, 12)
    u = lambda k, shape: jax.random.uniform(k, shape, jnp.float32, -bound, bound)

    # weights stored pre-transposed per gate: (3 gates [r, z, n], in_dim, H)
    return {
        "wih0": u(keys[0], (3, d_feat, H)),
        "whh0": u(keys[1], (3, H, H)),
        "bih0": u(keys[2], (3, 1, H)),
        "bhh0": u(keys[3], (3, 1, H)),
        "wih1": u(keys[4], (3, H, H)),
        "whh1": u(keys[5], (3, H, H)),
        "bih1": u(keys[6], (3, 1, H)),
        "bhh1": u(keys[7], (3, 1, H)),
        "fcw": u(keys[8], (H, 1)),
        "fcb": u(keys[9], (1, 1)),
    }


# ----------------------------------------------------------------------------
# Pure-JAX f32 reference (mirrors PyTorch nn.GRU semantics) for validation
# ----------------------------------------------------------------------------
def gru_forward_ref(x, params):
    N, T, D = x.shape
    H = HIDDEN

    def cell(xt, h, wih, whh, bih, bhh):
        gi = [xt @ wih[g] + bih[g] for g in range(3)]
        gh = [h @ whh[g] + bhh[g] for g in range(3)]
        r = jax.nn.sigmoid(gi[0] + gh[0])
        z = jax.nn.sigmoid(gi[1] + gh[1])
        n = jnp.tanh(gi[2] + r * gh[2])
        return (1.0 - z) * n + z * h

    h0 = jnp.zeros((N, H), jnp.float32)
    h1 = jnp.zeros((N, H), jnp.float32)
    for t in range(T):
        xt = x[:, t, :]
        h0 = cell(xt, h0, params["wih0"], params["whh0"], params["bih0"], params["bhh0"])
        h1 = cell(h0, h1, params["wih1"], params["whh1"], params["bih1"], params["bhh1"])
    return (h1 @ params["fcw"] + params["fcb"])[:, 0]


# ----------------------------------------------------------------------------
if __name__ == "__main__":
    key = jax.random.PRNGKey(0)
    k_param, k_x = jax.random.split(key)

    N, T = 2, 8                      # small shapes: batch=2, seq=8, d_feat=6, hidden=64
    params = init_params(k_param)
    x = jax.random.normal(k_x, (N, T, D_FEAT), dtype=jnp.float32)

    out = gru_forward_pallas(x, params)
    out = jax.block_until_ready(out)

    ref = gru_forward_ref(x, params)
    # bf16 MXU operands over T recurrent steps -> relaxed tolerance vs the f32 reference.
    np.testing.assert_allclose(np.asarray(out), np.asarray(ref), rtol=3e-2, atol=3e-2)

    print("KERNEL_OK")
</pallas_src>

<mosaic_0001>
module attributes {stable_mosaic.version = 11 : i64} {
  func.func @gru_kernel(%arg0: memref<64x8xf32, #tpu.memory_space<vmem>>, %arg1: memref<8x384xbf16, #tpu.memory_space<vmem>>, %arg2: memref<256x1152xbf16, #tpu.memory_space<vmem>>, %arg3: memref<1x384xf32, #tpu.memory_space<vmem>>, %arg4: memref<1x128xf32, #tpu.memory_space<vmem>>, %arg5: memref<1x384xf32, #tpu.memory_space<vmem>>, %arg6: memref<1x128xf32, #tpu.memory_space<vmem>>, %arg7: memref<128x1xf32, #tpu.memory_space<vmem>>, %arg8: memref<1x1xf32, #tpu.memory_space<vmem>>, %arg9: memref<8x1xf32, #tpu.memory_space<vmem>>, %arg10: memref<64x384xf32, #tpu.memory_space<vmem>>) attributes {dimension_semantics = [], scalar_prefetch = 0 : i64, scratch_operands = 1 : i64, tpu.core_type = #tpu.core_type<tc>} {
    %c0 = arith.constant 0 : index
    %c0_0 = arith.constant 0 : index
    %0 = vector.load %arg0[%c0, %c0_0] : memref<64x8xf32, #tpu.memory_space<vmem>>, vector<64x8xf32>
    %1 = arith.truncf %0 : vector<64x8xf32> to vector<64x8xbf16>
    %c0_1 = arith.constant 0 : index
    %c0_2 = arith.constant 0 : index
    %2 = vector.load %arg1[%c0_1, %c0_2] : memref<8x384xbf16, #tpu.memory_space<vmem>>, vector<8x384xbf16>
    %cst = arith.constant dense<0.000000e+00> : vector<64x384xf32>
    %3 = tpu.matmul %1, %2, %cst {dimension_numbers = #tpu.dot_dimension_numbers<[1], [0], [0], [1], [0, 0, 1, 1], [], []>} : vector<64x8xbf16>, vector<8x384xbf16>, vector<64x384xf32> -> vector<64x384xf32>
    %c0_3 = arith.constant 0 : index
    %c0_4 = arith.constant 0 : index
    %4 = vector.load %arg3[%c0_3, %c0_4] : memref<1x384xf32, #tpu.memory_space<vmem>>, vector<1x384xf32>
    %5 = vector.broadcast %4 : vector<1x384xf32> to vector<64x384xf32>
    %6 = arith.addf %3, %5 : vector<64x384xf32>
    %c0_5 = arith.constant 0 : index
    %c0_6 = arith.constant 0 : index
    %7 = vector.load %arg10[%c0_5, %c0_6] : memref<64x384xf32, #tpu.memory_space<vmem>>, vector<64x384xf32>
    tpu.vector_store %arg10[%c0_5, %c0_6], %6 {strides = array<i32>} : memref<64x384xf32, #tpu.memory_space<vmem>>, vector<64x384xf32>,
    %c0_7 = arith.constant 0 : index
    %c0_8 = arith.constant 0 : index
    %8 = vector.load %arg4[%c0_7, %c0_8] : memref<1x128xf32, #tpu.memory_space<vmem>>, vector<1x128xf32>
    %c0_9 = arith.constant 0 : index
    %c0_10 = arith.constant 0 : index
    %9 = vector.load %arg5[%c0_9, %c0_10] : memref<1x384xf32, #tpu.memory_space<vmem>>, vector<1x384xf32>
    %c0_11 = arith.constant 0 : index
    %c0_12 = arith.constant 0 : index
    %10 = vector.load %arg6[%c0_11, %c0_12] : memref<1x128xf32, #tpu.memory_space<vmem>>, vector<1x128xf32>
    %c0_13 = arith.constant 0 : index
    %c0_14 = arith.constant 0 : index
    %11 = vector.load %arg2[%c0_13, %c0_14] : memref<256x1152xbf16, #tpu.memory_space<vmem>>, vector<256x1152xbf16>
    %cst_15 = arith.constant 0.000000e+00 : f32
    %12 = vector.broadcast %cst_15 : f32 to vector<8x128xf32>
    %c0_16 = arith.constant 0 : index
    %c0_17 = arith.constant 0 : index
    %13 = vector.load %arg10[%c0_16, %c0_17] : memref<64x384xf32, #tpu.memory_space<vmem>>, vector<8x384xf32>
    %cst_18 = arith.constant 0.000000e+00 : f32
    %14 = vector.broadcast %cst_18 : f32 to vector<8x384xf32>
    %15 = vector.extract_strided_slice %13 {offsets = [0, 0], sizes = [8, 128], strides = [1, 1]} : vector<8x384xf32> to vector<8x128xf32>
    %16 = vector.extract_strided_slice %14 {offsets = [0, 0], sizes = [8, 128], strides = [1, 1]} : vector<8x384xf32> to vector<8x128xf32>
    %17 = arith.addf %15, %16 : vector<8x128xf32>
    %cst_19 = arith.constant 5.000000e-01 : f32
    %18 = vector.broadcast %cst_19 : f32 to vector<8x128xf32>
    %19 = arith.mulf %18, %17 : vector<8x128xf32>
    %20 = math.tanh %19 : vector<8x128xf32>
    %cst_20 = arith.constant 5.000000e-01 : f32
    %21 = vector.broadcast %cst_20 : f32 to vector<8x128xf32>
    %22 = arith.mulf %21, %20 : vector<8x128xf32>
    %cst_21 = arith.constant 5.000000e-01 : f32
    %23 = vector.broadcast %cst_21 : f32 to vector<8x128xf32>
    %24 = arith.addf %22, %23 : vector<8x128xf32>
    %25 = vector.extract_strided_slice %13 {offsets = [0, 128], sizes = [8, 128], strides = [1, 1]} : vector<8x384xf32> to vector<8x128xf32>
    %26 = vector.extract_strided_slice %14 {offsets = [0, 128], sizes = [8, 128], strides = [1, 1]} : vector<8x384xf32> to vector<8x128xf32>
    %27 = arith.addf %25, %26 : vector<8x128xf32>
    %cst_22 = arith.constant 5.000000e-01 : f32
    %28 = vector.broadcast %cst_22 : f32 to vector<8x128xf32>
    %29 = arith.mulf %28, %27 : vector<8x128xf32>
    %30 = math.tanh %29 : vector<8x128xf32>
    %cst_23 = arith.constant 5.000000e-01 : f32
    %31 = vector.broadcast %cst_23 : f32 to vector<8x128xf32>
    %32 = arith.mulf %31, %30 : vector<8x128xf32>
    %cst_24 = arith.constant 5.000000e-01 : f32
    %33 = vector.broadcast %cst_24 : f32 to vector<8x128xf32>
    %34 = arith.addf %32, %33 : vector<8x128xf32>
    %35 = vector.extract_strided_slice %13 {offsets = [0, 256], sizes = [8, 128], strides = [1, 1]} : vector<8x384xf32> to vector<8x128xf32>
    %36 = vector.extract_strided_slice %14 {offsets = [0, 256], sizes = [8, 128], strides = [1, 1]} : vector<8x384xf32> to vector<8x128xf32>
    %37 = vector.broadcast %8 : vector<1x128xf32> to vector<8x128xf32>
    %38 = arith.addf %36, %37 : vector<8x128xf32>
    %39 = arith.mulf %24, %38 : vector<8x128xf32>
    %40 = arith.addf %35, %39 : vector<8x128xf32>
    %41 = math.tanh %40 : vector<8x128xf32>
    %cst_25 = arith.constant 1.000000e+00 : f32
    %42 = vector.broadcast %cst_25 : f32 to vector<8x128xf32>
    %43 = arith.subf %42, %34 : vector<8x128xf32>
    %44 = arith.mulf %43, %41 : vector<8x128xf32>
    %45 = arith.mulf %34, %12 : vector<8x128xf32>
    %46 = arith.addf %44, %45 : vector<8x128xf32>
    %c1_i32 = arith.constant 1 : i32
    %47 = tpu.concatenate %46, %12 in 1 : vector<8x128xf32>, vector<8x128xf32> -> vector<8x256xf32>
    %48 = arith.truncf %47 : vector<8x256xf32> to vector<8x256xbf16>
    %cst_26 = arith.constant dense<0.000000e+00> : vector<8x1152xf32>
    %49 = tpu.matmul %48, %11, %cst_26 {dimension_numbers = #tpu.dot_dimension_numbers<[1], [0], [0], [1], [0, 0, 1, 1], [], []>} : vector<8x256xbf16>, vector<256x1152xbf16>, vector<8x1152xf32> -> vector<8x1152xf32>
    %50 = vector.extract_strided_slice %49 {offsets = [0, 0], sizes = [8, 384], strides = [1, 1]} : vector<8x1152xf32> to vector<8x384xf32>
    %51 = vector.extract_strided_slice %49 {offsets = [0, 384], sizes = [8, 384], strides = [1, 1]} : vector<8x1152xf32> to vector<8x384xf32>
    %52 = vector.broadcast %9 : vector<1x384xf32> to vector<8x384xf32>
    %53 = arith.addf %51, %52 : vector<8x384xf32>
    %54 = vector.extract_strided_slice %49 {offsets = [0, 768], sizes = [8, 384], strides = [1, 1]} : vector<8x1152xf32> to vector<8x384xf32>
    %c8_i32 = arith.constant 8 : i32
    %55 = arith.muli %c1_i32, %c8_i32 : i32
    %56 = tpu.assume_multiple %55, 8 : i32
    %57 = arith.index_cast %56 : i32 to index
    %c0_27 = arith.constant 0 : index
    %58 = vector.load %arg10[%57, %c0_27] : memref<64x384xf32, #tpu.memory_space<vmem>>, vector<8x384xf32>
    %59 = vector.extract_strided_slice %58 {offsets = [0, 0], sizes = [8, 128], strides = [1, 1]} : vector<8x384xf32> to vector<8x128xf32>
    %60 = vector.extract_strided_slice %50 {offsets = [0, 0], sizes = [8, 128], strides = [1, 1]} : vector<8x384xf32> to vector<8x128xf32>
    %61 = arith.addf %59, %60 : vector<8x128xf32>
    %cst_28 = arith.constant 5.000000e-01 : f32
    %62 = vector.broadcast %cst_28 : f32 to vector<8x128xf32>
    %63 = arith.mulf %62, %61 : vector<8x128xf32>
    %64 = math.tanh %63 : vector<8x128xf32>
    %cst_29 = arith.constant 5.000000e-01 : f32
    %65 = vector.broadcast %cst_29 : f32 to vector<8x128xf32>
    %66 = arith.mulf %65, %64 : vector<8x128xf32>
    %cst_30 = arith.constant 5.000000e-01 : f32
    %67 = vector.broadcast %cst_30 : f32 to vector<8x128xf32>
    %68 = arith.addf %66, %67 : vector<8x128xf32>
    %69 = vector.extract_strided_slice %58 {offsets = [0, 128], sizes = [8, 128], strides = [1, 1]} : vector<8x384xf32> to vector<8x128xf32>
    %70 = vector.extract_strided_slice %50 {offsets = [0, 128], sizes = [8, 128], strides = [1, 1]} : vector<8x384xf32> to vector<8x128xf32>
    %71 = arith.addf %69, %70 : vector<8x128xf32>
    %cst_31 = arith.constant 5.000000e-01 : f32
    %72 = vector.broadcast %cst_31 : f32 to vector<8x128xf32>
    %73 = arith.mulf %72, %71 : vector<8x128xf32>
    %74 = math.tanh %73 : vector<8x128xf32>
    %cst_32 = arith.constant 5.000000e-01 : f32
    %75 = vector.broadcast %cst_32 : f32 to vector<8x128xf32>
    %76 = arith.mulf %75, %74 : vector<8x128xf32>
    %cst_33 = arith.constant 5.000000e-01 : f32
    %77 = vector.broadcast %cst_33 : f32 to vector<8x128xf32>
    %78 = arith.addf %76, %77 : vector<8x128xf32>
    %79 = vector.extract_strided_slice %58 {offsets = [0, 256], sizes = [8, 128], strides = [1, 1]} : vector<8x384xf32> to vector<8x128xf32>
    %80 = vector.extract_strided_slice %50 {offsets = [0, 256], sizes = [8, 128], strides = [1, 1]} : vector<8x384xf32> to vector<8x128xf32>
    %81 = vector.broadcast %8 : vector<1x128xf32> to vector<8x128xf32>
    %82 = arith.addf %80, %81 : vector<8x128xf32>
    %83 = arith.mulf %68, %82 : vector<8x128xf32>
    %84 = arith.addf %79, %83 : vector<8x128xf32>
    %85 = math.tanh %84 : vector<8x128xf32>
    %cst_34 = arith.constant 1.000000e+00 : f32
    %86 = vector.broadcast %cst_34 : f32 to vector<8x128xf32>
    %87 = arith.subf %86, %78 : vector<8x128xf32>
    %88 = arith.mulf %87, %85 : vector<8x128xf32>
    %89 = arith.mulf %78, %46 : vector<8x128xf32>
    %90 = arith.addf %88, %89 : vector<8x128xf32>
    %91 = vector.extract_strided_slice %53 {offsets = [0, 0], sizes = [8, 128], strides = [1, 1]} : vector<8x384xf32> to vector<8x128xf32>
    %92 = vector.extract_strided_slice %54 {offsets = [0, 0], sizes = [8, 128], strides = [1, 1]} : vector<8x384xf32> to vector<8x128xf32>
    %93 = arith.addf %91, %92 : vector<8x128xf32>
    %cst_35 = arith.constant 5.000000e-01 : f32
    %94 = vector.broadcast %cst_35 : f32 to vector<8x128xf32>
    %95 = arith.mulf %94, %93 : vector<8x128xf32>
    %96 = math.tanh %95 : vector<8x128xf32>
    %cst_36 = arith.constant 5.000000e-01 : f32
    %97 = vector.broadcast %cst_36 : f32 to vector<8x128xf32>
    %98 = arith.mulf %97, %96 : vector<8x128xf32>
    %cst_37 = arith.constant 5.000000e-01 : f32
    %99 = vector.broadcast %cst_37 : f32 to vector<8x128xf32>
    %100 = arith.addf %98, %99 : vector<8x128xf32>
    %101 = vector.extract_strided_slice %53 {offsets = [0, 128], sizes = [8, 128], strides = [1, 1]} : vector<8x384xf32> to vector<8x128xf32>
    %102 = vector.extract_strided_slice %54 {offsets = [0, 128], sizes = [8, 128], strides = [1, 1]} : vector<8x384xf32> to vector<8x128xf32>
    %103 = arith.addf %101, %102 : vector<8x128xf32>
    %cst_38 = arith.constant 5.000000e-01 : f32
    %104 = vector.broadcast %cst_38 : f32 to vector<8x128xf32>
    %105 = arith.mulf %104, %103 : vector<8x128xf32>
    %106 = math.tanh %105 : vector<8x128xf32>
    %cst_39 = arith.constant 5.000000e-01 : f32
    %107 = vector.broadcast %cst_39 : f32 to vector<8x128xf32>
    %108 = arith.mulf %107, %106 : vector<8x128xf32>
    %cst_40 = arith.constant 5.000000e-01 : f32
    %109 = vector.broadcast %cst_40 : f32 to vector<8x128xf32>
    %110 = arith.addf %108, %109 : vector<8x128xf32>
    %111 = vector.extract_strided_slice %53 {offsets = [0, 256], sizes = [8, 128], strides = [1, 1]} : vector<8x384xf32> to vector<8x128xf32>
    %112 = vector.extract_strided_slice %54 {offsets = [0, 256], sizes = [8, 128], strides = [1, 1]} : vector<8x384xf32> to vector<8x128xf32>
    %113 = vector.broadcast %10 : vector<1x128xf32> to vector<8x128xf32>
    %114 = arith.addf %112, %113 : vector<8x128xf32>
    %115 = arith.mulf %100, %114 : vector<8x128xf32>
    %116 = arith.addf %111, %115 : vector<8x128xf32>
    %117 = math.tanh %116 : vector<8x128xf32>
    %cst_41 = arith.constant 1.000000e+00 : f32
    %118 = vector.broadcast %cst_41 : f32 to vector<8x128xf32>
    %119 = arith.subf %118, %110 : vector<8x128xf32>
    %120 = arith.mulf %119, %117 : vector<8x128xf32>
    %121 = arith.mulf %110, %12 : vector<8x128xf32>
    %122 = arith.addf %120, %121 : vector<8x128xf32>
    %c2_i32 = arith.constant 2 : i32
    %123 = tpu.concatenate %90, %122 in 1 : vector<8x128xf32>, vector<8x128xf32> -> vector<8x256xf32>
    %124 = arith.truncf %123 : vector<8x256xf32> to vector<8x256xbf16>
    %cst_42 = arith.constant dense<0.000000e+00> : vector<8x1152xf32>
    %125 = tpu.matmul %124, %11, %cst_42 {dimension_numbers = #tpu.dot_dimension_numbers<[1], [0], [0], [1], [0, 0, 1, 1], [], []>} : vector<8x256xbf16>, vector<256x1152xbf16>, vector<8x1152xf32> -> vector<8x1152xf32>
    %126 = vector.extract_strided_slice %125 {offsets = [0, 0], sizes = [8, 384], strides = [1, 1]} : vector<8x1152xf32> to vector<8x384xf32>
    %127 = vector.extract_strided_slice %125 {offsets = [0, 384], sizes = [8, 384], strides = [1, 1]} : vector<8x1152xf32> to vector<8x384xf32>
    %128 = vector.broadcast %9 : vector<1x384xf32> to vector<8x384xf32>
    %129 = arith.addf %127, %128 : vector<8x384xf32>
    %130 = vector.extract_strided_slice %125 {offsets = [0, 768], sizes = [8, 384], strides = [1, 1]} : vector<8x1152xf32> to vector<8x384xf32>
    %c8_i32_43 = arith.constant 8 : i32
    %131 = arith.muli %c2_i32, %c8_i32_43 : i32
    %132 = tpu.assume_multiple %131, 8 : i32
    %133 = arith.index_cast %132 : i32 to index
    %c0_44 = arith.constant 0 : index
    %134 = vector.load %arg10[%133, %c0_44] : memref<64x384xf32, #tpu.memory_space<vmem>>, vector<8x384xf32>
    %135 = vector.extract_strided_slice %134 {offsets = [0, 0], sizes = [8, 128], strides = [1, 1]} : vector<8x384xf32> to vector<8x128xf32>
    %136 = vector.extract_strided_slice %126 {offsets = [0, 0], sizes = [8, 128], strides = [1, 1]} : vector<8x384xf32> to vector<8x128xf32>
    %137 = arith.addf %135, %136 : vector<8x128xf32>
    %cst_45 = arith.constant 5.000000e-01 : f32
    %138 = vector.broadcast %cst_45 : f32 to vector<8x128xf32>
    %139 = arith.mulf %138, %137 : vector<8x128xf32>
    %140 = math.tanh %139 : vector<8x128xf32>
    %cst_46 = arith.constant 5.000000e-01 : f32
    %141 = vector.broadcast %cst_46 : f32 to vector<8x128xf32>
    %142 = arith.mulf %141, %140 : vector<8x128xf32>
    %cst_47 = arith.constant 5.000000e-01 : f32
    %143 = vector.broadcast %cst_47 : f32 to vector<8x128xf32>
    %144 = arith.addf %142, %143 : vector<8x128xf32>
    %145 = vector.extract_strided_slice %134 {offsets = [0, 128], sizes = [8, 128], strides = [1, 1]} : vector<8x384xf32> to vector<8x128xf32>
    %146 = vector.extract_strided_slice %126 {offsets = [0, 128], sizes = [8, 128], strides = [1, 1]} : vector<8x384xf32> to vector<8x128xf32>
    %147 = arith.addf %145, %146 : vector<8x128xf32>
    %cst_48 = arith.constant 5.000000e-01 : f32
    %148 = vector.broadcast %cst_48 : f32 to vector<8x128xf32>
    %149 = arith.mulf %148, %147 : vector<8x128xf32>
    %150 = math.tanh %149 : vector<8x128xf32>
    %cst_49 = arith.constant 5.000000e-01 : f32
    %151 = vector.broadcast %cst_49 : f32 to vector<8x128xf32>
    %152 = arith.mulf %151, %150 : vector<8x128xf32>
    %cst_50 = arith.constant 5.000000e-01 : f32
    %153 = vector.broadcast %cst_50 : f32 to vector<8x128xf32>
    %154 = arith.addf %152, %153 : vector<8x128xf32>
    %155 = vector.extract_strided_slice %134 {offsets = [0, 256], sizes = [8, 128], strides = [1, 1]} : vector<8x384xf32> to vector<8x128xf32>
    %156 = vector.extract_strided_slice %126 {offsets = [0, 256], sizes = [8, 128], strides = [1, 1]} : vector<8x384xf32> to vector<8x128xf32>
    %157 = vector.broadcast %8 : vector<1x128xf32> to vector<8x128xf32>
    %158 = arith.addf %156, %157 : vector<8x128xf32>
    %159 = arith.mulf %144, %158 : vector<8x128xf32>
    %160 = arith.addf %155, %159 : vector<8x128xf32>
    %161 = math.tanh %160 : vector<8x128xf32>
    %cst_51 = arith.constant 1.000000e+00 : f32
    %162 = vector.broadcast %cst_51 : f32 to vector<8x128xf32>
    %163 = arith.subf %162, %154 : vector<8x128xf32>
    %164 = arith.mulf %163, %161 : vector<8x128xf32>
    %165 = arith.mulf %154, %90 : vector<8x128xf32>
    %166 = arith.addf %164, %165 : vector<8x128xf32>
    %167 = vector.extract_strided_slice %129 {offsets = [0, 0], sizes = [8, 128], strides = [1, 1]} : vector<8x384xf32> to vector<8x128xf32>
    %168 = vector.extract_strided_slice %130 {offsets = [0, 0], sizes = [8, 128], strides = [1, 1]} : vector<8x384xf32> to vector<8x128xf32>
    %169 = arith.addf %167, %168 : vector<8x128xf32>
    %cst_52 = arith.constant 5.000000e-01 : f32
    %170 = vector.broadcast %cst_52 : f32 to vector<8x128xf32>
    %171 = arith.mulf %170, %169 : vector<8x128xf32>
    %172 = math.tanh %171 : vector<8x128xf32>
    %cst_53 = arith.constant 5.000000e-01 : f32
    %173 = vector.broadcast %cst_53 : f32 to vector<8x128xf32>
    %174 = arith.mulf %173, %172 : vector<8x128xf32>
    %cst_54 = arith.constant 5.000000e-01 : f32
    %175 = vector.broadcast %cst_54 : f32 to vector<8x128xf32>
    %176 = arith.addf %174, %175 : vector<8x128xf32>
    %177 = vector.extract_strided_slice %129 {offsets = [0, 128], sizes = [8, 128], strides = [1, 1]} : vector<8x384xf32> to vector<8x128xf32>
    %178 = vector.extract_strided_slice %130 {offsets = [0, 128], sizes = [8, 128], strides = [1, 1]} : vector<8x384xf32> to vector<8x128xf32>
    %179 = arith.addf %177, %178 : vector<8x128xf32>
    %cst_55 = arith.constant 5.000000e-01 : f32
    %180 = vector.broadcast %cst_55 : f32 to vector<8x128xf32>
    %181 = arith.mulf %180, %179 : vector<8x128xf32>
    %182 = math.tanh %181 : vector<8x128xf32>
    %cst_56 = arith.constant 5.000000e-01 : f32
    %183 = vector.broadcast %cst_56 : f32 to vector<8x128xf32>
    %184 = arith.mulf %183, %182 : vector<8x128xf32>
    %cst_57 = arith.constant 5.000000e-01 : f32
    %185 = vector.broadcast %cst_57 : f32 to vector<8x128xf32>
    %186 = arith.addf %184, %185 : vector<8x128xf32>
    %187 = vector.extract_strided_slice %129 {offsets = [0, 256], sizes = [8, 128], strides = [1, 1]} : vector<8x384xf32> to vector<8x128xf32>
    %188 = vector.extract_strided_slice %130 {offsets = [0, 256], sizes = [8, 128], strides = [1, 1]} : vector<8x384xf32> to vector<8x128xf32>
    %189 = vector.broadcast %10 : vector<1x128xf32> to vector<8x128xf32>
    %190 = arith.addf %188, %189 : vector<8x128xf32>
    %191 = arith.mulf %176, %190 : vector<8x128xf32>
    %192 = arith.addf %187, %191 : vector<8x128xf32>
    %193 = math.tanh %192 : vector<8x128xf32>
    %cst_58 = arith.constant 1.000000e+00 : f32
    %194 = vector.broadcast %cst_58 : f32 to vector<8x128xf32>
    %195 = arith.subf %194, %186 : vector<8x128xf32>
    %196 = arith.mulf %195, %193 : vector<8x128xf32>
    %197 = arith.mulf %186, %122 : vector<8x128xf32>
    %198 = arith.addf %196, %197 : vector<8x128xf32>
    %c3_i32 = arith.constant 3 : i32
    %199 = tpu.concatenate %166, %198 in 1 : vector<8x128xf32>, vector<8x128xf32> -> vector<8x256xf32>
    %200 = arith.truncf %199 : vector<8x256xf32> to vector<8x256xbf16>
    %cst_59 = arith.constant dense<0.000000e+00> : vector<8x1152xf32>
    %201 = tpu.matmul %200, %11, %cst_59 {dimension_numbers = #tpu.dot_dimension_numbers<[1], [0], [0], [1], [0, 0, 1, 1], [], []>} : vector<8x256xbf16>, vector<256x1152xbf16>, vector<8x1152xf32> -> vector<8x1152xf32>
    %202 = vector.extract_strided_slice %201 {offsets = [0, 0], sizes = [8, 384], strides = [1, 1]} : vector<8x1152xf32> to vector<8x384xf32>
    %203 = vector.extract_strided_slice %201 {offsets = [0, 384], sizes = [8, 384], strides = [1, 1]} : vector<8x1152xf32> to vector<8x384xf32>
    %204 = vector.broadcast %9 : vector<1x384xf32> to vector<8x384xf32>
    %205 = arith.addf %203, %204 : vector<8x384xf32>
    %206 = vector.extract_strided_slice %201 {offsets = [0, 768], sizes = [8, 384], strides = [1, 1]} : vector<8x1152xf32> to vector<8x384xf32>
    %c8_i32_60 = arith.constant 8 : i32
    %207 = arith.muli %c3_i32, %c8_i32_60 : i32
    %208 = tpu.assume_multiple %207, 8 : i32
    %209 = arith.index_cast %208 : i32 to index
    %c0_61 = arith.constant 0 : index
    %210 = vector.load %arg10[%209, %c0_61] : memref<64x384xf32, #tpu.memory_space<vmem>>, vector<8x384xf32>
    %211 = vector.extract_strided_slice %210 {offsets = [0, 0], sizes = [8, 128], strides = [1, 1]} : vector<8x384xf32> to vector<8x128xf32>
    %212 = vector.extract_strided_slice %202 {offsets = [0, 0], sizes = [8, 128], strides = [1, 1]} : vector<8x384xf32> to vector<8x128xf32>
    %213 = arith.addf %211, %212 : vector<8x128xf32>
    %cst_62 = arith.constant 5.000000e-01 : f32
    %214 = vector.broadcast %cst_62 : f32 to vector<8x128xf32>
    %215 = arith.mulf %214, %213 : vector<8x128xf32>
    %216 = math.tanh %215 : vector<8x128xf32>
    %cst_63 = arith.constant 5.000000e-01 : f32
    %217 = vector.broadcast %cst_63 : f32 to vector<8x128xf32>
    %218 = arith.mulf %217, %216 : vector<8x128xf32>
    %cst_64 = arith.constant 5.000000e-01 : f32
    %219 = vector.broadcast %cst_64 : f32 to vector<8x128xf32>
    %220 = arith.addf %218, %219 : vector<8x128xf32>
    %221 = vector.extract_strided_slice %210 {offsets = [0, 128], sizes = [8, 128], strides = [1, 1]} : vector<8x384xf32> to vector<8x128xf32>
    %222 = vector.extract_strided_slice %202 {offsets = [0, 128], sizes = [8, 128], strides = [1, 1]} : vector<8x384xf32> to vector<8x128xf32>
    %223 = arith.addf %221, %222 : vector<8x128xf32>
    %cst_65 = arith.constant 5.000000e-01 : f32
    %224 = vector.broadcast %cst_65 : f32 to vector<8x128xf32>
    %225 = arith.mulf %224, %223 : vector<8x128xf32>
    %226 = math.tanh %225 : vector<8x128xf32>
    %cst_66 = arith.constant 5.000000e-01 : f32
    %227 = vector.broadcast %cst_66 : f32 to vector<8x128xf32>
    %228 = arith.mulf %227, %226 : vector<8x128xf32>
    %cst_67 = arith.constant 5.000000e-01 : f32
    %229 = vector.broadcast %cst_67 : f32 to vector<8x128xf32>
    %230 = arith.addf %228, %229 : vector<8x128xf32>
    %231 = vector.extract_strided_slice %210 {offsets = [0, 256], sizes = [8, 128], strides = [1, 1]} : vector<8x384xf32> to vector<8x128xf32>
    %232 = vector.extract_strided_slice %202 {offsets = [0, 256], sizes = [8, 128], strides = [1, 1]} : vector<8x384xf32> to vector<8x128xf32>
    %233 = vector.broadcast %8 : vector<1x128xf32> to vector<8x128xf32>
    %234 = arith.addf %232, %233 : vector<8x128xf32>
    %235 = arith.mulf %220, %234 : vector<8x128xf32>
    %236 = arith.addf %231, %235 : vector<8x128xf32>
    %237 = math.tanh %236 : vector<8x128xf32>
    %cst_68 = arith.constant 1.000000e+00 : f32
    %238 = vector.broadcast %cst_68 : f32 to vector<8x128xf32>
    %239 = arith.subf %238, %230 : vector<8x128xf32>
    %240 = arith.mulf %239, %237 : vector<8x128xf32>
    %241 = arith.mulf %230, %166 : vector<8x128xf32>
    %242 = arith.addf %240, %241 : vector<8x128xf32>
    %243 = vector.extract_strided_slice %205 {offsets = [0, 0], sizes = [8, 128], strides = [1, 1]} : vector<8x384xf32> to vector<8x128xf32>
    %244 = vector.extract_strided_slice %206 {offsets = [0, 0], sizes = [8, 128], strides = [1, 1]} : vector<8x384xf32> to vector<8x128xf32>
    %245 = arith.addf %243, %244 : vector<8x128xf32>
    %cst_69 = arith.constant 5.000000e-01 : f32
    %246 = vector.broadcast %cst_69 : f32 to vector<8x128xf32>
    %247 = arith.mulf %246, %245 : vector<8x128xf32>
    %248 = math.tanh %247 : vector<8x128xf32>
    %cst_70 = arith.constant 5.000000e-01 : f32
    %249 = vector.broadcast %cst_70 : f32 to vector<8x128xf32>
    %250 = arith.mulf %249, %248 : vector<8x128xf32>
    %cst_71 = arith.constant 5.000000e-01 : f32
    %251 = vector.broadcast %cst_71 : f32 to vector<8x128xf32>
    %252 = arith.addf %250, %251 : vector<8x128xf32>
    %253 = vector.extract_strided_slice %205 {offsets = [0, 128], sizes = [8, 128], strides = [1, 1]} : vector<8x384xf32> to vector<8x128xf32>
    %254 = vector.extract_strided_slice %206 {offsets = [0, 128], sizes = [8, 128], strides = [1, 1]} : vector<8x384xf32> to vector<8x128xf32>
    %255 = arith.addf %253, %254 : vector<8x128xf32>
    %cst_72 = arith.constant 5.000000e-01 : f32
    %256 = vector.broadcast %cst_72 : f32 to vector<8x128xf32>
    %257 = arith.mulf %256, %255 : vector<8x128xf32>
    %258 = math.tanh %257 : vector<8x128xf32>
    %cst_73 = arith.constant 5.000000e-01 : f32
    %259 = vector.broadcast %cst_73 : f32 to vector<8x128xf32>
    %260 = arith.mulf %259, %258 : vector<8x128xf32>
    %cst_74 = arith.constant 5.000000e-01 : f32
    %261 = vector.broadcast %cst_74 : f32 to vector<8x128xf32>
    %262 = arith.addf %260, %261 : vector<8x128xf32>
    %263 = vector.extract_strided_slice %205 {offsets = [0, 256], sizes = [8, 128], strides = [1, 1]} : vector<8x384xf32> to vector<8x128xf32>
    %264 = vector.extract_strided_slice %206 {offsets = [0, 256], sizes = [8, 128], strides = [1, 1]} : vector<8x384xf32> to vector<8x128xf32>
    %265 = vector.broadcast %10 : vector<1x128xf32> to vector<8x128xf32>
    %266 = arith.addf %264, %265 : vector<8x128xf32>
    %267 = arith.mulf %252, %266 : vector<8x128xf32>
    %268 = arith.addf %263, %267 : vector<8x128xf32>
    %269 = math.tanh %268 : vector<8x128xf32>
    %cst_75 = arith.constant 1.000000e+00 : f32
    %270 = vector.broadcast %cst_75 : f32 to vector<8x128xf32>
    %271 = arith.subf %270, %262 : vector<8x128xf32>
    %272 = arith.mulf %271, %269 : vector<8x128xf32>
    %273 = arith.mulf %262, %198 : vector<8x128xf32>
    %274 = arith.addf %272, %273 : vector<8x128xf32>
    %c4_i32 = arith.constant 4 : i32
    %275 = tpu.concatenate %242, %274 in 1 : vector<8x128xf32>, vector<8x128xf32> -> vector<8x256xf32>
    %276 = arith.truncf %275 : vector<8x256xf32> to vector<8x256xbf16>
    %cst_76 = arith.constant dense<0.000000e+00> : vector<8x1152xf32>
    %277 = tpu.matmul %276, %11, %cst_76 {dimension_numbers = #tpu.dot_dimension_numbers<[1], [0], [0], [1], [0, 0, 1, 1], [], []>} : vector<8x256xbf16>, vector<256x1152xbf16>, vector<8x1152xf32> -> vector<8x1152xf32>
    %278 = vector.extract_strided_slice %277 {offsets = [0, 0], sizes = [8, 384], strides = [1, 1]} : vector<8x1152xf32> to vector<8x384xf32>
    %279 = vector.extract_strided_slice %277 {offsets = [0, 384], sizes = [8, 384], strides = [1, 1]} : vector<8x1152xf32> to vector<8x384xf32>
    %280 = vector.broadcast %9 : vector<1x384xf32> to vector<8x384xf32>
    %281 = arith.addf %279, %280 : vector<8x384xf32>
    %282 = vector.extract_strided_slice %277 {offsets = [0, 768], sizes = [8, 384], strides = [1, 1]} : vector<8x1152xf32> to vector<8x384xf32>
    %c8_i32_77 = arith.constant 8 : i32
    %283 = arith.muli %c4_i32, %c8_i32_77 : i32
    %284 = tpu.assume_multiple %283, 8 : i32
    %285 = arith.index_cast %284 : i32 to index
    %c0_78 = arith.constant 0 : index
    %286 = vector.load %arg10[%285, %c0_78] : memref<64x384xf32, #tpu.memory_space<vmem>>, vector<8x384xf32>
    %287 = vector.extract_strided_slice %286 {offsets = [0, 0], sizes = [8, 128], strides = [1, 1]} : vector<8x384xf32> to vector<8x128xf32>
    %288 = vector.extract_strided_slice %278 {offsets = [0, 0], sizes = [8, 128], strides = [1, 1]} : vector<8x384xf32> to vector<8x128xf32>
    %289 = arith.addf %287, %288 : vector<8x128xf32>
    %cst_79 = arith.constant 5.000000e-01 : f32
    %290 = vector.broadcast %cst_79 : f32 to vector<8x128xf32>
    %291 = arith.mulf %290, %289 : vector<8x128xf32>
    %292 = math.tanh %291 : vector<8x128xf32>
    %cst_80 = arith.constant 5.000000e-01 : f32
    %293 = vector.broadcast %cst_80 : f32 to vector<8x128xf32>
    %294 = arith.mulf %293, %292 : vector<8x128xf32>
    %cst_81 = arith.constant 5.000000e-01 : f32
    %295 = vector.broadcast %cst_81 : f32 to vector<8x128xf32>
    %296 = arith.addf %294, %295 : vector<8x128xf32>
    %297 = vector.extract_strided_slice %286 {offsets = [0, 128], sizes = [8, 128], strides = [1, 1]} : vector<8x384xf32> to vector<8x128xf32>
    %298 = vector.extract_strided_slice %278 {offsets = [0, 128], sizes = [8, 128], strides = [1, 1]} : vector<8x384xf32> to vector<8x128xf32>
    %299 = arith.addf %297, %298 : vector<8x128xf32>
    %cst_82 = arith.constant 5.000000e-01 : f32
    %300 = vector.broadcast %cst_82 : f32 to vector<8x128xf32>
    %301 = arith.mulf %300, %299 : vector<8x128xf32>
    %302 = math.tanh %301 : vector<8x128xf32>
    %cst_83 = arith.constant 5.000000e-01 : f32
    %303 = vector.broadcast %cst_83 : f32 to vector<8x128xf32>
    %304 = arith.mulf %303, %302 : vector<8x128xf32>
    %cst_84 = arith.constant 5.000000e-01 : f32
    %305 = vector.broadcast %cst_84 : f32 to vector<8x128xf32>
    %306 = arith.addf %304, %305 : vector<8x128xf32>
    %307 = vector.extract_strided_slice %286 {offsets = [0, 256], sizes = [8, 128], strides = [1, 1]} : vector<8x384xf32> to vector<8x128xf32>
    %308 = vector.extract_strided_slice %278 {offsets = [0, 256], sizes = [8, 128], strides = [1, 1]} : vector<8x384xf32> to vector<8x128xf32>
    %309 = vector.broadcast %8 : vector<1x128xf32> to vector<8x128xf32>
    %310 = arith.addf %308, %309 : vector<8x128xf32>
    %311 = arith.mulf %296, %310 : vector<8x128xf32>
    %312 = arith.addf %307, %311 : vector<8x128xf32>
    %313 = math.tanh %312 : vector<8x128xf32>
    %cst_85 = arith.constant 1.000000e+00 : f32
    %314 = vector.broadcast %cst_85 : f32 to vector<8x128xf32>
    %315 = arith.subf %314, %306 : vector<8x128xf32>
    %316 = arith.mulf %315, %313 : vector<8x128xf32>
    %317 = arith.mulf %306, %242 : vector<8x128xf32>
    %318 = arith.addf %316, %317 : vector<8x128xf32>
    %319 = vector.extract_strided_slice %281 {offsets = [0, 0], sizes = [8, 128], strides = [1, 1]} : vector<8x384xf32> to vector<8x128xf32>
    %320 = vector.extract_strided_slice %282 {offsets = [0, 0], sizes = [8, 128], strides = [1, 1]} : vector<8x384xf32> to vector<8x128xf32>
    %321 = arith.addf %319, %320 : vector<8x128xf32>
    %cst_86 = arith.constant 5.000000e-01 : f32
    %322 = vector.broadcast %cst_86 : f32 to vector<8x128xf32>
    %323 = arith.mulf %322, %321 : vector<8x128xf32>
    %324 = math.tanh %323 : vector<8x128xf32>
    %cst_87 = arith.constant 5.000000e-01 : f32
    %325 = vector.broadcast %cst_87 : f32 to vector<8x128xf32>
    %326 = arith.mulf %325, %324 : vector<8x128xf32>
    %cst_88 = arith.constant 5.000000e-01 : f32
    %327 = vector.broadcast %cst_88 : f32 to vector<8x128xf32>
    %328 = arith.addf %326, %327 : vector<8x128xf32>
    %329 = vector.extract_strided_slice %281 {offsets = [0, 128], sizes = [8, 128], strides = [1, 1]} : vector<8x384xf32> to vector<8x128xf32>
    %330 = vector.extract_strided_slice %282 {offsets = [0, 128], sizes = [8, 128], strides = [1, 1]} : vector<8x384xf32> to vector<8x128xf32>
    %331 = arith.addf %329, %330 : vector<8x128xf32>
    %cst_89 = arith.constant 5.000000e-01 : f32
    %332 = vector.broadcast %cst_89 : f32 to vector<8x128xf32>
    %333 = arith.mulf %332, %331 : vector<8x128xf32>
    %334 = math.tanh %333 : vector<8x128xf32>
    %cst_90 = arith.constant 5.000000e-01 : f32
    %335 = vector.broadcast %cst_90 : f32 to vector<8x128xf32>
    %336 = arith.mulf %335, %334 : vector<8x128xf32>
    %cst_91 = arith.constant 5.000000e-01 : f32
    %337 = vector.broadcast %cst_91 : f32 to vector<8x128xf32>
    %338 = arith.addf %336, %337 : vector<8x128xf32>
    %339 = vector.extract_strided_slice %281 {offsets = [0, 256], sizes = [8, 128], strides = [1, 1]} : vector<8x384xf32> to vector<8x128xf32>
    %340 = vector.extract_strided_slice %282 {offsets = [0, 256], sizes = [8, 128], strides = [1, 1]} : vector<8x384xf32> to vector<8x128xf32>
    %341 = vector.broadcast %10 : vector<1x128xf32> to vector<8x128xf32>
    %342 = arith.addf %340, %341 : vector<8x128xf32>
    %343 = arith.mulf %328, %342 : vector<8x128xf32>
    %344 = arith.addf %339, %343 : vector<8x128xf32>
    %345 = math.tanh %344 : vector<8x128xf32>
    %cst_92 = arith.constant 1.000000e+00 : f32
    %346 = vector.broadcast %cst_92 : f32 to vector<8x128xf32>
    %347 = arith.subf %346, %338 : vector<8x128xf32>
    %348 = arith.mulf %347, %345 : vector<8x128xf32>
    %349 = arith.mulf %338, %274 : vector<8x128xf32>
    %350 = arith.addf %348, %349 : vector<8x128xf32>
    %c5_i32 = arith.constant 5 : i32
    %351 = tpu.concatenate %318, %350 in 1 : vector<8x128xf32>, vector<8x128xf32> -> vector<8x256xf32>
    %352 = arith.truncf %351 : vector<8x256xf32> to vector<8x256xbf16>
    %cst_93 = arith.constant dense<0.000000e+00> : vector<8x1152xf32>
    %353 = tpu.matmul %352, %11, %cst_93 {dimension_numbers = #tpu.dot_dimension_numbers<[1], [0], [0], [1], [0, 0, 1, 1], [], []>} : vector<8x256xbf16>, vector<256x1152xbf16>, vector<8x1152xf32> -> vector<8x1152xf32>
    %354 = vector.extract_strided_slice %353 {offsets = [0, 0], sizes = [8, 384], strides = [1, 1]} : vector<8x1152xf32> to vector<8x384xf32>
    %355 = vector.extract_strided_slice %353 {offsets = [0, 384], sizes = [8, 384], strides = [1, 1]} : vector<8x1152xf32> to vector<8x384xf32>
    %356 = vector.broadcast %9 : vector<1x384xf32> to vector<8x384xf32>
    %357 = arith.addf %355, %356 : vector<8x384xf32>
    %358 = vector.extract_strided_slice %353 {offsets = [0, 768], sizes = [8, 384], strides = [1, 1]} : vector<8x1152xf32> to vector<8x384xf32>
    %c8_i32_94 = arith.constant 8 : i32
    %359 = arith.muli %c5_i32, %c8_i32_94 : i32
    %360 = tpu.assume_multiple %359, 8 : i32
    %361 = arith.index_cast %360 : i32 to index
    %c0_95 = arith.constant 0 : index
    %362 = vector.load %arg10[%361, %c0_95] : memref<64x384xf32, #tpu.memory_space<vmem>>, vector<8x384xf32>
    %363 = vector.extract_strided_slice %362 {offsets = [0, 0], sizes = [8, 128], strides = [1, 1]} : vector<8x384xf32> to vector<8x128xf32>
    %364 = vector.extract_strided_slice %354 {offsets = [0, 0], sizes = [8, 128], strides = [1, 1]} : vector<8x384xf32> to vector<8x128xf32>
    %365 = arith.addf %363, %364 : vector<8x128xf32>
    %cst_96 = arith.constant 5.000000e-01 : f32
    %366 = vector.broadcast %cst_96 : f32 to vector<8x128xf32>
    %367 = arith.mulf %366, %365 : vector<8x128xf32>
    %368 = math.tanh %367 : vector<8x128xf32>
    %cst_97 = arith.constant 5.000000e-01 : f32
    %369 = vector.broadcast %cst_97 : f32 to vector<8x128xf32>
    %370 = arith.mulf %369, %368 : vector<8x128xf32>
    %cst_98 = arith.constant 5.000000e-01 : f32
    %371 = vector.broadcast %cst_98 : f32 to vector<8x128xf32>
    %372 = arith.addf %370, %371 : vector<8x128xf32>
    %373 = vector.extract_strided_slice %362 {offsets = [0, 128], sizes = [8, 128], strides = [1, 1]} : vector<8x384xf32> to vector<8x128xf32>
    %374 = vector.extract_strided_slice %354 {offsets = [0, 128], sizes = [8, 128], strides = [1, 1]} : vector<8x384xf32> to vector<8x128xf32>
    %375 = arith.addf %373, %374 : vector<8x128xf32>
    %cst_99 = arith.constant 5.000000e-01 : f32
    %376 = vector.broadcast %cst_99 : f32 to vector<8x128xf32>
    %377 = arith.mulf %376, %375 : vector<8x128xf32>
    %378 = math.tanh %377 : vector<8x128xf32>
    %cst_100 = arith.constant 5.000000e-01 : f32
    %379 = vector.broadcast %cst_100 : f32 to vector<8x128xf32>
    %380 = arith.mulf %379, %378 : vector<8x128xf32>
    %cst_101 = arith.constant 5.000000e-01 : f32
    %381 = vector.broadcast %cst_101 : f32 to vector<8x128xf32>
    %382 = arith.addf %380, %381 : vector<8x128xf32>
    %383 = vector.extract_strided_slice %362 {offsets = [0, 256], sizes = [8, 128], strides = [1, 1]} : vector<8x384xf32> to vector<8x128xf32>
    %384 = vector.extract_strided_slice %354 {offsets = [0, 256], sizes = [8, 128], strides = [1, 1]} : vector<8x384xf32> to vector<8x128xf32>
    %385 = vector.broadcast %8 : vector<1x128xf32> to vector<8x128xf32>
    %386 = arith.addf %384, %385 : vector<8x128xf32>
    %387 = arith.mulf %372, %386 : vector<8x128xf32>
    %388 = arith.addf %383, %387 : vector<8x128xf32>
    %389 = math.tanh %388 : vector<8x128xf32>
    %cst_102 = arith.constant 1.000000e+00 : f32
    %390 = vector.broadcast %cst_102 : f32 to vector<8x128xf32>
    %391 = arith.subf %390, %382 : vector<8x128xf32>
    %392 = arith.mulf %391, %389 : vector<8x128xf32>
    %393 = arith.mulf %382, %318 : vector<8x128xf32>
    %394 = arith.addf %392, %393 : vector<8x128xf32>
    %395 = vector.extract_strided_slice %357 {offsets = [0, 0], sizes = [8, 128], strides = [1, 1]} : vector<8x384xf32> to vector<8x128xf32>
    %396 = vector.extract_strided_slice %358 {offsets = [0, 0], sizes = [8, 128], strides = [1, 1]} : vector<8x384xf32> to vector<8x128xf32>
    %397 = arith.addf %395, %396 : vector<8x128xf32>
    %cst_103 = arith.constant 5.000000e-01 : f32
    %398 = vector.broadcast %cst_103 : f32 to vector<8x128xf32>
    %399 = arith.mulf %398, %397 : vector<8x128xf32>
    %400 = math.tanh %399 : vector<8x128xf32>
    %cst_104 = arith.constant 5.000000e-01 : f32
    %401 = vector.broadcast %cst_104 : f32 to vector<8x128xf32>
    %402 = arith.mulf %401, %400 : vector<8x128xf32>
    %cst_105 = arith.constant 5.000000e-01 : f32
    %403 = vector.broadcast %cst_105 : f32 to vector<8x128xf32>
    %404 = arith.addf %402, %403 : vector<8x128xf32>
    %405 = vector.extract_strided_slice %357 {offsets = [0, 128], sizes = [8, 128], strides = [1, 1]} : vector<8x384xf32> to vector<8x128xf32>
    %406 = vector.extract_strided_slice %358 {offsets = [0, 128], sizes = [8, 128], strides = [1, 1]} : vector<8x384xf32> to vector<8x128xf32>
    %407 = arith.addf %405, %406 : vector<8x128xf32>
    %cst_106 = arith.constant 5.000000e-01 : f32
    %408 = vector.broadcast %cst_106 : f32 to vector<8x128xf32>
    %409 = arith.mulf %408, %407 : vector<8x128xf32>
    %410 = math.tanh %409 : vector<8x128xf32>
    %cst_107 = arith.constant 5.000000e-01 : f32
    %411 = vector.broadcast %cst_107 : f32 to vector<8x128xf32>
    %412 = arith.mulf %411, %410 : vector<8x128xf32>
    %cst_108 = arith.constant 5.000000e-01 : f32
    %413 = vector.broadcast %cst_108 : f32 to vector<8x128xf32>
    %414 = arith.addf %412, %413 : vector<8x128xf32>
    %415 = vector.extract_strided_slice %357 {offsets = [0, 256], sizes = [8, 128], strides = [1, 1]} : vector<8x384xf32> to vector<8x128xf32>
    %416 = vector.extract_strided_slice %358 {offsets = [0, 256], sizes = [8, 128], strides = [1, 1]} : vector<8x384xf32> to vector<8x128xf32>
    %417 = vector.broadcast %10 : vector<1x128xf32> to vector<8x128xf32>
    %418 = arith.addf %416, %417 : vector<8x128xf32>
    %419 = arith.mulf %404, %418 : vector<8x128xf32>
    %420 = arith.addf %415, %419 : vector<8x128xf32>
    %421 = math.tanh %420 : vector<8x128xf32>
    %cst_109 = arith.constant 1.000000e+00 : f32
    %422 = vector.broadcast %cst_109 : f32 to vector<8x128xf32>
    %423 = arith.subf %422, %414 : vector<8x128xf32>
    %424 = arith.mulf %423, %421 : vector<8x128xf32>
    %425 = arith.mulf %414, %350 : vector<8x128xf32>
    %426 = arith.addf %424, %425 : vector<8x128xf32>
    %c6_i32 = arith.constant 6 : i32
    %427 = tpu.concatenate %394, %426 in 1 : vector<8x128xf32>, vector<8x128xf32> -> vector<8x256xf32>
    %428 = arith.truncf %427 : vector<8x256xf32> to vector<8x256xbf16>
    %cst_110 = arith.constant dense<0.000000e+00> : vector<8x1152xf32>
    %429 = tpu.matmul %428, %11, %cst_110 {dimension_numbers = #tpu.dot_dimension_numbers<[1], [0], [0], [1], [0, 0, 1, 1], [], []>} : vector<8x256xbf16>, vector<256x1152xbf16>, vector<8x1152xf32> -> vector<8x1152xf32>
    %430 = vector.extract_strided_slice %429 {offsets = [0, 0], sizes = [8, 384], strides = [1, 1]} : vector<8x1152xf32> to vector<8x384xf32>
    %431 = vector.extract_strided_slice %429 {offsets = [0, 384], sizes = [8, 384], strides = [1, 1]} : vector<8x1152xf32> to vector<8x384xf32>
    %432 = vector.broadcast %9 : vector<1x384xf32> to vector<8x384xf32>
    %433 = arith.addf %431, %432 : vector<8x384xf32>
    %434 = vector.extract_strided_slice %429 {offsets = [0, 768], sizes = [8, 384], strides = [1, 1]} : vector<8x1152xf32> to vector<8x384xf32>
    %c8_i32_111 = arith.constant 8 : i32
    %435 = arith.muli %c6_i32, %c8_i32_111 : i32
    %436 = tpu.assume_multiple %435, 8 : i32
    %437 = arith.index_cast %436 : i32 to index
    %c0_112 = arith.constant 0 : index
    %438 = vector.load %arg10[%437, %c0_112] : memref<64x384xf32, #tpu.memory_space<vmem>>, vector<8x384xf32>
    %439 = vector.extract_strided_slice %438 {offsets = [0, 0], sizes = [8, 128], strides = [1, 1]} : vector<8x384xf32> to vector<8x128xf32>
    %440 = vector.extract_strided_slice %430 {offsets = [0, 0], sizes = [8, 128], strides = [1, 1]} : vector<8x384xf32> to vector<8x128xf32>
    %441 = arith.addf %439, %440 : vector<8x128xf32>
    %cst_113 = arith.constant 5.000000e-01 : f32
    %442 = vector.broadcast %cst_113 : f32 to vector<8x128xf32>
    %443 = arith.mulf %442, %441 : vector<8x128xf32>
    %444 = math.tanh %443 : vector<8x128xf32>
    %cst_114 = arith.constant 5.000000e-01 : f32
    %445 = vector.broadcast %cst_114 : f32 to vector<8x128xf32>
    %446 = arith.mulf %445, %444 : vector<8x128xf32>
    %cst_115 = arith.constant 5.000000e-01 : f32
    %447 = vector.broadcast %cst_115 : f32 to vector<8x128xf32>
    %448 = arith.addf %446, %447 : vector<8x128xf32>
    %449 = vector.extract_strided_slice %438 {offsets = [0, 128], sizes = [8, 128], strides = [1, 1]} : vector<8x384xf32> to vector<8x128xf32>
    %450 = vector.extract_strided_slice %430 {offsets = [0, 128], sizes = [8, 128], strides = [1, 1]} : vector<8x384xf32> to vector<8x128xf32>
    %451 = arith.addf %449, %450 : vector<8x128xf32>
    %cst_116 = arith.constant 5.000000e-01 : f32
    %452 = vector.broadcast %cst_116 : f32 to vector<8x128xf32>
    %453 = arith.mulf %452, %451 : vector<8x128xf32>
    %454 = math.tanh %453 : vector<8x128xf32>
    %cst_117 = arith.constant 5.000000e-01 : f32
    %455 = vector.broadcast %cst_117 : f32 to vector<8x128xf32>
    %456 = arith.mulf %455, %454 : vector<8x128xf32>
    %cst_118 = arith.constant 5.000000e-01 : f32
    %457 = vector.broadcast %cst_118 : f32 to vector<8x128xf32>
    %458 = arith.addf %456, %457 : vector<8x128xf32>
    %459 = vector.extract_strided_slice %438 {offsets = [0, 256], sizes = [8, 128], strides = [1, 1]} : vector<8x384xf32> to vector<8x128xf32>
    %460 = vector.extract_strided_slice %430 {offsets = [0, 256], sizes = [8, 128], strides = [1, 1]} : vector<8x384xf32> to vector<8x128xf32>
    %461 = vector.broadcast %8 : vector<1x128xf32> to vector<8x128xf32>
    %462 = arith.addf %460, %461 : vector<8x128xf32>
    %463 = arith.mulf %448, %462 : vector<8x128xf32>
    %464 = arith.addf %459, %463 : vector<8x128xf32>
    %465 = math.tanh %464 : vector<8x128xf32>
    %cst_119 = arith.constant 1.000000e+00 : f32
    %466 = vector.broadcast %cst_119 : f32 to vector<8x128xf32>
    %467 = arith.subf %466, %458 : vector<8x128xf32>
    %468 = arith.mulf %467, %465 : vector<8x128xf32>
    %469 = arith.mulf %458, %394 : vector<8x128xf32>
    %470 = arith.addf %468, %469 : vector<8x128xf32>
    %471 = vector.extract_strided_slice %433 {offsets = [0, 0], sizes = [8, 128], strides = [1, 1]} : vector<8x384xf32> to vector<8x128xf32>
    %472 = vector.extract_strided_slice %434 {offsets = [0, 0], sizes = [8, 128], strides = [1, 1]} : vector<8x384xf32> to vector<8x128xf32>
    %473 = arith.addf %471, %472 : vector<8x128xf32>
    %cst_120 = arith.constant 5.000000e-01 : f32
    %474 = vector.broadcast %cst_120 : f32 to vector<8x128xf32>
    %475 = arith.mulf %474, %473 : vector<8x128xf32>
    %476 = math.tanh %475 : vector<8x128xf32>
    %cst_121 = arith.constant 5.000000e-01 : f32
    %477 = vector.broadcast %cst_121 : f32 to vector<8x128xf32>
    %478 = arith.mulf %477, %476 : vector<8x128xf32>
    %cst_122 = arith.constant 5.000000e-01 : f32
    %479 = vector.broadcast %cst_122 : f32 to vector<8x128xf32>
    %480 = arith.addf %478, %479 : vector<8x128xf32>
    %481 = vector.extract_strided_slice %433 {offsets = [0, 128], sizes = [8, 128], strides = [1, 1]} : vector<8x384xf32> to vector<8x128xf32>
    %482 = vector.extract_strided_slice %434 {offsets = [0, 128], sizes = [8, 128], strides = [1, 1]} : vector<8x384xf32> to vector<8x128xf32>
    %483 = arith.addf %481, %482 : vector<8x128xf32>
    %cst_123 = arith.constant 5.000000e-01 : f32
    %484 = vector.broadcast %cst_123 : f32 to vector<8x128xf32>
    %485 = arith.mulf %484, %483 : vector<8x128xf32>
    %486 = math.tanh %485 : vector<8x128xf32>
    %cst_124 = arith.constant 5.000000e-01 : f32
    %487 = vector.broadcast %cst_124 : f32 to vector<8x128xf32>
    %488 = arith.mulf %487, %486 : vector<8x128xf32>
    %cst_125 = arith.constant 5.000000e-01 : f32
    %489 = vector.broadcast %cst_125 : f32 to vector<8x128xf32>
    %490 = arith.addf %488, %489 : vector<8x128xf32>
    %491 = vector.extract_strided_slice %433 {offsets = [0, 256], sizes = [8, 128], strides = [1, 1]} : vector<8x384xf32> to vector<8x128xf32>
    %492 = vector.extract_strided_slice %434 {offsets = [0, 256], sizes = [8, 128], strides = [1, 1]} : vector<8x384xf32> to vector<8x128xf32>
    %493 = vector.broadcast %10 : vector<1x128xf32> to vector<8x128xf32>
    %494 = arith.addf %492, %493 : vector<8x128xf32>
    %495 = arith.mulf %480, %494 : vector<8x128xf32>
    %496 = arith.addf %491, %495 : vector<8x128xf32>
    %497 = math.tanh %496 : vector<8x128xf32>
    %cst_126 = arith.constant 1.000000e+00 : f32
    %498 = vector.broadcast %cst_126 : f32 to vector<8x128xf32>
    %499 = arith.subf %498, %490 : vector<8x128xf32>
    %500 = arith.mulf %499, %497 : vector<8x128xf32>
    %501 = arith.mulf %490, %426 : vector<8x128xf32>
    %502 = arith.addf %500, %501 : vector<8x128xf32>
    %c7_i32 = arith.constant 7 : i32
    %503 = tpu.concatenate %470, %502 in 1 : vector<8x128xf32>, vector<8x128xf32> -> vector<8x256xf32>
    %504 = arith.truncf %503 : vector<8x256xf32> to vector<8x256xbf16>
    %cst_127 = arith.constant dense<0.000000e+00> : vector<8x1152xf32>
    %505 = tpu.matmul %504, %11, %cst_127 {dimension_numbers = #tpu.dot_dimension_numbers<[1], [0], [0], [1], [0, 0, 1, 1], [], []>} : vector<8x256xbf16>, vector<256x1152xbf16>, vector<8x1152xf32> -> vector<8x1152xf32>
    %506 = vector.extract_strided_slice %505 {offsets = [0, 0], sizes = [8, 384], strides = [1, 1]} : vector<8x1152xf32> to vector<8x384xf32>
    %507 = vector.extract_strided_slice %505 {offsets = [0, 384], sizes = [8, 384], strides = [1, 1]} : vector<8x1152xf32> to vector<8x384xf32>
    %508 = vector.broadcast %9 : vector<1x384xf32> to vector<8x384xf32>
    %509 = arith.addf %507, %508 : vector<8x384xf32>
    %510 = vector.extract_strided_slice %505 {offsets = [0, 768], sizes = [8, 384], strides = [1, 1]} : vector<8x1152xf32> to vector<8x384xf32>
    %c8_i32_128 = arith.constant 8 : i32
    %511 = arith.muli %c7_i32, %c8_i32_128 : i32
    %512 = tpu.assume_multiple %511, 8 : i32
    %513 = arith.index_cast %512 : i32 to index
    %c0_129 = arith.constant 0 : index
    %514 = vector.load %arg10[%513, %c0_129] : memref<64x384xf32, #tpu.memory_space<vmem>>, vector<8x384xf32>
    %515 = vector.extract_strided_slice %514 {offsets = [0, 0], sizes = [8, 128], strides = [1, 1]} : vector<8x384xf32> to vector<8x128xf32>
    %516 = vector.extract_strided_slice %506 {offsets = [0, 0], sizes = [8, 128], strides = [1, 1]} : vector<8x384xf32> to vector<8x128xf32>
    %517 = arith.addf %515, %516 : vector<8x128xf32>
    %cst_130 = arith.constant 5.000000e-01 : f32
    %518 = vector.broadcast %cst_130 : f32 to vector<8x128xf32>
    %519 = arith.mulf %518, %517 : vector<8x128xf32>
    %520 = math.tanh %519 : vector<8x128xf32>
    %cst_131 = arith.constant 5.000000e-01 : f32
    %521 = vector.broadcast %cst_131 : f32 to vector<8x128xf32>
    %522 = arith.mulf %521, %520 : vector<8x128xf32>
    %cst_132 = arith.constant 5.000000e-01 : f32
    %523 = vector.broadcast %cst_132 : f32 to vector<8x128xf32>
    %524 = arith.addf %522, %523 : vector<8x128xf32>
    %525 = vector.extract_strided_slice %514 {offsets = [0, 128], sizes = [8, 128], strides = [1, 1]} : vector<8x384xf32> to vector<8x128xf32>
    %526 = vector.extract_strided_slice %506 {offsets = [0, 128], sizes = [8, 128], strides = [1, 1]} : vector<8x384xf32> to vector<8x128xf32>
    %527 = arith.addf %525, %526 : vector<8x128xf32>
    %cst_133 = arith.constant 5.000000e-01 : f32
    %528 = vector.broadcast %cst_133 : f32 to vector<8x128xf32>
    %529 = arith.mulf %528, %527 : vector<8x128xf32>
    %530 = math.tanh %529 : vector<8x128xf32>
    %cst_134 = arith.constant 5.000000e-01 : f32
    %531 = vector.broadcast %cst_134 : f32 to vector<8x128xf32>
    %532 = arith.mulf %531, %530 : vector<8x128xf32>
    %cst_135 = arith.constant 5.000000e-01 : f32
    %533 = vector.broadcast %cst_135 : f32 to vector<8x128xf32>
    %534 = arith.addf %532, %533 : vector<8x128xf32>
    %535 = vector.extract_strided_slice %514 {offsets = [0, 256], sizes = [8, 128], strides = [1, 1]} : vector<8x384xf32> to vector<8x128xf32>
    %536 = vector.extract_strided_slice %506 {offsets = [0, 256], sizes = [8, 128], strides = [1, 1]} : vector<8x384xf32> to vector<8x128xf32>
    %537 = vector.broadcast %8 : vector<1x128xf32> to vector<8x128xf32>
    %538 = arith.addf %536, %537 : vector<8x128xf32>
    %539 = arith.mulf %524, %538 : vector<8x128xf32>
    %540 = arith.addf %535, %539 : vector<8x128xf32>
    %541 = math.tanh %540 : vector<8x128xf32>
    %cst_136 = arith.constant 1.000000e+00 : f32
    %542 = vector.broadcast %cst_136 : f32 to vector<8x128xf32>
    %543 = arith.subf %542, %534 : vector<8x128xf32>
    %544 = arith.mulf %543, %541 : vector<8x128xf32>
    %545 = arith.mulf %534, %470 : vector<8x128xf32>
    %546 = arith.addf %544, %545 : vector<8x128xf32>
    %547 = vector.extract_strided_slice %509 {offsets = [0, 0], sizes = [8, 128], strides = [1, 1]} : vector<8x384xf32> to vector<8x128xf32>
    %548 = vector.extract_strided_slice %510 {offsets = [0, 0], sizes = [8, 128], strides = [1, 1]} : vector<8x384xf32> to vector<8x128xf32>
    %549 = arith.addf %547, %548 : vector<8x128xf32>
    %cst_137 = arith.constant 5.000000e-01 : f32
    %550 = vector.broadcast %cst_137 : f32 to vector<8x128xf32>
    %551 = arith.mulf %550, %549 : vector<8x128xf32>
    %552 = math.tanh %551 : vector<8x128xf32>
    %cst_138 = arith.constant 5.000000e-01 : f32
    %553 = vector.broadcast %cst_138 : f32 to vector<8x128xf32>
    %554 = arith.mulf %553, %552 : vector<8x128xf32>
    %cst_139 = arith.constant 5.000000e-01 : f32
    %555 = vector.broadcast %cst_139 : f32 to vector<8x128xf32>
    %556 = arith.addf %554, %555 : vector<8x128xf32>
    %557 = vector.extract_strided_slice %509 {offsets = [0, 128], sizes = [8, 128], strides = [1, 1]} : vector<8x384xf32> to vector<8x128xf32>
    %558 = vector.extract_strided_slice %510 {offsets = [0, 128], sizes = [8, 128], strides = [1, 1]} : vector<8x384xf32> to vector<8x128xf32>
    %559 = arith.addf %557, %558 : vector<8x128xf32>
    %cst_140 = arith.constant 5.000000e-01 : f32
    %560 = vector.broadcast %cst_140 : f32 to vector<8x128xf32>
    %561 = arith.mulf %560, %559 : vector<8x128xf32>
    %562 = math.tanh %561 : vector<8x128xf32>
    %cst_141 = arith.constant 5.000000e-01 : f32
    %563 = vector.broadcast %cst_141 : f32 to vector<8x128xf32>
    %564 = arith.mulf %563, %562 : vector<8x128xf32>
    %cst_142 = arith.constant 5.000000e-01 : f32
    %565 = vector.broadcast %cst_142 : f32 to vector<8x128xf32>
    %566 = arith.addf %564, %565 : vector<8x128xf32>
    %567 = vector.extract_strided_slice %509 {offsets = [0, 256], sizes = [8, 128], strides = [1, 1]} : vector<8x384xf32> to vector<8x128xf32>
    %568 = vector.extract_strided_slice %510 {offsets = [0, 256], sizes = [8, 128], strides = [1, 1]} : vector<8x384xf32> to vector<8x128xf32>
    %569 = vector.broadcast %10 : vector<1x128xf32> to vector<8x128xf32>
    %570 = arith.addf %568, %569 : vector<8x128xf32>
    %571 = arith.mulf %556, %570 : vector<8x128xf32>
    %572 = arith.addf %567, %571 : vector<8x128xf32>
    %573 = math.tanh %572 : vector<8x128xf32>
    %cst_143 = arith.constant 1.000000e+00 : f32
    %574 = vector.broadcast %cst_143 : f32 to vector<8x128xf32>
    %575 = arith.subf %574, %566 : vector<8x128xf32>
    %576 = arith.mulf %575, %573 : vector<8x128xf32>
    %577 = arith.mulf %566, %502 : vector<8x128xf32>
    %578 = arith.addf %576, %577 : vector<8x128xf32>
    %c7_i32_144 = arith.constant 7 : i32
    %579 = tpu.concatenate %546, %578 in 1 : vector<8x128xf32>, vector<8x128xf32> -> vector<8x256xf32>
    %580 = arith.truncf %579 : vector<8x256xf32> to vector<8x256xbf16>
    %cst_145 = arith.constant dense<0.000000e+00> : vector<8x1152xf32>
    %581 = tpu.matmul %580, %11, %cst_145 {dimension_numbers = #tpu.dot_dimension_numbers<[1], [0], [0], [1], [0, 0, 1, 1], [], []>} : vector<8x256xbf16>, vector<256x1152xbf16>, vector<8x1152xf32> -> vector<8x1152xf32>
    %582 = vector.extract_strided_slice %581 {offsets = [0, 384], sizes = [8, 384], strides = [1, 1]} : vector<8x1152xf32> to vector<8x384xf32>
    %583 = vector.broadcast %9 : vector<1x384xf32> to vector<8x384xf32>
    %584 = arith.addf %582, %583 : vector<8x384xf32>
    %585 = vector.extract_strided_slice %581 {offsets = [0, 768], sizes = [8, 384], strides = [1, 1]} : vector<8x1152xf32> to vector<8x384xf32>
    %586 = vector.extract_strided_slice %584 {offsets = [0, 0], sizes = [8, 128], strides = [1, 1]} : vector<8x384xf32> to vector<8x128xf32>
    %587 = vector.extract_strided_slice %585 {offsets = [0, 0], sizes = [8, 128], strides = [1, 1]} : vector<8x384xf32> to vector<8x128xf32>
    %588 = arith.addf %586, %587 : vector<8x128xf32>
    %cst_146 = arith.constant 5.000000e-01 : f32
    %589 = vector.broadcast %cst_146 : f32 to vector<8x128xf32>
    %590 = arith.mulf %589, %588 : vector<8x128xf32>
    %591 = math.tanh %590 : vector<8x128xf32>
    %cst_147 = arith.constant 5.000000e-01 : f32
    %592 = vector.broadcast %cst_147 : f32 to vector<8x128xf32>
    %593 = arith.mulf %592, %591 : vector<8x128xf32>
    %cst_148 = arith.constant 5.000000e-01 : f32
    %594 = vector.broadcast %cst_148 : f32 to vector<8x128xf32>
    %595 = arith.addf %593, %594 : vector<8x128xf32>
    %596 = vector.extract_strided_slice %584 {offsets = [0, 128], sizes = [8, 128], strides = [1, 1]} : vector<8x384xf32> to vector<8x128xf32>
    %597 = vector.extract_strided_slice %585 {offsets = [0, 128], sizes = [8, 128], strides = [1, 1]} : vector<8x384xf32> to vector<8x128xf32>
    %598 = arith.addf %596, %597 : vector<8x128xf32>
    %cst_149 = arith.constant 5.000000e-01 : f32
    %599 = vector.broadcast %cst_149 : f32 to vector<8x128xf32>
    %600 = arith.mulf %599, %598 : vector<8x128xf32>
    %601 = math.tanh %600 : vector<8x128xf32>
    %cst_150 = arith.constant 5.000000e-01 : f32
    %602 = vector.broadcast %cst_150 : f32 to vector<8x128xf32>
    %603 = arith.mulf %602, %601 : vector<8x128xf32>
    %cst_151 = arith.constant 5.000000e-01 : f32
    %604 = vector.broadcast %cst_151 : f32 to vector<8x128xf32>
    %605 = arith.addf %603, %604 : vector<8x128xf32>
    %606 = vector.extract_strided_slice %584 {offsets = [0, 256], sizes = [8, 128], strides = [1, 1]} : vector<8x384xf32> to vector<8x128xf32>
    %607 = vector.extract_strided_slice %585 {offsets = [0, 256], sizes = [8, 128], strides = [1, 1]} : vector<8x384xf32> to vector<8x128xf32>
    %608 = vector.broadcast %10 : vector<1x128xf32> to vector<8x128xf32>
    %609 = arith.addf %607, %608 : vector<8x128xf32>
    %610 = arith.mulf %595, %609 : vector<8x128xf32>
    %611 = arith.addf %606, %610 : vector<8x128xf32>
    %612 = math.tanh %611 : vector<8x128xf32>
    %cst_152 = arith.constant 1.000000e+00 : f32
    %613 = vector.broadcast %cst_152 : f32 to vector<8x128xf32>
    %614 = arith.subf %613, %605 : vector<8x128xf32>
    %615 = arith.mulf %614, %612 : vector<8x128xf32>
    %616 = arith.mulf %605, %578 : vector<8x128xf32>
    %617 = arith.addf %615, %616 : vector<8x128xf32>
    %c0_153 = arith.constant 0 : index
    %c0_154 = arith.constant 0 : index
    %618 = vector.load %arg7[%c0_153, %c0_154] : memref<128x1xf32, #tpu.memory_space<vmem>>, vector<128x1xf32>
    %cst_155 = arith.constant dense<0.000000e+00> : vector<8x1xf32>
    %619 = tpu.matmul %617, %618, %cst_155 {dimension_numbers = #tpu.dot_dimension_numbers<[1], [0], [0], [1], [0, 0, 1, 1], [], []>} : vector<8x128xf32>, vector<128x1xf32>, vector<8x1xf32> -> vector<8x1xf32>
    %c0_156 = arith.constant 0 : index
    %c0_157 = arith.constant 0 : index
    %620 = vector.load %arg8[%c0_156, %c0_157] : memref<1x1xf32, #tpu.memory_space<vmem>>, vector<1x1xf32>
    %621 = vector.broadcast %620 : vector<1x1xf32> to vector<8x1xf32>
    %622 = arith.addf %619, %621 : vector<8x1xf32>
    %c0_158 = arith.constant 0 : index
    %c0_159 = arith.constant 0 : index
    %623 = vector.load %arg9[%c0_158, %c0_159] : memref<8x1xf32, #tpu.memory_space<vmem>>, vector<8x1xf32>
    tpu.vector_store %arg9[%c0_158, %c0_159], %622 {strides = array<i32>} : memref<8x1xf32, #tpu.memory_space<vmem>>, vector<8x1xf32>,
    return
  }
}

</mosaic_0001>

<bundles_post_ra>
// kernel: tpu_custom_call.1
= control target key start
LH: loop header
LB: loop body
LE: loop exit
PB: predicated region body
PF: predicated region fallthrough
CT: control target
= control target key end

     0   :  { %s6815_s0 = inlined_call_operand.vmem [shape: f32[64,8], index: 0, kind: input, shape index: {}]   ;;  %s6816_s1 = inlined_call_operand.vmem [shape: bf16[8,384], index: 1, kind: input, shape index: {}]   ;;  %s6817_s2 = inlined_call_operand.hbm [shape: bf16[256,1152], index: 2, kind: input, shape index: {}]   ;;  %s6818_s3 = inlined_call_operand.vmem [shape: f32[1,384], index: 3, kind: input, shape index: {}]   ;;  %s6819_s4 = inlined_call_operand.vmem [shape: f32[1,128], index: 4, kind: input, shape index: {}]   ;;  %s6820_s5 = inlined_call_operand.vmem [shape: f32[1,384], index: 5, kind: input, shape index: {}]   ;;  %s6821_s6 = inlined_call_operand.vmem [shape: f32[1,128], index: 6, kind: input, shape index: {}]   ;;  %s6822_s7 = inlined_call_operand.vmem [shape: f32[128,1], index: 7, kind: input, shape index: {}]   ;;  %s6823_s8 = inlined_call_operand.<no memory space> [shape: f32[1,1], index: 8, kind: input, shape index: {}]   ;;  %s6824_s9 = inlined_call_operand.vmem [shape: f32[8,1], index: 9, kind: output, shape index: {}]  }
   0x1   :  { %v14_v0 = vstv %s6823_s8 }
   0x2   :  { %15 = vst [vmem:[#allocation3] sm:$0x1] %v14_v0 }
   0x3   :  { %16 = vsyncpa [#allocation5], 0  ;;  %s4334_s11 = smov [#allocation4]   ;;  %s4310_s15 = scalar_lea.hbm %s6817_s2, 18432 }
   0x4   :  { %s26_s12 = sshll.u32 %s4334_s11, 4  ;;  %p4311_p0 = scmp.ne.s32.totalorder %s6817_s2, %s4310_s15  ;;  %s27_s12 = int_to_ptr.vmem [resolvable:$true] %s26_s12 }
   0x5   :  { %p4314_p1 = scmp.lt.u32.totalorder %s4310_s15, %s6817_s2 }
   0x7   :  { %p4316_p2 = pnand %p4314_p1, %p4311_p0 }
   0x9   :  { %4319 = shalt.err (!%p4316_p2)
}
   0xa   :  { %s4320_s8 = scalar_lea.vmem %s27_s12, 18432  ;;  %p4325_p4 = scmp.lt.s32.totalorder %s27_s12, %s27_s12 }
   0xb   :  { %p4321_p3 = scmp.ne.s32.totalorder %s27_s12, %s4320_s8  ;;  %p4326_p5 = scmp.lt.s32.totalorder %s4320_s8, %s4320_s8 }
   0xd   :  { %p4327_p6 = por %p4326_p5, %p4325_p4 }
   0xf   :  { %p4328_p7 = pnand %p4327_p6, %p4321_p3 }
  0x11   :  { %4331 = shalt.err (!%p4328_p7)
}
  0x12   :  { %s4335_s20 = smov 576   ;;  %s4336_s21 = smov 36  }
  0x13   :  { %32 = dma.hbm_to_vmem [thread:$0]  %s6817_s2, 18432, %s27_s12, [#allocation5], %s4335_s20, %s4335_s20, %s4336_s21  }
  0x14   :  { %4332 = dma.done.wait [#allocation5], 18432  }
  0x15   :  { %4333 = vsyncadd [#allocation5], 4294948864  ;;  %v4337_v1 = vmov 0   ;;  %v61_v2 = vld [vmem:[%s6816_s1] sm:$0xff]  ;;  %vm101_vm0 = vcmask 1043456   ;;  %v50_v4 = vld [vmem:[%s6815_s0 + $0x8] sm:$0xff] }
  0x16   :  { %143 = vmatprep.mubr.bf16.mxu0 %v4337_v1  ;;  %v49_v3 = vld [vmem:[%s6815_s0] sm:$0xff]  ;;  %v3271_v5 = vcombine.high %v61_v2, %v61_v2  ;;  %v3270_v6 = vcombine.low %v61_v2, %v61_v2  ;;  %v3706_v7 = vld [vmem:[%s6816_s1 + $0x8] ss:$0 sps:$4 sm:$0xff]   ;;  %v51_v8 = vld [vmem:[%s6815_s0 + $0x10] sm:$0xff]  ;;  %vm88_vm1 = vcmask 64512   ;;  %vm4339_vm2 = vmmov 0  }
  0x17   :  { %v52_v9 = vld [vmem:[%s6815_s0 + $0x18] sm:$0xff]  ;;  %v57_v11 = vpack.c.bf16 %v50_v4, %v49_v3  ;;  %3696 = vmatprep.subr.msk.bf16.mxu1 %vm101_vm0, %v3706_v7  ;;  %v109_v12 = vsel %vm101_vm0, %v3706_v7, 0  ;;  %v4425_v14 = vld [vmem:[#allocation4 + $0x4] ss:$36 sps:$4 sm:$0xff]   ;;  %v3709_v15 = vld [vmem:[#allocation4 + $0xc] ss:$36 sps:$4 sm:$0xff]  }
  0x18   :  { %3273 = vmatprep.subr.msk.bf16.mxu0 %vm101_vm0, %v3271_v5  ;;  %v103_v10 = vsel %vm101_vm0, %v3270_v6, 0  ;;  %v58_v13 = vpack.c.bf16 %v52_v9, %v51_v8  ;;  %3628 = vmatpush3.bf16.msra.mxu1 %v109_v12  ;;  %v4427_v16 = vld [vmem:[#allocation4] ss:$36 sps:$4 sm:$0xff]   ;;  %v3712_v17 = vld [vmem:[#allocation4 + $0x8] ss:$36 sps:$4 sm:$0xff]   ;;  %vm3256_vm3 = vcmask 7168  }
  0x19   :  { %112 = vmatpush1.bf16.msra.mxu0 %v103_v10  ;;  %3629 = vmatprep.mubr.msk.bf16.mxu1 %vm88_vm1, %v57_v11  ;;  %v4431_v18 = vld [vmem:[#allocation4 + $0x4c] ss:$36 sps:$4 sm:$0xff]   ;;  %v3715_v19 = vld [vmem:[#allocation4 + $0x54] ss:$36 sps:$4 sm:$0xff]   ;;  %v3721_v23 = vld [vmem:[#allocation4 + $0x9c] ss:$36 sps:$4 sm:$0xff]  }
  0x1a   :  { %1201 = vmatprep.subr.bf16.mxu0 %v4425_v14  ;;  %1242 = vmatprep.subr.bf16.mxu1 %v3709_v15  ;;  %v4435_v20 = vld [vmem:[#allocation4 + $0x48] ss:$36 sps:$4 sm:$0xff]   ;;  %v3718_v21 = vld [vmem:[#allocation4 + $0x50] ss:$36 sps:$4 sm:$0xff]   ;;  %v3724_v25 = vld [vmem:[#allocation4 + $0x98] ss:$36 sps:$4 sm:$0xff]  }
  0x1b   :  { %3630 = vmatmul.mubr.msk.bf16.vlgmr.msra.gmra.mrb[0].mxu1 %vm88_vm1, %v58_v13  ;;  %v4439_v22 = vld [vmem:[#allocation4 + $0x94] ss:$36 sps:$4 sm:$0xff]   ;;  %v4445_v26 = vld [vmem:[#allocation4 + $0xdc] ss:$36 sps:$4 sm:$0xff]   ;;  %v3727_v27 = vld [vmem:[#allocation4 + $0xe4] ss:$36 sps:$4 sm:$0xff]  }
  0x1c   :  { %3274 = vmatmul.mubr.msk.bf16.vlgmr.msra.gmra.mrb[0].mxu0 %vm88_vm1, %v57_v11  ;;  %1243 = vmatpush1.bf16.msra.mxu1 %v3712_v17  ;;  %v4443_v24 = vld [vmem:[#allocation4 + $0x90] ss:$36 sps:$4 sm:$0xff]   ;;  %v4448_v28 = vld [vmem:[#allocation4 + $0xd8] ss:$36 sps:$4 sm:$0xff]   ;;  %v4452_v29 = vld [vmem:[#allocation4 + $0xe0] ss:$36 sps:$4 sm:$0xff]  }
  0x1d   :  { %1202 = vmatpush1.bf16.msra.mxu0 %v4427_v16  ;;  %1244 = vmatprep.subr.bf16.mxu1 %v3715_v19  ;;  %v4455_v30 = vld [vmem:[#allocation4 + $0x124] ss:$36 sps:$4 sm:$0xff]   ;;  %v4457_v31 = vld [vmem:[#allocation4 + $0x12c] ss:$36 sps:$4 sm:$0xff]   ;;  %v4466_v35 = vld [vmem:[#allocation4 + $0x174] ss:$36 sps:$4 sm:$0xff]  }
  0x1e   :  { %1203 = vmatprep.subr.bf16.mxu0 %v4431_v18  ;;  %153 = vmatprep.mubr.bf16.mxu0 %v4337_v1  ;;  %v4459_v32 = vld [vmem:[#allocation4 + $0x120] ss:$36 sps:$4 sm:$0xff]   ;;  %v4461_v33 = vld [vmem:[#allocation4 + $0x128] ss:$36 sps:$4 sm:$0xff]   ;;  %v4474_v37 = vld [vmem:[#allocation4 + $0x170] ss:$36 sps:$4 sm:$0xff]  }
  0x1f   :  { %v4464_v34 = vld [vmem:[#allocation4 + $0x16c] ss:$36 sps:$4 sm:$0xff]   ;;  %v4482_v38 = vld [vmem:[#allocation4 + $0x1b4] ss:$36 sps:$4 sm:$0xff]   ;;  %v4484_v39 = vld [vmem:[#allocation4 + $0x1bc] ss:$36 sps:$4 sm:$0xff]  }
  0x20   :  { %1245 = vmatpush1.bf16.msra.mxu1 %v3718_v21  ;;  %v4472_v36 = vld [vmem:[#allocation4 + $0x168] ss:$36 sps:$4 sm:$0xff]   ;;  %v4486_v40 = vld [vmem:[#allocation4 + $0x1b0] ss:$36 sps:$4 sm:$0xff]   ;;  %v4488_v41 = vld [vmem:[#allocation4 + $0x1b8] ss:$36 sps:$4 sm:$0xff]  }
  0x21   :  { %1204 = vmatpush1.bf16.msra.mxu0 %v4435_v20  ;;  %1246 = vmatprep.subr.bf16.mxu1 %v3721_v23  ;;  %v4494_v42 = vld [vmem:[#allocation4 + $0x1fc] ss:$36 sps:$4 sm:$0xff]   ;;  %v4496_v43 = vld [vmem:[#allocation4 + $0x204] ss:$36 sps:$4 sm:$0xff]   ;;  %v4508_v47 = vld [vmem:[#allocation4 + $0x24c] ss:$36 sps:$4 sm:$0xff]  }
  0x22   :  { %1205 = vmatprep.subr.bf16.mxu0 %v4439_v22  ;;  %v4498_v44 = vld [vmem:[#allocation4 + $0x1f8] ss:$36 sps:$4 sm:$0xff]   ;;  %v4500_v45 = vld [vmem:[#allocation4 + $0x200] ss:$36 sps:$4 sm:$0xff]   ;;  %v4512_v49 = vld [vmem:[#allocation4 + $0x248] ss:$36 sps:$4 sm:$0xff]  }
  0x23   :  { %v4506_v46 = vld [vmem:[#allocation4 + $0x244] ss:$36 sps:$4 sm:$0xff]   ;;  %v4518_v50 = vld [vmem:[#allocation4 + $0x28c] ss:$36 sps:$4 sm:$0xff]   ;;  %v4520_v51 = vld [vmem:[#allocation4 + $0x294] ss:$36 sps:$4 sm:$0xff]  }
  0x24   :  { %3275 = vmatmul.mubr.msk.bf16.gmra.mrb[4].mxu0 %vm88_vm1, %v58_v13  ;;  %1247 = vmatpush1.bf16.msra.mxu1 %v3724_v25  ;;  %v4510_v48 = vld [vmem:[#allocation4 + $0x240] ss:$36 sps:$4 sm:$0xff]   ;;  %v4522_v52 = vld [vmem:[#allocation4 + $0x288] ss:$36 sps:$4 sm:$0xff]   ;;  %v4524_v53 = vld [vmem:[#allocation4 + $0x290] ss:$36 sps:$4 sm:$0xff]  }
  0x25   :  { %1206 = vmatpush1.bf16.msra.mxu0 %v4443_v24  ;;  %1248 = vmatprep.subr.bf16.mxu1 %v3727_v27  ;;  %v4530_v54 = vld [vmem:[#allocation4 + $0x2d4] ss:$36 sps:$4 sm:$0xff]   ;;  %v4532_v55 = vld [vmem:[#allocation4 + $0x2dc] ss:$36 sps:$4 sm:$0xff]   ;;  %v4544_v59 = vld [vmem:[#allocation4 + $0x324] ss:$36 sps:$4 sm:$0xff]  }
  0x26   :  { %1207 = vmatprep.subr.bf16.mxu0 %v4445_v26  ;;  %163 = vmatprep.mubr.bf16.mxu0 %v4337_v1  ;;  %7340 = vst [vmem:[#allocation7_spill] sm:$0xff] %v4532_v55  ;;  %v4534_v56 = vld [vmem:[#allocation4 + $0x2d0] ss:$36 sps:$4 sm:$0xff]   ;;  %v4536_v57 = vld [vmem:[#allocation4 + $0x2d8] ss:$36 sps:$4 sm:$0xff]   ;;  %7342 = vst [vmem:[#allocation9_spill] sm:$0xff] %v4544_v59 }
  0x27   :  { %7341 = vst [vmem:[#allocation8_spill] sm:$0xff] %v4536_v57  ;;  %v4542_v58 = vld [vmem:[#allocation4 + $0x31c] ss:$36 sps:$4 sm:$0xff]   ;;  %v54_v63 = vld [vmem:[%s6815_s0 + $0x28] sm:$0xff]  ;;  %v4576_v7 = vld [vmem:[#allocation4 + $0x3b4] ss:$36 sps:$4 sm:$0xff]  }
  0x28   :  { %1249 = vmatpush1.bf16.msra.mxu1 %v4452_v29  ;;  %v4546_v60 = vld [vmem:[#allocation4 + $0x318] ss:$36 sps:$4 sm:$0xff]   ;;  %v4548_v61 = vld [vmem:[#allocation4 + $0x320] ss:$36 sps:$4 sm:$0xff]   ;;  %v4562_v3 = vld [vmem:[#allocation4 + $0x36c] ss:$36 sps:$4 sm:$0xff]  }
  0x29   :  { %1208 = vmatpush1.bf16.msra.mxu0 %v4448_v28  ;;  %1250 = vmatprep.subr.bf16.mxu1 %v4457_v31  ;;  %7343 = vst [vmem:[#allocation10_spill] sm:$0xff] %v4548_v61  ;;  %v53_v62 = vld [vmem:[%s6815_s0 + $0x20] sm:$0xff]  ;;  %7344 = vst [vmem:[#allocation11_spill] sm:$0xff] %v4562_v3  ;;  %v4567_v5 = vld [vmem:[#allocation4 + $0x368] ss:$36 sps:$4 sm:$0xff]  }
  0x2a   :  { %1209 = vmatprep.subr.bf16.mxu0 %v4455_v30  ;;  %v59_v0 = vpack.c.bf16 %v54_v63, %v53_v62  ;;  %v4560_v2 = vld [vmem:[#allocation4 + $0x364] ss:$36 sps:$4 sm:$0xff]   ;;  %7345 = vst [vmem:[#allocation12_spill] sm:$0xff] %v4567_v5  ;;  %v4574_v6 = vld [vmem:[#allocation4 + $0x3ac] ss:$36 sps:$4 sm:$0xff]   ;;  %7346 = vst [vmem:[#allocation13_spill] sm:$0xff] %v4576_v7 }
  0x2b   :  { %v4565_v4 = vld [vmem:[#allocation4 + $0x360] ss:$36 sps:$4 sm:$0xff]   ;;  %v4579_v8 = vld [vmem:[#allocation4 + $0x3a8] ss:$36 sps:$4 sm:$0xff]   ;;  %v4581_v9 = vld [vmem:[#allocation4 + $0x3b0] ss:$36 sps:$4 sm:$0xff]  }
  0x2c   :  { %1251 = vmatpush1.bf16.msra.mxu1 %v4461_v33  ;;  %3276 = vmatmul.mubr.msk.bf16.gmra.mrb[8].mxu0 %vm88_vm1, %v59_v0  ;;  %7347 = vst [vmem:[#allocation14_spill] sm:$0xff] %v4581_v9  ;;  %v55_v10 = vld [vmem:[%s6815_s0 + $0x30] sm:$0xff]  ;;  %v56_v11 = vld [vmem:[%s6815_s0 + $0x38] sm:$0xff]  ;;  %v4609_v21 = vld [vmem:[#allocation4 + $0x444] ss:$36 sps:$4 sm:$0xff]   ;;  %v6827_v63 = vmov 0.0|0.0  }
  0x2d   :  { %1210 = vmatpush1.bf16.msra.mxu0 %v4459_v32  ;;  %1252 = vmatprep.subr.bf16.mxu1 %v4466_v35  ;;  %v4593_v12 = vld [vmem:[#allocation4 + $0x3f4] ss:$36 sps:$4 sm:$0xff]   ;;  %v4595_v13 = vld [vmem:[#allocation4 + $0x3fc] ss:$36 sps:$4 sm:$0xff]   ;;  %7350 = vst [vmem:[#allocation17_spill] sm:$0xff] %v4609_v21 }
  0x2e   :  { %1211 = vmatprep.subr.bf16.mxu0 %v4464_v34  ;;  %3633 = vmatprep.mubr.msk.bf16.mxu1 %vm88_vm1, %v59_v0  ;;  %7348 = vst [vmem:[#allocation15_spill] sm:$0xff] %v4595_v13  ;;  %v4599_v15 = vld [vmem:[#allocation4 + $0x3f0] ss:$36 sps:$4 sm:$0xff]   ;;  %v4601_v17 = vld [vmem:[#allocation4 + $0x3f8] ss:$36 sps:$4 sm:$0xff]   ;;  %v65_v0 = vlaneseq }
  0x2f   :  { %173 = vmatprep.mubr.bf16.mxu0 %v4337_v1  ;;  %v60_v1 = vpack.c.bf16 %v56_v11, %v55_v10  ;;  %7349 = vst [vmem:[#allocation16_spill] sm:$0xff] %v4601_v17  ;;  %v4607_v19 = vld [vmem:[#allocation4 + $0x43c] ss:$36 sps:$4 sm:$0xff]   ;;  %v4617_v27 = vld [vmem:[#allocation4 + $0x14] ss:$36 sps:$4 sm:$0xff]  }
  0x30   :  { %1253 = vmatpush1.bf16.msra.mxu1 %v4474_v37  ;;  %v4611_v23 = vld [vmem:[#allocation4 + $0x438] ss:$36 sps:$4 sm:$0xff]   ;;  %v4613_v25 = vld [vmem:[#allocation4 + $0x440] ss:$36 sps:$4 sm:$0xff]   ;;  %v4627_v10 = vshrl.u32 %v65_v0, 7 }
  0x31   :  { %1212 = vmatpush1.bf16.msra.mxu0 %v4472_v36  ;;  %1254 = vmatprep.subr.bf16.mxu1 %v4484_v39  ;;  %7351 = vst [vmem:[#allocation18_spill] sm:$0xff] %v4613_v25  ;;  %v4619_v62 = vld [vmem:[#allocation4 + $0x1c] ss:$36 sps:$4 sm:$0xff]  }
  0x32   :  { %1213 = vmatprep.subr.bf16.mxu0 %v4482_v38  ;;  %3634 = vmatmul.mubr.msk.bf16.gmra.mrb[4].mxu1 %vm88_vm1, %v60_v1  ;;  %7352 = vst [vmem:[#allocation19_spill] sm:$0xff] %v4619_v62  ;;  %7353 = vst [vmem:[#allocation20_spill] sm:$0xff] %v4627_v10  ;;  %v6837_v11 = vsub.s32 0, %v4627_v10 }
  0x33   :  { %1274 = vmatprep.mubr.bf16.mxu1 %v6827_v63 }
  0x34   :  { %1255 = vmatpush1.bf16.msra.mxu1 %v4488_v41  ;;  %3277 = vmatmul.mubr.msk.bf16.gmra.mrb[12].mxu0 %vm88_vm1, %v60_v1  ;;  %v63_v1 = vld [vmem:[%s6818_s3] sm:$0x7] }
  0x35   :  { %1214 = vmatpush1.bf16.msra.mxu0 %v4486_v40  ;;  %1256 = vmatprep.subr.bf16.mxu1 %v4496_v43 }
  0x36   :  { %1215 = vmatprep.subr.bf16.mxu0 %v4494_v42  ;;  %1233 = vmatprep.mubr.bf16.mxu0 %v6827_v63 }
  0x38   :  { %1257 = vmatpush1.bf16.msra.mxu1 %v4500_v45 }
  0x39   :  { %1216 = vmatpush1.bf16.msra.mxu0 %v4498_v44  ;;  %1258 = vmatprep.subr.bf16.mxu1 %v4508_v47 }
  0x3a   :  { %1217 = vmatprep.subr.bf16.mxu0 %v4506_v46 }
  0x3c   :  { %1259 = vmatpush1.bf16.msra.mxu1 %v4512_v49 }
  0x3d   :  { %1218 = vmatpush1.bf16.msra.mxu0 %v4510_v48  ;;  %1260 = vmatprep.subr.bf16.mxu1 %v4520_v51 }
  0x3e   :  { %1219 = vmatprep.subr.bf16.mxu0 %v4518_v50 }
  0x40   :  { %1261 = vmatpush1.bf16.msra.mxu1 %v4524_v53 }
  0x41   :  { %1220 = vmatpush1.bf16.msra.mxu0 %v4522_v52  ;;  %1262 = vmatprep.subr.bf16.mxu1 %v4532_v55  ;;  %v4678_v55 = vld [vmem:[#allocation4 + $0x18] ss:$36 sps:$4 sm:$0xff]  }
  0x42   :  { %1221 = vmatprep.subr.bf16.mxu0 %v4530_v54 }
  0x44   :  { %1263 = vmatpush1.bf16.msra.mxu1 %v4536_v57 }
  0x45   :  { %1222 = vmatpush1.bf16.msra.mxu0 %v4534_v56  ;;  %1264 = vmatprep.subr.bf16.mxu1 %v4544_v59 }
  0x46   :  { %1223 = vmatprep.subr.bf16.mxu0 %v4542_v58 }
  0x48   :  { %1265 = vmatpush1.bf16.msra.mxu1 %v4548_v61 }
  0x49   :  { %1224 = vmatpush1.bf16.msra.mxu0 %v4546_v60  ;;  %1266 = vmatprep.subr.bf16.mxu1 %v4562_v3 }
  0x4a   :  { %1225 = vmatprep.subr.bf16.mxu0 %v4560_v2 }
  0x4c   :  { %1267 = vmatpush1.bf16.msra.mxu1 %v4567_v5 }
  0x4d   :  { %1226 = vmatpush1.bf16.msra.mxu0 %v4565_v4  ;;  %1268 = vmatprep.subr.bf16.mxu1 %v4576_v7 }
  0x4e   :  { %1227 = vmatprep.subr.bf16.mxu0 %v4574_v6 }
  0x50   :  { %1269 = vmatpush1.bf16.msra.mxu1 %v4581_v9 }
  0x51   :  { %1228 = vmatpush1.bf16.msra.mxu0 %v4579_v8  ;;  %1270 = vmatprep.subr.bf16.mxu1 %v4595_v13 }
  0x52   :  { %1229 = vmatprep.subr.bf16.mxu0 %v4593_v12 }
  0x54   :  { %1271 = vmatpush1.bf16.msra.mxu1 %v4601_v17 }
  0x55   :  { %1230 = vmatpush1.bf16.msra.mxu0 %v4599_v15  ;;  %1272 = vmatprep.subr.bf16.mxu1 %v4609_v21  ;;  %v4636_v21 = vrot.slane %v63_v1, %v6837_v11 }
  0x56   :  { %1231 = vmatprep.subr.bf16.mxu0 %v4607_v19 }
  0x57   :  { %7354 = vst [vmem:[#allocation21_spill] sm:$0xff] %v4636_v21 }
  0x58   :  { %1273 = vmatpush1.bf16.msra.mxu1 %v4613_v25  ;;  %v6839_v25 = vsub.s32 1, %v4627_v10 }
  0x59   :  { %1232 = vmatpush1.bf16.msra.mxu0 %v4611_v23  ;;  %1324 = vmatprep.subr.bf16.mxu1 %v4619_v62 }
  0x5a   :  { %1283 = vmatprep.subr.bf16.mxu0 %v4617_v27  ;;  %v4640_v17 = vrot.slane %v63_v1, %v6839_v25 }
  0x5c   :  { %7355 = vst [vmem:[#allocation22_spill] sm:$0xff] %v4640_v17 }
  0xee   :  { %v4642_v62 = vpop.f32.mrb[0].mxu1 }
  0xef   :  { %v145_v63 = vpop.f32.mrb[0].mxu0  ;;  %7356 = vst [vmem:[#allocation23_spill] sm:$0xff] %v4642_v62  ;;  %v218_v9 = vpop.f32.mrb[1].mxu1  ;;  %v6845_v62 = vsub.s32 2, %v4627_v10 }
  0xf0   :  { %v146_v0 = vadd.f32 %v145_v63, %v4636_v21  ;;  %v147_v13 = vpop.f32.mrb[1].mxu0  ;;  %v4647_v5 = vpop.f32.mrb[2].mxu1 }
  0xf1   :  { %v4645_v7 = vpop.f32.mrb[2].mxu0  ;;  %7358 = vst [vmem:[#allocation25_spill] sm:$0xff] %v4647_v5  ;;  %v4651_v11 = vpop.f32.mrb[3].mxu1  ;;  %v148_v59 = vadd.f32 %v147_v13, %v4640_v17  ;;  %v4676_v17 = vld [vmem:[#allocation4 + $0x10] ss:$36 sps:$4 sm:$0xff]  }
  0xf2   :  { %7357 = vst [vmem:[#allocation24_spill] sm:$0xff] %v4645_v7  ;;  %v440_v3 = vmul.f32 0.5, %v146_v0  ;;  %v4649_v61 = vpop.f32.mrb[3].mxu0  ;;  %7360 = vst [vmem:[#allocation27_spill] sm:$0xff] %v4651_v11  ;;  %v4665_v0 = vrot.slane %v63_v1, %v6845_v62 }
  0xf3   :  { %7359 = vst [vmem:[#allocation26_spill] sm:$0xff] %v4649_v61  ;;  %v445_v25 = vmul.f32 0.5, %v148_v59  ;;  %v4670_v59 = vld [vmem:[%s6819_s4] ss:$0 sm:$0xff] }
  0xf4   :  { %3915 = vtanh.f32 %v440_v3  ;;  %7365 = vst [vmem:[#allocation32_spill] sm:$0xff] %v4665_v0  ;;  %v219_v13 = vadd.f32 %v218_v9, %v4665_v0 }
  0xf5   :  { %3917 = vtanh.f32 %v445_v25 }
  0xf7   :  { %v4654_v57 = vpop.f32.mrb[4].mxu0 }
  0xf8   :  { %7361 = vst [vmem:[#allocation28_spill] sm:$0xff] %v4654_v57  ;;  %v4657_v63 = vpop.f32.mrb[5].mxu0 }
  0xf9   :  { %7362 = vst [vmem:[#allocation29_spill] sm:$0xff] %v4657_v63  ;;  %v4659_v21 = vpop.f32.mrb[6].mxu0 }
  0xfa   :  { %7363 = vst [vmem:[#allocation30_spill] sm:$0xff] %v4659_v21  ;;  %v4661_v7 = vpop.f32.mrb[7].mxu0 }
  0xfb   :  { %7364 = vst [vmem:[#allocation31_spill] sm:$0xff] %v4661_v7 }
  0xfe   :  { %v3916_v5 = vpop.eup %3915 }
  0xff   :  { %v442_v11 = vmul.f32 0.5, %v3916_v5  ;;  %v3918_v21 = vpop.eup %3917 }
 0x100   :  { %v447_v7 = vmul.f32 0.5, %v3918_v21  ;;  %v4700_v21 = vld [vmem:[#allocation4 + $0xac] ss:$36 sps:$4 sm:$0xff]  }
 0x101   :  { %v443_v3 = vadd.f32 0.5, %v442_v11  ;;  %v4684_v11 = vld [vmem:[#allocation4 + $0x5c] ss:$36 sps:$4 sm:$0xff]   ;;  %7369 = vst [vmem:[#allocation36_spill] sm:$0xff] %v4700_v21 }
 0x102   :  { %v448_v57 = vadd.f32 0.5, %v447_v7  ;;  %v4698_v7 = vld [vmem:[#allocation4 + $0xa4] ss:$36 sps:$4 sm:$0xff]  }
 0x103   :  { %v456_v63 = vmul.f32 %v4670_v59, %v443_v3  ;;  %7368 = vst [vmem:[#allocation35_spill] sm:$0xff] %v4698_v7  ;;  %v4708_v3 = vld [vmem:[#allocation4 + $0xa8] ss:$36 sps:$4 sm:$0xff]  }
 0x104   :  { %v459_v10 = vsub.f32 1.0, %v448_v57  ;;  %v461_v62 = vmul.f32 0.0, %v448_v57  ;;  %v4692_v57 = vld [vmem:[#allocation4 + $0x58] ss:$36 sps:$4 sm:$0xff]   ;;  %7372 = vst [vmem:[#allocation38_spill] sm:$0xff] %v4708_v3 }
 0x105   :  { %v457_v25 = vadd.f32 %v456_v63, %v219_v13  ;;  %v4686_v63 = vld [vmem:[#allocation4 + $0x64] ss:$36 sps:$4 sm:$0xff]   ;;  %7366 = vst [vmem:[#allocation33_spill] sm:$0xff] %v4692_v57  ;;  %v4712_v13 = vld [vmem:[#allocation4 + $0xec] ss:$36 sps:$4 sm:$0xff]  }
 0x106   :  { %7373 = vst [vmem:[#allocation39_spill] sm:$0xff] %v4712_v13 }
 0x107   :  { %3919 = vtanh.f32 %v457_v25  ;;  %v4714_v25 = vld [vmem:[#allocation4 + $0xf4] ss:$36 sps:$4 sm:$0xff]  }
 0x108   :  { %7374 = vst [vmem:[#allocation40_spill] sm:$0xff] %v4714_v25 }
 0x111   :  { %v3920_v1 = vpop.eup %3919 }
 0x112   :  { %v460_v61 = vmul.f32 %v3920_v1, %v459_v10  ;;  %v4706_v10 = vld [vmem:[#allocation4 + $0xa0] ss:$36 sps:$4 sm:$0xff]   ;;  %v4718_v1 = vld [vmem:[#allocation4 + $0xe8] ss:$36 sps:$4 sm:$0xff]  }
 0x113   :  { %7371 = vst [vmem:[#allocation37_spill] sm:$0xff] %v4706_v10  ;;  %7375 = vst [vmem:[#allocation41_spill] sm:$0xff] %v4718_v1 }
 0x114   :  { %v4674_v5 = vadd.f32 %v461_v62, %v460_v61  ;;  %v4694_v61 = vld [vmem:[#allocation4 + $0x60] ss:$36 sps:$4 sm:$0xff]   ;;  %v7370_v62 = vmov 0.0|0.0  }
 0x115   :  { %7367 = vst [vmem:[#allocation34_spill] sm:$0xff] %v4694_v61 }
 0x116   :  { %v4682_v9 = vpack.c.bf16 %v4674_v5, %v4674_v5 }
 0x118   :  { %1234 = vmatmul.mubr.bf16.vlgmr.msra.gmra.mrb[16].mxu0 %v4682_v9  ;;  %1275 = vmatmul.mubr.bf16.vlgmr.msra.gmra.mrb[8].mxu1 %v4682_v9 }
 0x119   :  { %1284 = vmatpush1.bf16.msra.mxu0 %v4676_v17  ;;  %1325 = vmatpush1.bf16.msra.mxu1 %v4678_v55 }
 0x11a   :  { %1285 = vmatprep.subr.bf16.mxu0 %v4684_v11  ;;  %1326 = vmatprep.subr.bf16.mxu1 %v4686_v63 }
 0x11b   :  { %1315 = vmatprep.mubr.bf16.mxu0 %v7370_v62  ;;  %1356 = vmatprep.mubr.bf16.mxu1 %v7370_v62 }
 0x11d   :  { %1286 = vmatpush1.bf16.msra.mxu0 %v4692_v57  ;;  %1327 = vmatpush1.bf16.msra.mxu1 %v4694_v61  ;;  %v4720_v57 = vld [vmem:[#allocation4 + $0xf0] ss:$36 sps:$4 sm:$0xff]  }
 0x11e   :  { %1287 = vmatprep.subr.bf16.mxu0 %v4698_v7  ;;  %1328 = vmatprep.subr.bf16.mxu1 %v4700_v21  ;;  %7376 = vst [vmem:[#allocation42_spill] sm:$0xff] %v4720_v57  ;;  %v4724_v61 = vld [vmem:[#allocation4 + $0x134] ss:$36 sps:$4 sm:$0xff]   ;;  %v4726_v7 = vld [vmem:[#allocation4 + $0x13c] ss:$36 sps:$4 sm:$0xff]  }
 0x11f   :  { %7377 = vst [vmem:[#allocation43_spill] sm:$0xff] %v4724_v61  ;;  %7378 = vst [vmem:[#allocation44_spill] sm:$0xff] %v4726_v7  ;;  %v4730_v21 = vld [vmem:[#allocation4 + $0x130] ss:$36 sps:$4 sm:$0xff]  }
 0x120   :  { %7379 = vst [vmem:[#allocation45_spill] sm:$0xff] %v4730_v21 }
 0x121   :  { %1288 = vmatpush1.bf16.msra.mxu0 %v4706_v10  ;;  %1329 = vmatpush1.bf16.msra.mxu1 %v4708_v3  ;;  %v4732_v10 = vld [vmem:[#allocation4 + $0x138] ss:$36 sps:$4 sm:$0xff]  }
 0x122   :  { %1289 = vmatprep.subr.bf16.mxu0 %v4712_v13  ;;  %1330 = vmatprep.subr.bf16.mxu1 %v4714_v25  ;;  %7380 = vst [vmem:[#allocation46_spill] sm:$0xff] %v4732_v10  ;;  %v4736_v3 = vld [vmem:[#allocation4 + $0x17c] ss:$36 sps:$4 sm:$0xff]   ;;  %v4738_v13 = vld [vmem:[#allocation4 + $0x184] ss:$36 sps:$4 sm:$0xff]  }
 0x123   :  { %7381 = vst [vmem:[#allocation47_spill] sm:$0xff] %v4736_v3  ;;  %7382 = vst [vmem:[#allocation48_spill] sm:$0xff] %v4738_v13  ;;  %v4742_v25 = vld [vmem:[#allocation4 + $0x178] ss:$36 sps:$4 sm:$0xff]  }
 0x124   :  { %7383 = vst [vmem:[#allocation49_spill] sm:$0xff] %v4742_v25 }
 0x125   :  { %1290 = vmatpush1.bf16.msra.mxu0 %v4718_v1  ;;  %1331 = vmatpush1.bf16.msra.mxu1 %v4720_v57  ;;  %v4744_v1 = vld [vmem:[#allocation4 + $0x180] ss:$36 sps:$4 sm:$0xff]  }
 0x126   :  { %1291 = vmatprep.subr.bf16.mxu0 %v4724_v61  ;;  %1332 = vmatprep.subr.bf16.mxu1 %v4726_v7  ;;  %7384 = vst [vmem:[#allocation50_spill] sm:$0xff] %v4744_v1  ;;  %v4748_v57 = vld [vmem:[#allocation4 + $0x1c4] ss:$36 sps:$4 sm:$0xff]   ;;  %v4750_v61 = vld [vmem:[#allocation4 + $0x1cc] ss:$36 sps:$4 sm:$0xff]  }
 0x127   :  { %7385 = vst [vmem:[#allocation51_spill] sm:$0xff] %v4748_v57  ;;  %7386 = vst [vmem:[#allocation52_spill] sm:$0xff] %v4750_v61  ;;  %v4754_v7 = vld [vmem:[#allocation4 + $0x1c0] ss:$36 sps:$4 sm:$0xff]  }
 0x128   :  { %7387 = vst [vmem:[#allocation53_spill] sm:$0xff] %v4754_v7 }
 0x129   :  { %1292 = vmatpush1.bf16.msra.mxu0 %v4730_v21  ;;  %1333 = vmatpush1.bf16.msra.mxu1 %v4732_v10  ;;  %v4756_v21 = vld [vmem:[#allocation4 + $0x1c8] ss:$36 sps:$4 sm:$0xff]  }
 0x12a   :  { %1293 = vmatprep.subr.bf16.mxu0 %v4736_v3  ;;  %1334 = vmatprep.subr.bf16.mxu1 %v4738_v13  ;;  %7388 = vst [vmem:[#allocation54_spill] sm:$0xff] %v4756_v21  ;;  %v4760_v10 = vld [vmem:[#allocation4 + $0x20c] ss:$36 sps:$4 sm:$0xff]   ;;  %v4762_v3 = vld [vmem:[#allocation4 + $0x214] ss:$36 sps:$4 sm:$0xff]  }
 0x12b   :  { %7389 = vst [vmem:[#allocation55_spill] sm:$0xff] %v4760_v10  ;;  %7390 = vst [vmem:[#allocation56_spill] sm:$0xff] %v4762_v3  ;;  %v4766_v13 = vld [vmem:[#allocation4 + $0x208] ss:$36 sps:$4 sm:$0xff]  }
 0x12c   :  { %7391 = vst [vmem:[#allocation57_spill] sm:$0xff] %v4766_v13 }
 0x12d   :  { %1294 = vmatpush1.bf16.msra.mxu0 %v4742_v25  ;;  %1335 = vmatpush1.bf16.msra.mxu1 %v4744_v1  ;;  %v4768_v25 = vld [vmem:[#allocation4 + $0x210] ss:$36 sps:$4 sm:$0xff]  }
 0x12e   :  { %1295 = vmatprep.subr.bf16.mxu0 %v4748_v57  ;;  %1336 = vmatprep.subr.bf16.mxu1 %v4750_v61  ;;  %7392 = vst [vmem:[#allocation58_spill] sm:$0xff] %v4768_v25  ;;  %v4772_v1 = vld [vmem:[#allocation4 + $0x254] ss:$36 sps:$4 sm:$0xff]   ;;  %v4774_v57 = vld [vmem:[#allocation4 + $0x25c] ss:$36 sps:$4 sm:$0xff]  }
 0x12f   :  { %7393 = vst [vmem:[#allocation59_spill] sm:$0xff] %v4772_v1  ;;  %7394 = vst [vmem:[#allocation60_spill] sm:$0xff] %v4774_v57  ;;  %v4778_v61 = vld [vmem:[#allocation4 + $0x250] ss:$36 sps:$4 sm:$0xff]  }
 0x130   :  { %7395 = vst [vmem:[#allocation61_spill] sm:$0xff] %v4778_v61 }
 0x131   :  { %1296 = vmatpush1.bf16.msra.mxu0 %v4754_v7  ;;  %1337 = vmatpush1.bf16.msra.mxu1 %v4756_v21  ;;  %v4780_v7 = vld [vmem:[#allocation4 + $0x258] ss:$36 sps:$4 sm:$0xff]  }
 0x132   :  { %1297 = vmatprep.subr.bf16.mxu0 %v4760_v10  ;;  %1338 = vmatprep.subr.bf16.mxu1 %v4762_v3  ;;  %7396 = vst [vmem:[#allocation62_spill] sm:$0xff] %v4780_v7  ;;  %v4784_v21 = vld [vmem:[#allocation4 + $0x29c] ss:$36 sps:$4 sm:$0xff]   ;;  %v4786_v10 = vld [vmem:[#allocation4 + $0x2a4] ss:$36 sps:$4 sm:$0xff]  }
 0x133   :  { %7397 = vst [vmem:[#allocation63_spill] sm:$0xff] %v4784_v21  ;;  %7398 = vst [vmem:[#allocation64_spill] sm:$0xff] %v4786_v10  ;;  %v4790_v3 = vld [vmem:[#allocation4 + $0x298] ss:$36 sps:$4 sm:$0xff]  }
 0x134   :  { %7399 = vst [vmem:[#allocation65_spill] sm:$0xff] %v4790_v3 }
 0x135   :  { %1298 = vmatpush1.bf16.msra.mxu0 %v4766_v13  ;;  %1339 = vmatpush1.bf16.msra.mxu1 %v4768_v25  ;;  %v4792_v13 = vld [vmem:[#allocation4 + $0x2a0] ss:$36 sps:$4 sm:$0xff]  }
 0x136   :  { %1299 = vmatprep.subr.bf16.mxu0 %v4772_v1  ;;  %1340 = vmatprep.subr.bf16.mxu1 %v4774_v57  ;;  %7400 = vst [vmem:[#allocation66_spill] sm:$0xff] %v4792_v13  ;;  %v4796_v25 = vld [vmem:[#allocation4 + $0x2e4] ss:$36 sps:$4 sm:$0xff]   ;;  %v4798_v1 = vld [vmem:[#allocation4 + $0x2ec] ss:$36 sps:$4 sm:$0xff]  }
 0x137   :  { %7401 = vst [vmem:[#allocation67_spill] sm:$0xff] %v4796_v25  ;;  %7402 = vst [vmem:[#allocation68_spill] sm:$0xff] %v4798_v1  ;;  %v4802_v57 = vld [vmem:[#allocation4 + $0x2e0] ss:$36 sps:$4 sm:$0xff]  }
 0x138   :  { %7403 = vst [vmem:[#allocation69_spill] sm:$0xff] %v4802_v57 }
 0x139   :  { %1300 = vmatpush1.bf16.msra.mxu0 %v4778_v61  ;;  %1341 = vmatpush1.bf16.msra.mxu1 %v4780_v7  ;;  %v4804_v61 = vld [vmem:[#allocation4 + $0x2e8] ss:$36 sps:$4 sm:$0xff]  }
 0x13a   :  { %1301 = vmatprep.subr.bf16.mxu0 %v4784_v21  ;;  %1342 = vmatprep.subr.bf16.mxu1 %v4786_v10  ;;  %7404 = vst [vmem:[#allocation70_spill] sm:$0xff] %v4804_v61  ;;  %v4808_v7 = vld [vmem:[#allocation4 + $0x32c] ss:$36 sps:$4 sm:$0xff]   ;;  %v4810_v21 = vld [vmem:[#allocation4 + $0x334] ss:$36 sps:$4 sm:$0xff]  }
 0x13b   :  { %7405 = vst [vmem:[#allocation71_spill] sm:$0xff] %v4808_v7  ;;  %7406 = vst [vmem:[#allocation72_spill] sm:$0xff] %v4810_v21  ;;  %v4814_v10 = vld [vmem:[#allocation4 + $0x328] ss:$36 sps:$4 sm:$0xff]  }
 0x13c   :  { %7407 = vst [vmem:[#allocation73_spill] sm:$0xff] %v4814_v10 }
 0x13d   :  { %1302 = vmatpush1.bf16.msra.mxu0 %v4790_v3  ;;  %1343 = vmatpush1.bf16.msra.mxu1 %v4792_v13  ;;  %v4816_v3 = vld [vmem:[#allocation4 + $0x330] ss:$36 sps:$4 sm:$0xff]  }
 0x13e   :  { %1303 = vmatprep.subr.bf16.mxu0 %v4796_v25  ;;  %1344 = vmatprep.subr.bf16.mxu1 %v4798_v1  ;;  %7408 = vst [vmem:[#allocation74_spill] sm:$0xff] %v4816_v3  ;;  %v4820_v13 = vld [vmem:[#allocation4 + $0x374] ss:$36 sps:$4 sm:$0xff]   ;;  %v4822_v25 = vld [vmem:[#allocation4 + $0x37c] ss:$36 sps:$4 sm:$0xff]  }
 0x13f   :  { %7409 = vst [vmem:[#allocation75_spill] sm:$0xff] %v4820_v13  ;;  %7410 = vst [vmem:[#allocation76_spill] sm:$0xff] %v4822_v25  ;;  %v4826_v1 = vld [vmem:[#allocation4 + $0x370] ss:$36 sps:$4 sm:$0xff]  }
 0x140   :  { %7411 = vst [vmem:[#allocation77_spill] sm:$0xff] %v4826_v1 }
 0x141   :  { %1304 = vmatpush1.bf16.msra.mxu0 %v4802_v57  ;;  %1345 = vmatpush1.bf16.msra.mxu1 %v4804_v61  ;;  %v4828_v57 = vld [vmem:[#allocation4 + $0x378] ss:$36 sps:$4 sm:$0xff]  }
 0x142   :  { %1305 = vmatprep.subr.bf16.mxu0 %v4808_v7  ;;  %1346 = vmatprep.subr.bf16.mxu1 %v4810_v21  ;;  %7412 = vst [vmem:[#allocation78_spill] sm:$0xff] %v4828_v57  ;;  %v4832_v61 = vld [vmem:[#allocation4 + $0x3bc] ss:$36 sps:$4 sm:$0xff]   ;;  %v4834_v7 = vld [vmem:[#allocation4 + $0x3c4] ss:$36 sps:$4 sm:$0xff]  }
 0x143   :  { %7413 = vst [vmem:[#allocation79_spill] sm:$0xff] %v4832_v61  ;;  %7414 = vst [vmem:[#allocation80_spill] sm:$0xff] %v4834_v7  ;;  %v4838_v21 = vld [vmem:[#allocation4 + $0x3b8] ss:$36 sps:$4 sm:$0xff]  }
 0x144   :  { %7415 = vst [vmem:[#allocation81_spill] sm:$0xff] %v4838_v21 }
 0x145   :  { %1306 = vmatpush1.bf16.msra.mxu0 %v4814_v10  ;;  %1347 = vmatpush1.bf16.msra.mxu1 %v4816_v3  ;;  %v4840_v10 = vld [vmem:[#allocation4 + $0x3c0] ss:$36 sps:$4 sm:$0xff]  }
 0x146   :  { %1307 = vmatprep.subr.bf16.mxu0 %v4820_v13  ;;  %1348 = vmatprep.subr.bf16.mxu1 %v4822_v25  ;;  %7416 = vst [vmem:[#allocation82_spill] sm:$0xff] %v4840_v10  ;;  %v4844_v3 = vld [vmem:[#allocation4 + $0x404] ss:$36 sps:$4 sm:$0xff]   ;;  %v4846_v13 = vld [vmem:[#allocation4 + $0x40c] ss:$36 sps:$4 sm:$0xff]  }
 0x147   :  { %7417 = vst [vmem:[#allocation83_spill] sm:$0xff] %v4846_v13  ;;  %v4850_v25 = vld [vmem:[#allocation4 + $0x400] ss:$36 sps:$4 sm:$0xff]  }
 0x148   :  { %7418 = vst [vmem:[#allocation84_spill] sm:$0xff] %v4850_v25 }
 0x149   :  { %1308 = vmatpush1.bf16.msra.mxu0 %v4826_v1  ;;  %1349 = vmatpush1.bf16.msra.mxu1 %v4828_v57  ;;  %v4852_v1 = vld [vmem:[#allocation4 + $0x408] ss:$36 sps:$4 sm:$0xff]  }
 0x14a   :  { %1309 = vmatprep.subr.bf16.mxu0 %v4832_v61  ;;  %1350 = vmatprep.subr.bf16.mxu1 %v4834_v7  ;;  %v4856_v57 = vld [vmem:[#allocation4 + $0x44c] ss:$36 sps:$4 sm:$0xff]   ;;  %v4858_v61 = vld [vmem:[#allocation4 + $0x454] ss:$36 sps:$4 sm:$0xff]  }
 0x14b   :  { %7419 = vst [vmem:[#allocation85_spill] sm:$0xff] %v4856_v57  ;;  %7420 = vst [vmem:[#allocation86_spill] sm:$0xff] %v4858_v61  ;;  %v4862_v7 = vld [vmem:[#allocation4 + $0x448] ss:$36 sps:$4 sm:$0xff]  }
 0x14c   :  { %7421 = vst [vmem:[#allocation87_spill] sm:$0xff] %v4862_v7 }
 0x14d   :  { %1310 = vmatpush1.bf16.msra.mxu0 %v4838_v21  ;;  %1351 = vmatpush1.bf16.msra.mxu1 %v4840_v10  ;;  %v4864_v21 = vld [vmem:[#allocation4 + $0x450] ss:$36 sps:$4 sm:$0xff]   ;;  %v4868_v10 = vld [vmem:[#allocation4 + $0x260] ss:$36 sps:$4 sm:$0xff]  }
 0x14e   :  { %1311 = vmatprep.subr.bf16.mxu0 %v4844_v3  ;;  %1352 = vmatprep.subr.bf16.mxu1 %v4846_v13  ;;  %7422 = vst [vmem:[#allocation88_spill] sm:$0xff] %v4864_v21  ;;  %7423 = vst [vmem:[#allocation89_spill] sm:$0xff] %v4868_v10  ;;  %v4872_v13 = vld [vmem:[#allocation4 + $0x20] ss:$36 sps:$4 sm:$0xff]  }
 0x14f   :  { %7424 = vst [vmem:[#allocation90_spill] sm:$0xff] %v4872_v13 }
 0x151   :  { %1312 = vmatpush1.bf16.msra.mxu0 %v4850_v25  ;;  %1353 = vmatpush1.bf16.msra.mxu1 %v4852_v1  ;;  %v4875_v25 = vld [vmem:[#allocation4 + $0x2a8] ss:$36 sps:$4 sm:$0xff]  }
 0x152   :  { %1313 = vmatprep.subr.bf16.mxu0 %v4856_v57  ;;  %1354 = vmatprep.subr.bf16.mxu1 %v4858_v61  ;;  %v4881_v61 = vld [vmem:[#allocation4 + $0x68] ss:$36 sps:$4 sm:$0xff]  }
 0x155   :  { %1314 = vmatpush1.bf16.msra.mxu0 %v4862_v7  ;;  %1355 = vmatpush1.bf16.msra.mxu1 %v4864_v21  ;;  %v4884_v7 = vpop.f32.mrb[8].mxu0  ;;  %v4887_v21 = vld [vmem:[#allocation4 + $0x2f0] ss:$36 sps:$4 sm:$0xff]  }
 0x156   :  { %3434 = vmatprep.subr.bf16.mxu0 %v4868_v10  ;;  %1474 = vmatprep.subr.bf16.mxu1 %v4425_v14  ;;  %7425 = vst [vmem:[#allocation91_spill] sm:$0xff] %v4884_v7  ;;  %v4889_v10 = vpop.f32.mrb[9].mxu0 }
 0x157   :  { %7426 = vst [vmem:[#allocation92_spill] sm:$0xff] %v4889_v10  ;;  %v4892_v14 = vpop.f32.mrb[10].mxu0 }
 0x158   :  { %1316 = vmatmul.mubr.bf16.vlgmr.msra.gmra.mrb[20].mxu0 %v4682_v9  ;;  %1357 = vmatmul.mubr.bf16.vlgmr.msra.gmra.mrb[12].mxu1 %v4682_v9  ;;  %7427 = vst [vmem:[#allocation93_spill] sm:$0xff] %v4892_v14  ;;  %v4895_v57 = vpop.f32.mrb[11].mxu0 }
 0x159   :  { %3435 = vmatpush3.bf16.msra.mxu0 %v4872_v13  ;;  %1397 = vmatprep.mubr.bf16.mxu0 %v7370_v62  ;;  %7428 = vst [vmem:[#allocation94_spill] sm:$0xff] %v4895_v57  ;;  %v4898_v13 = vld [vmem:[#allocation4 + $0xb0] ss:$36 sps:$4 sm:$0xff]   ;;  %v4901_v62 = vld [vmem:[#allocation4 + $0x338] ss:$36 sps:$4 sm:$0xff]   ;;  %v4908_v14 = vpop.f32.mrb[12].mxu0 }
 0x15a   :  { %3436 = vmatprep.subr.bf16.mxu0 %v4875_v25  ;;  %1475 = vmatpush1.bf16.msra.mxu1 %v4427_v16  ;;  %7429 = vst [vmem:[#allocation95_spill] sm:$0xff] %v4898_v13  ;;  %v4906_v16 = vld [vmem:[#allocation4 + $0xf8] ss:$36 sps:$4 sm:$0xff]   ;;  %7430 = vst [vmem:[#allocation96_spill] sm:$0xff] %v4908_v14  ;;  %v4913_v57 = vld [vmem:[#allocation4 + $0x380] ss:$36 sps:$4 sm:$0xff]  }
 0x15b   :  { %1476 = vmatprep.subr.bf16.mxu1 %v4431_v18  ;;  %v4910_v18 = vpop.f32.mrb[4].mxu1  ;;  %v4915_v10 = vpop.f32.mrb[13].mxu0 }
 0x15c   :  { %7431 = vst [vmem:[#allocation97_spill] sm:$0xff] %v4910_v18  ;;  %7432 = vst [vmem:[#allocation98_spill] sm:$0xff] %v4915_v10  ;;  %v4917_v7 = vpop.f32.mrb[5].mxu1  ;;  %v4930_v18 = vld [vmem:[#allocation4 + $0x140] ss:$36 sps:$4 sm:$0xff]  }
 0x15d   :  { %3437 = vmatpush3.bf16.msra.mxu0 %v4881_v61  ;;  %7433 = vst [vmem:[#allocation99_spill] sm:$0xff] %v4917_v7  ;;  %v4933_v10 = vld [vmem:[#allocation4 + $0x3c8] ss:$36 sps:$4 sm:$0xff]   ;;  %v7530_v7 = vld [vmem:[#allocation90_spill] sm:$0xff] }
 0x15e   :  { %3438 = vmatprep.subr.bf16.mxu0 %v4887_v21  ;;  %1477 = vmatpush1.bf16.msra.mxu1 %v4435_v20  ;;  %v4920_v20 = vpop.f32.mrb[14].mxu0 }
 0x15f   :  { %1478 = vmatprep.subr.bf16.mxu1 %v4439_v22  ;;  %7434 = vst [vmem:[#allocation100_spill] sm:$0xff] %v4920_v20  ;;  %v4922_v22 = vpop.f32.mrb[6].mxu1  ;;  %v7528_v20 = vld [vmem:[#allocation89_spill] sm:$0xff] }
 0x160   :  { %7435 = vst [vmem:[#allocation101_spill] sm:$0xff] %v4922_v22  ;;  %v4927_v14 = vpop.f32.mrb[7].mxu1  ;;  %v4946_v22 = vld [vmem:[#allocation4 + $0x1d0] ss:$36 sps:$4 sm:$0xff]  }
 0x161   :  { %3439 = vmatpush3.bf16.msra.mxu0 %v4898_v13  ;;  %v4925_v13 = vpop.f32.mrb[15].mxu0  ;;  %7437 = vst [vmem:[#allocation103_spill] sm:$0xff] %v4927_v14  ;;  %7439 = vst [vmem:[#allocation105_spill] sm:$0xff] %v4946_v22  ;;  %v5139_v14 = vld [vmem:[#allocation4 + $0x4] ss:$36 sps:$4 sm:$0xff]  }
 0x162   :  { %3440 = vmatprep.subr.bf16.mxu0 %v4901_v62  ;;  %1479 = vmatpush1.bf16.msra.mxu1 %v4443_v24  ;;  %7436 = vst [vmem:[#allocation102_spill] sm:$0xff] %v4925_v13  ;;  %v4938_v24 = vld [vmem:[#allocation4 + $0x188] ss:$36 sps:$4 sm:$0xff]  }
 0x163   :  { %1480 = vmatprep.subr.bf16.mxu1 %v4445_v26  ;;  %v4941_v26 = vld [vmem:[#allocation4 + $0x410] ss:$36 sps:$4 sm:$0xff]   ;;  %v7527_v13 = vld [vmem:[#allocation88_spill] sm:$0xff] }
 0x164   :  { %7438 = vst [vmem:[#allocation104_spill] sm:$0xff] %v4941_v26 }
 0x165   :  { %3441 = vmatpush3.bf16.msra.mxu0 %v4906_v16 }
 0x166   :  { %3442 = vmatprep.subr.bf16.mxu0 %v4913_v57  ;;  %1481 = vmatpush1.bf16.msra.mxu1 %v4448_v28  ;;  %v4949_v28 = vld [vmem:[#allocation4 + $0x458] ss:$36 sps:$4 sm:$0xff]  }
 0x167   :  { %1482 = vmatprep.subr.bf16.mxu1 %v4455_v30  ;;  %7440 = vst [vmem:[#allocation106_spill] sm:$0xff] %v4949_v28  ;;  %v4954_v30 = vld [vmem:[#allocation4 + $0x218] ss:$36 sps:$4 sm:$0xff]  }
 0x168   :  { %7441 = vst [vmem:[#allocation107_spill] sm:$0xff] %v4954_v30 }
 0x169   :  { %3443 = vmatpush3.bf16.msra.mxu0 %v4930_v18 }
 0x16a   :  { %3444 = vmatprep.subr.bf16.mxu0 %v4933_v10  ;;  %1483 = vmatpush1.bf16.msra.mxu1 %v4459_v32  ;;  %v4960_v32 = vld [vmem:[#allocation4 + $0xc] ss:$36 sps:$4 sm:$0xff]  }
 0x16b   :  { %1484 = vmatprep.subr.bf16.mxu1 %v4464_v34  ;;  %7442 = vst [vmem:[#allocation108_spill] sm:$0xff] %v4960_v32  ;;  %v4966_v34 = vld [vmem:[#allocation4 + $0x8] ss:$36 sps:$4 sm:$0xff]  }
 0x16c   :  { %7443 = vst [vmem:[#allocation109_spill] sm:$0xff] %v4966_v34 }
 0x16d   :  { %3445 = vmatpush3.bf16.msra.mxu0 %v4938_v24 }
 0x16e   :  { %3446 = vmatprep.subr.bf16.mxu0 %v4941_v26  ;;  %1485 = vmatpush1.bf16.msra.mxu1 %v4472_v36  ;;  %v4969_v36 = vld [vmem:[#allocation4 + $0x54] ss:$36 sps:$4 sm:$0xff]  }
 0x16f   :  { %1486 = vmatprep.subr.bf16.mxu1 %v4482_v38  ;;  %7444 = vst [vmem:[#allocation110_spill] sm:$0xff] %v4969_v36  ;;  %v4974_v38 = vld [vmem:[#allocation4 + $0x50] ss:$36 sps:$4 sm:$0xff]  }
 0x170   :  { %7445 = vst [vmem:[#allocation111_spill] sm:$0xff] %v4974_v38 }
 0x171   :  { %3447 = vmatpush3.bf16.msra.mxu0 %v4946_v22 }
 0x172   :  { %3448 = vmatprep.subr.bf16.mxu0 %v4949_v28  ;;  %1487 = vmatpush1.bf16.msra.mxu1 %v4486_v40  ;;  %v4977_v40 = vld [vmem:[#allocation4 + $0x9c] ss:$36 sps:$4 sm:$0xff]  }
 0x173   :  { %1488 = vmatprep.subr.bf16.mxu1 %v4494_v42  ;;  %7446 = vst [vmem:[#allocation112_spill] sm:$0xff] %v4977_v40  ;;  %v4982_v42 = vld [vmem:[#allocation4 + $0x98] ss:$36 sps:$4 sm:$0xff]  }
 0x174   :  { %7447 = vst [vmem:[#allocation113_spill] sm:$0xff] %v4982_v42 }
 0x175   :  { %3449 = vmatpush3.bf16.msra.mxu0 %v4954_v30 }
 0x176   :  { %1515 = vmatprep.subr.bf16.mxu0 %v4960_v32  ;;  %1489 = vmatpush1.bf16.msra.mxu1 %v4498_v44  ;;  %v4985_v44 = vld [vmem:[#allocation4 + $0xe4] ss:$36 sps:$4 sm:$0xff]  }
 0x177   :  { %1490 = vmatprep.subr.bf16.mxu1 %v4506_v46  ;;  %7448 = vst [vmem:[#allocation114_spill] sm:$0xff] %v4985_v44  ;;  %v7458_v46 = vld [vmem:[#allocation16_spill] sm:$0xff] }
 0x178   :  { %1398 = vmatmul.mubr.bf16.vlgmr.msra.gmra.mrb[24].mxu0 %v4682_v9 }
 0x179   :  { %1516 = vmatpush1.bf16.msra.mxu0 %v4966_v34 }
 0x17a   :  { %1517 = vmatprep.subr.bf16.mxu0 %v4969_v36  ;;  %1491 = vmatpush1.bf16.msra.mxu1 %v4510_v48  ;;  %v7460_v48 = vld [vmem:[#allocation18_spill] sm:$0xff] }
 0x17b   :  { %1492 = vmatprep.subr.bf16.mxu1 %v4518_v50  ;;  %v7462_v50 = vld [vmem:[#allocation21_spill] sm:$0xff] }
 0x17d   :  { %1518 = vmatpush1.bf16.msra.mxu0 %v4974_v38 }
 0x17e   :  { %1519 = vmatprep.subr.bf16.mxu0 %v4977_v40  ;;  %1493 = vmatpush1.bf16.msra.mxu1 %v4522_v52 }
 0x17f   :  { %1494 = vmatprep.subr.bf16.mxu1 %v4530_v54  ;;  %v7465_v54 = vld [vmem:[#allocation26_spill] sm:$0xff] }
 0x181   :  { %1520 = vmatpush1.bf16.msra.mxu0 %v4982_v42 }
 0x182   :  { %1521 = vmatprep.subr.bf16.mxu0 %v4985_v44  ;;  %1495 = vmatpush1.bf16.msra.mxu1 %v4534_v56 }
 0x183   :  { %1496 = vmatprep.subr.bf16.mxu1 %v4542_v58 }
 0x185   :  { %1522 = vmatpush1.bf16.msra.mxu0 %v4452_v29  ;;  %v7449_v29 = vld [vmem:[#allocation7_spill] sm:$0xff] }
 0x186   :  { %1523 = vmatprep.subr.bf16.mxu0 %v4457_v31  ;;  %1497 = vmatpush1.bf16.msra.mxu1 %v4546_v60  ;;  %v7450_v31 = vld [vmem:[#allocation8_spill] sm:$0xff] }
 0x187   :  { %1498 = vmatprep.subr.bf16.mxu1 %v4560_v2  ;;  %7529 = vst [vmem:[#allocation8_spill] sm:$0xff] %v5139_v14 }
 0x189   :  { %1524 = vmatpush1.bf16.msra.mxu0 %v4461_v33  ;;  %v7451_v33 = vld [vmem:[#allocation9_spill] sm:$0xff] }
 0x18a   :  { %1525 = vmatprep.subr.bf16.mxu0 %v4466_v35  ;;  %1499 = vmatpush1.bf16.msra.mxu1 %v4565_v4  ;;  %v7452_v35 = vld [vmem:[#allocation10_spill] sm:$0xff] }
 0x18b   :  { %1500 = vmatprep.subr.bf16.mxu1 %v4574_v6 }
 0x18d   :  { %1526 = vmatpush1.bf16.msra.mxu0 %v4474_v37  ;;  %v7453_v37 = vld [vmem:[#allocation11_spill] sm:$0xff] }
 0x18e   :  { %1527 = vmatprep.subr.bf16.mxu0 %v4484_v39  ;;  %1501 = vmatpush1.bf16.msra.mxu1 %v4579_v8  ;;  %v7454_v39 = vld [vmem:[#allocation12_spill] sm:$0xff] }
 0x18f   :  { %1502 = vmatprep.subr.bf16.mxu1 %v4593_v12 }
 0x191   :  { %1528 = vmatpush1.bf16.msra.mxu0 %v4488_v41  ;;  %v7455_v41 = vld [vmem:[#allocation13_spill] sm:$0xff] }
 0x192   :  { %1529 = vmatprep.subr.bf16.mxu0 %v4496_v43  ;;  %1503 = vmatpush1.bf16.msra.mxu1 %v4599_v15  ;;  %v7456_v43 = vld [vmem:[#allocation14_spill] sm:$0xff] }
 0x193   :  { %1504 = vmatprep.subr.bf16.mxu1 %v4607_v19 }
 0x195   :  { %1530 = vmatpush1.bf16.msra.mxu0 %v4500_v45  ;;  %v7457_v45 = vld [vmem:[#allocation15_spill] sm:$0xff] }
 0x196   :  { %1531 = vmatprep.subr.bf16.mxu0 %v4508_v47  ;;  %1505 = vmatpush1.bf16.msra.mxu1 %v4611_v23  ;;  %v7459_v47 = vld [vmem:[#allocation17_spill] sm:$0xff] }
 0x197   :  { %1556 = vmatprep.subr.bf16.mxu1 %v4617_v27 }
 0x199   :  { %1532 = vmatpush1.bf16.msra.mxu0 %v4512_v49  ;;  %v7461_v49 = vld [vmem:[#allocation19_spill] sm:$0xff] }
 0x19a   :  { %1533 = vmatprep.subr.bf16.mxu0 %v4520_v51  ;;  %v7463_v51 = vld [vmem:[#allocation24_spill] sm:$0xff] }
 0x19b   :  { %v150_v52 = vadd.f32 %v7463_v51, %v7462_v50 }
 0x19d   :  { %1534 = vmatpush1.bf16.msra.mxu0 %v4524_v53  ;;  %v7464_v53 = vld [vmem:[#allocation22_spill] sm:$0xff] }
 0x19e   :  { %1535 = vmatprep.subr.bf16.mxu0 %v7449_v29  ;;  %v152_v56 = vadd.f32 %v7465_v54, %v7464_v53 }
 0x1a1   :  { %1536 = vmatpush1.bf16.msra.mxu0 %v7450_v31 }
 0x1a2   :  { %1537 = vmatprep.subr.bf16.mxu0 %v7451_v33 }
 0x1a5   :  { %1538 = vmatpush1.bf16.msra.mxu0 %v7452_v35 }
 0x1a6   :  { %1539 = vmatprep.subr.bf16.mxu0 %v7453_v37 }
 0x1a9   :  { %1540 = vmatpush1.bf16.msra.mxu0 %v7454_v39 }
 0x1aa   :  { %1541 = vmatprep.subr.bf16.mxu0 %v7455_v41 }
 0x1ad   :  { %1542 = vmatpush1.bf16.msra.mxu0 %v7456_v43  ;;  %v7466_v43 = vld [vmem:[#allocation27_spill] sm:$0xff] }
 0x1ae   :  { %1543 = vmatprep.subr.bf16.mxu0 %v7457_v45  ;;  %v222_v45 = vadd.f32 %v7466_v43, %v4665_v0 }
 0x1b1   :  { %1544 = vmatpush1.bf16.msra.mxu0 %v7458_v46 }
 0x1b2   :  { %1545 = vmatprep.subr.bf16.mxu0 %v7459_v47 }
 0x1b5   :  { %1546 = vmatpush1.bf16.msra.mxu0 %v7460_v48 }
 0x1b6   :  { %1597 = vmatprep.subr.bf16.mxu0 %v7461_v49 }
 0x1eb   :  { %v1235_v58 = vpop.f32.mrb[16].mxu0  ;;  %v1276_v60 = vpop.f32.mrb[8].mxu1 }
 0x1ec   :  { %v1430_v2 = vadd.f32 %v1235_v58, %v150_v52  ;;  %v1237_v4 = vpop.f32.mrb[17].mxu0  ;;  %v1278_v6 = vpop.f32.mrb[9].mxu1  ;;  %v1440_v41 = vadd.f32 %v4670_v59, %v1276_v60  ;;  %v274_v60 = vld [vmem:[%s6820_s5] sm:$0x7] }
 0x1ed   :  { %v1435_v8 = vadd.f32 %v1237_v4, %v152_v56  ;;  %v1239_v12 = vpop.f32.mrb[18].mxu0  ;;  %v1280_v15 = vpop.f32.mrb[10].mxu1  ;;  %v7467_v4 = vld [vmem:[#allocation20_spill] sm:$0xff] }
 0x1ee   :  { %v1431_v9 = vmul.f32 0.5, %v1430_v2  ;;  %v1240_v29 = vpop.f32.mrb[19].mxu0  ;;  %v1281_v31 = vpop.f32.mrb[11].mxu1  ;;  %v7470_v15 = vsub.s32 1, %v7467_v4 }
 0x1ef   :  { %v1436_v33 = vmul.f32 0.5, %v1435_v8  ;;  %v7468_v8 = vsub.s32 0, %v7467_v4 }
 0x1f0   :  { %3921 = vtanh.f32 %v1431_v9  ;;  %v5045_v9 = vrot.slane %v274_v60, %v7470_v15 }
 0x1f1   :  { %3923 = vtanh.f32 %v1436_v33  ;;  %v5041_v12 = vrot.slane %v274_v60, %v7468_v8 }
 0x1f3   :  { %7469 = vst [vmem:[#allocation7_spill] sm:$0xff] %v5041_v12  ;;  %v1421_v29 = vadd.f32 %v5041_v12, %v1278_v6  ;;  %v5052_v6 = vld [vmem:[%s6821_s6] ss:$0 sm:$0xff] }
 0x1fa   :  { %v3922_v35 = vpop.eup %3921 }
 0x1fb   :  { %v1433_v37 = vmul.f32 0.5, %v3922_v35  ;;  %v3924_v47 = vpop.eup %3923 }
 0x1fc   :  { %v1438_v49 = vmul.f32 0.5, %v3924_v47 }
 0x1fd   :  { %v1434_v39 = vadd.f32 0.5, %v1433_v37 }
 0x1fe   :  { %v1439_v51 = vadd.f32 0.5, %v1438_v49 }
 0x1ff   :  { %v1441_v46 = vmul.f32 %v1440_v41, %v1434_v39 }
 0x200   :  { %v1444_v52 = vsub.f32 1.0, %v1439_v51  ;;  %v1446_v58 = vmul.f32 %v1439_v51, %v4674_v5 }
 0x201   :  { %v1442_v48 = vadd.f32 %v1441_v46, %v222_v45 }
 0x203   :  { %3925 = vtanh.f32 %v1442_v48 }
 0x20d   :  { %v3926_v54 = vpop.eup %3925 }
 0x20e   :  { %v1445_v56 = vmul.f32 %v3926_v54, %v1444_v52 }
 0x210   :  { %v5034_v2 = vadd.f32 %v1446_v58, %v1445_v56  ;;  %v7471_v58 = vsub.s32 2, %v7467_v4 }
 0x212   :  { %v5056_v8 = vrot.slane %v274_v60, %v7471_v58  ;;  %v7475_v58 = vld [vmem:[#allocation36_spill] sm:$0xff] }
 0x22b   :  { %v1317_v31 = vpop.f32.mrb[20].mxu0  ;;  %v1358_v33 = vpop.f32.mrb[12].mxu1 }
 0x22c   :  { %v1422_v5 = vadd.f32 %v5045_v9, %v1317_v31  ;;  %v1448_v35 = vadd.f32 %v1421_v29, %v1358_v33  ;;  %v1319_v37 = vpop.f32.mrb[21].mxu0  ;;  %v1360_v39 = vpop.f32.mrb[13].mxu1 }
 0x22d   :  { %v1321_v41 = vpop.f32.mrb[22].mxu0  ;;  %v1362_v43 = vpop.f32.mrb[14].mxu1 }
 0x22e   :  { %v1453_v45 = vadd.f32 %v1422_v5, %v1360_v39  ;;  %v1322_v46 = vpop.f32.mrb[23].mxu0  ;;  %v1363_v47 = vpop.f32.mrb[15].mxu1  ;;  %v1449_v48 = vmul.f32 0.5, %v1448_v35  ;;  %v1423_v35 = vadd.f32 %v5056_v8, %v1319_v37  ;;  %v7472_v37 = vld [vmem:[#allocation33_spill] sm:$0xff] }
 0x230   :  { %3927 = vtanh.f32 %v1449_v48  ;;  %v1454_v49 = vmul.f32 0.5, %v1453_v45 }
 0x232   :  { %3929 = vtanh.f32 %v1454_v49 }
 0x23a   :  { %v3928_v51 = vpop.eup %3927 }
 0x23b   :  { %v1451_v52 = vmul.f32 0.5, %v3928_v51 }
 0x23c   :  { %v3930_v41 = vpop.eup %3929 }
 0x23d   :  { %v1452_v33 = vadd.f32 0.5, %v1451_v52  ;;  %v1456_v45 = vmul.f32 0.5, %v3930_v41  ;;  %v5068_v52 = vpack.c.bf16 %v5034_v2, %v5034_v2  ;;  %v7487_v41 = vld [vmem:[#allocation48_spill] sm:$0xff] }
 0x23f   :  { %v1457_v46 = vadd.f32 0.5, %v1456_v45  ;;  %v7489_v45 = vld [vmem:[#allocation50_spill] sm:$0xff] }
 0x241   :  { %v1468_v47 = vsub.f32 1.0, %v1457_v46  ;;  %v1470_v49 = vmul.f32 0.0, %v1457_v46  ;;  %v7490_v46 = vld [vmem:[#allocation51_spill] sm:$0xff] }
 0x24b   :  { %v3450_v54 = vpop.f32.mrb[24].mxu0 }
 0x24c   :  { %v3451_v56 = vpop.f32.mrb[25].mxu0 }
 0x24d   :  { %v3452_v15 = vadd.f32 %v3451_v56, %v3450_v54  ;;  %v3453_v29 = vpop.f32.mrb[26].mxu0  ;;  %v7473_v54 = vld [vmem:[#allocation34_spill] sm:$0xff]  ;;  %v7474_v56 = vld [vmem:[#allocation35_spill] sm:$0xff] }
 0x24e   :  { %v3454_v31 = vpop.f32.mrb[27].mxu0  ;;  %v7479_v29 = vld [vmem:[#allocation40_spill] sm:$0xff] }
 0x24f   :  { %v1464_v5 = vadd.f32 %v3452_v15, %v5052_v6  ;;  %v7476_v15 = vld [vmem:[#allocation37_spill] sm:$0xff] }
 0x250   :  { %v7480_v31 = vld [vmem:[#allocation41_spill] sm:$0xff] }
 0x251   :  { %v1465_v39 = vmul.f32 %v1464_v5, %v1452_v33  ;;  %v7483_v33 = vld [vmem:[#allocation44_spill] sm:$0xff]  ;;  %v7484_v5 = vld [vmem:[#allocation45_spill] sm:$0xff] }
 0x253   :  { %v1466_v43 = vadd.f32 %v1465_v39, %v1423_v35  ;;  %v7485_v35 = vld [vmem:[#allocation46_spill] sm:$0xff]  ;;  %v7486_v39 = vld [vmem:[#allocation47_spill] sm:$0xff] }
 0x255   :  { %3931 = vtanh.f32 %v1466_v43  ;;  %v7488_v43 = vld [vmem:[#allocation49_spill] sm:$0xff] }
 0x25f   :  { %v3932_v48 = vpop.eup %3931 }
 0x260   :  { %v1469_v4 = vmul.f32 %v3932_v48, %v1468_v47  ;;  %v7491_v47 = vld [vmem:[#allocation52_spill] sm:$0xff]  ;;  %v7492_v48 = vld [vmem:[#allocation53_spill] sm:$0xff] }
 0x262   :  { %v5060_v60 = vadd.f32 %v1470_v49, %v1469_v4  ;;  %v7493_v49 = vld [vmem:[#allocation54_spill] sm:$0xff]  ;;  %v7494_v4 = vld [vmem:[#allocation55_spill] sm:$0xff] }
 0x264   :  { %v5064_v51 = vpack.c.bf16 %v5060_v60, %v5060_v60 }
 0x266   :  { %1506 = vmatprep.mubr.bf16.mxu1 %v5064_v51  ;;  %1547 = vmatprep.mubr.bf16.mxu0 %v5064_v51 }
 0x267   :  { %1507 = vmatmul.mubr.bf16.vlgmr.msra.gmra.mrb[16].mxu1 %v5068_v52  ;;  %1548 = vmatmul.mubr.bf16.vlgmr.msra.gmra.mrb[28].mxu0 %v5068_v52 }
 0x268   :  { %1557 = vmatpush1.bf16.msra.mxu1 %v4676_v17  ;;  %1598 = vmatpush1.bf16.msra.mxu0 %v4678_v55  ;;  %v7477_v17 = vld [vmem:[#allocation38_spill] sm:$0xff]  ;;  %v7478_v55 = vld [vmem:[#allocation39_spill] sm:$0xff] }
 0x269   :  { %1588 = vmatprep.mubr.bf16.mxu1 %v5064_v51  ;;  %1629 = vmatprep.mubr.bf16.mxu0 %v5064_v51 }
 0x26a   :  { %1558 = vmatprep.subr.bf16.mxu1 %v4684_v11  ;;  %1599 = vmatprep.subr.bf16.mxu0 %v4686_v63  ;;  %v7481_v11 = vld [vmem:[#allocation42_spill] sm:$0xff]  ;;  %v7482_v63 = vld [vmem:[#allocation43_spill] sm:$0xff] }
 0x26c   :  { %1559 = vmatpush1.bf16.msra.mxu1 %v7472_v37  ;;  %1600 = vmatpush1.bf16.msra.mxu0 %v7473_v54  ;;  %v7495_v37 = vld [vmem:[#allocation56_spill] sm:$0xff]  ;;  %v7496_v54 = vld [vmem:[#allocation57_spill] sm:$0xff] }
 0x26d   :  { %1560 = vmatprep.subr.bf16.mxu1 %v7474_v56  ;;  %1601 = vmatprep.subr.bf16.mxu0 %v7475_v58  ;;  %v7497_v56 = vld [vmem:[#allocation58_spill] sm:$0xff]  ;;  %v7498_v58 = vld [vmem:[#allocation59_spill] sm:$0xff] }
 0x270   :  { %1561 = vmatpush1.bf16.msra.mxu1 %v7476_v15  ;;  %1602 = vmatpush1.bf16.msra.mxu0 %v7477_v17  ;;  %v7499_v15 = vld [vmem:[#allocation60_spill] sm:$0xff]  ;;  %v7500_v17 = vld [vmem:[#allocation61_spill] sm:$0xff] }
 0x271   :  { %1562 = vmatprep.subr.bf16.mxu1 %v7478_v55  ;;  %1603 = vmatprep.subr.bf16.mxu0 %v7479_v29  ;;  %v7501_v55 = vld [vmem:[#allocation62_spill] sm:$0xff]  ;;  %v7502_v29 = vld [vmem:[#allocation63_spill] sm:$0xff] }
 0x274   :  { %1563 = vmatpush1.bf16.msra.mxu1 %v7480_v31  ;;  %1604 = vmatpush1.bf16.msra.mxu0 %v7481_v11  ;;  %v7503_v31 = vld [vmem:[#allocation64_spill] sm:$0xff]  ;;  %v7504_v11 = vld [vmem:[#allocation65_spill] sm:$0xff] }
 0x275   :  { %1564 = vmatprep.subr.bf16.mxu1 %v7482_v63  ;;  %1605 = vmatprep.subr.bf16.mxu0 %v7483_v33  ;;  %v7505_v63 = vld [vmem:[#allocation66_spill] sm:$0xff]  ;;  %v7506_v33 = vld [vmem:[#allocation67_spill] sm:$0xff] }
 0x278   :  { %1565 = vmatpush1.bf16.msra.mxu1 %v7484_v5  ;;  %1606 = vmatpush1.bf16.msra.mxu0 %v7485_v35  ;;  %v7507_v5 = vld [vmem:[#allocation68_spill] sm:$0xff]  ;;  %v7508_v35 = vld [vmem:[#allocation69_spill] sm:$0xff] }
 0x279   :  { %1566 = vmatprep.subr.bf16.mxu1 %v7486_v39  ;;  %1607 = vmatprep.subr.bf16.mxu0 %v7487_v41  ;;  %v7509_v39 = vld [vmem:[#allocation70_spill] sm:$0xff]  ;;  %v7510_v41 = vld [vmem:[#allocation71_spill] sm:$0xff] }
 0x27c   :  { %1567 = vmatpush1.bf16.msra.mxu1 %v7488_v43  ;;  %1608 = vmatpush1.bf16.msra.mxu0 %v7489_v45  ;;  %v7511_v43 = vld [vmem:[#allocation72_spill] sm:$0xff]  ;;  %v7512_v45 = vld [vmem:[#allocation73_spill] sm:$0xff] }
 0x27d   :  { %1568 = vmatprep.subr.bf16.mxu1 %v7490_v46  ;;  %1609 = vmatprep.subr.bf16.mxu0 %v7491_v47  ;;  %v7513_v46 = vld [vmem:[#allocation74_spill] sm:$0xff]  ;;  %v7514_v47 = vld [vmem:[#allocation75_spill] sm:$0xff] }
 0x280   :  { %1569 = vmatpush1.bf16.msra.mxu1 %v7492_v48  ;;  %1610 = vmatpush1.bf16.msra.mxu0 %v7493_v49  ;;  %v7515_v48 = vld [vmem:[#allocation76_spill] sm:$0xff]  ;;  %v7516_v49 = vld [vmem:[#allocation77_spill] sm:$0xff] }
 0x281   :  { %1570 = vmatprep.subr.bf16.mxu1 %v7494_v4  ;;  %1611 = vmatprep.subr.bf16.mxu0 %v7495_v37  ;;  %v7517_v4 = vld [vmem:[#allocation78_spill] sm:$0xff]  ;;  %v7518_v37 = vld [vmem:[#allocation79_spill] sm:$0xff] }
 0x284   :  { %1571 = vmatpush1.bf16.msra.mxu1 %v7496_v54  ;;  %1612 = vmatpush1.bf16.msra.mxu0 %v7497_v56  ;;  %v7519_v54 = vld [vmem:[#allocation80_spill] sm:$0xff]  ;;  %v7520_v56 = vld [vmem:[#allocation81_spill] sm:$0xff] }
 0x285   :  { %1572 = vmatprep.subr.bf16.mxu1 %v7498_v58  ;;  %1613 = vmatprep.subr.bf16.mxu0 %v7499_v15  ;;  %v7521_v58 = vld [vmem:[#allocation82_spill] sm:$0xff]  ;;  %v7522_v15 = vld [vmem:[#allocation83_spill] sm:$0xff] }
 0x288   :  { %1573 = vmatpush1.bf16.msra.mxu1 %v7500_v17  ;;  %1614 = vmatpush1.bf16.msra.mxu0 %v7501_v55  ;;  %v7523_v17 = vld [vmem:[#allocation84_spill] sm:$0xff]  ;;  %v7524_v55 = vld [vmem:[#allocation85_spill] sm:$0xff] }
 0x289   :  { %1574 = vmatprep.subr.bf16.mxu1 %v7502_v29  ;;  %1615 = vmatprep.subr.bf16.mxu0 %v7503_v31  ;;  %v7525_v29 = vld [vmem:[#allocation86_spill] sm:$0xff]  ;;  %v7526_v31 = vld [vmem:[#allocation87_spill] sm:$0xff] }
 0x28c   :  { %1575 = vmatpush1.bf16.msra.mxu1 %v7504_v11  ;;  %1616 = vmatpush1.bf16.msra.mxu0 %v7505_v63 }
 0x28d   :  { %1576 = vmatprep.subr.bf16.mxu1 %v7506_v33  ;;  %1617 = vmatprep.subr.bf16.mxu0 %v7507_v5 }
 0x290   :  { %1577 = vmatpush1.bf16.msra.mxu1 %v7508_v35  ;;  %1618 = vmatpush1.bf16.msra.mxu0 %v7509_v39 }
 0x291   :  { %1578 = vmatprep.subr.bf16.mxu1 %v7510_v41  ;;  %1619 = vmatprep.subr.bf16.mxu0 %v7511_v43 }
 0x294   :  { %1579 = vmatpush1.bf16.msra.mxu1 %v7512_v45  ;;  %1620 = vmatpush1.bf16.msra.mxu0 %v7513_v46 }
 0x295   :  { %1580 = vmatprep.subr.bf16.mxu1 %v7514_v47  ;;  %1621 = vmatprep.subr.bf16.mxu0 %v7515_v48 }
 0x298   :  { %1581 = vmatpush1.bf16.msra.mxu1 %v7516_v49  ;;  %1622 = vmatpush1.bf16.msra.mxu0 %v7517_v4 }
 0x299   :  { %1582 = vmatprep.subr.bf16.mxu1 %v7518_v37  ;;  %1623 = vmatprep.subr.bf16.mxu0 %v7519_v54 }
 0x29c   :  { %1583 = vmatpush1.bf16.msra.mxu1 %v7520_v56  ;;  %1624 = vmatpush1.bf16.msra.mxu0 %v7521_v58 }
 0x29d   :  { %1584 = vmatprep.subr.bf16.mxu1 %v4844_v3  ;;  %1625 = vmatprep.subr.bf16.mxu0 %v7522_v15 }
 0x2a0   :  { %1585 = vmatpush1.bf16.msra.mxu1 %v7523_v17  ;;  %1626 = vmatpush1.bf16.msra.mxu0 %v4852_v1 }
 0x2a1   :  { %1586 = vmatprep.subr.bf16.mxu1 %v7524_v55  ;;  %1627 = vmatprep.subr.bf16.mxu0 %v7525_v29  ;;  %v5147_v29 = vld [vmem:[#allocation4] ss:$36 sps:$4 sm:$0xff]  }
 0x2a2   :  { %7531 = vst [vmem:[#allocation9_spill] sm:$0xff] %v5147_v29 }
 0x2a4   :  { %1587 = vmatpush1.bf16.msra.mxu1 %v7526_v31  ;;  %1628 = vmatpush1.bf16.msra.mxu0 %v7527_v13  ;;  %v5150_v13 = vld [vmem:[#allocation4 + $0x4c] ss:$36 sps:$4 sm:$0xff]  }
 0x2a5   :  { %3456 = vmatprep.subr.bf16.mxu1 %v7528_v20  ;;  %1725 = vmatprep.subr.bf16.mxu0 %v5139_v14  ;;  %7532 = vst [vmem:[#allocation10_spill] sm:$0xff] %v5150_v13  ;;  %v5155_v14 = vld [vmem:[#allocation4 + $0x48] ss:$36 sps:$4 sm:$0xff]  }
 0x2a6   :  { %7533 = vst [vmem:[#allocation11_spill] sm:$0xff] %v5155_v14 }
 0x2a7   :  { %1589 = vmatmul.mubr.bf16.vlgmr.msra.gmra.mrb[20].mxu1 %v5068_v52  ;;  %1630 = vmatmul.mubr.bf16.vlgmr.msra.gmra.mrb[32].mxu0 %v5068_v52 }
 0x2a8   :  { %3457 = vmatpush3.bf16.msra.mxu1 %v7530_v7  ;;  %1670 = vmatprep.mubr.bf16.mxu1 %v5064_v51  ;;  %v5158_v7 = vld [vmem:[#allocation4 + $0x94] ss:$36 sps:$4 sm:$0xff]   ;;  %v7535_v51 = vld [vmem:[#allocation95_spill] sm:$0xff] }
 0x2a9   :  { %3458 = vmatprep.subr.bf16.mxu1 %v4875_v25  ;;  %1726 = vmatpush1.bf16.msra.mxu0 %v5147_v29  ;;  %7534 = vst [vmem:[#allocation12_spill] sm:$0xff] %v5158_v7  ;;  %v5163_v29 = vld [vmem:[#allocation4 + $0x90] ss:$36 sps:$4 sm:$0xff]  }
 0x2aa   :  { %1727 = vmatprep.subr.bf16.mxu0 %v5150_v13  ;;  %7536 = vst [vmem:[#allocation13_spill] sm:$0xff] %v5163_v29  ;;  %v5166_v13 = vld [vmem:[#allocation4 + $0xdc] ss:$36 sps:$4 sm:$0xff]  }
 0x2ab   :  { %7537 = vst [vmem:[#allocation14_spill] sm:$0xff] %v5166_v13 }
 0x2ac   :  { %3459 = vmatpush3.bf16.msra.mxu1 %v4881_v61 }
 0x2ad   :  { %3460 = vmatprep.subr.bf16.mxu1 %v4887_v21  ;;  %1728 = vmatpush1.bf16.msra.mxu0 %v5155_v14  ;;  %v5171_v14 = vld [vmem:[#allocation4 + $0xd8] ss:$36 sps:$4 sm:$0xff]  }
 0x2ae   :  { %1729 = vmatprep.subr.bf16.mxu0 %v5158_v7  ;;  %7538 = vst [vmem:[#allocation15_spill] sm:$0xff] %v5171_v14  ;;  %v5174_v7 = vld [vmem:[#allocation4 + $0x124] ss:$36 sps:$4 sm:$0xff]  }
 0x2af   :  { %7539 = vst [vmem:[#allocation16_spill] sm:$0xff] %v5174_v7 }
 0x2b0   :  { %3461 = vmatpush3.bf16.msra.mxu1 %v7535_v51 }
 0x2b1   :  { %3462 = vmatprep.subr.bf16.mxu1 %v4901_v62  ;;  %1730 = vmatpush1.bf16.msra.mxu0 %v5163_v29  ;;  %v5179_v29 = vld [vmem:[#allocation4 + $0x120] ss:$36 sps:$4 sm:$0xff]  }
 0x2b2   :  { %1731 = vmatprep.subr.bf16.mxu0 %v5166_v13  ;;  %7540 = vst [vmem:[#allocation17_spill] sm:$0xff] %v5179_v29  ;;  %v5182_v13 = vld [vmem:[#allocation4 + $0x16c] ss:$36 sps:$4 sm:$0xff]  }
 0x2b3   :  { %7541 = vst [vmem:[#allocation18_spill] sm:$0xff] %v5182_v13 }
 0x2b4   :  { %3463 = vmatpush3.bf16.msra.mxu1 %v4906_v16 }
 0x2b5   :  { %3464 = vmatprep.subr.bf16.mxu1 %v4913_v57  ;;  %1732 = vmatpush1.bf16.msra.mxu0 %v5171_v14  ;;  %v5187_v14 = vld [vmem:[#allocation4 + $0x168] ss:$36 sps:$4 sm:$0xff]  }
 0x2b6   :  { %1733 = vmatprep.subr.bf16.mxu0 %v5174_v7  ;;  %7542 = vst [vmem:[#allocation19_spill] sm:$0xff] %v5187_v14  ;;  %v5190_v7 = vld [vmem:[#allocation4 + $0x1b4] ss:$36 sps:$4 sm:$0xff]  }
 0x2b7   :  { %7543 = vst [vmem:[#allocation24_spill] sm:$0xff] %v5190_v7 }
 0x2b8   :  { %3465 = vmatpush3.bf16.msra.mxu1 %v4930_v18 }
 0x2b9   :  { %3466 = vmatprep.subr.bf16.mxu1 %v4933_v10  ;;  %1734 = vmatpush1.bf16.msra.mxu0 %v5179_v29  ;;  %v5195_v29 = vld [vmem:[#allocation4 + $0x1b0] ss:$36 sps:$4 sm:$0xff]  }
 0x2ba   :  { %1735 = vmatprep.subr.bf16.mxu0 %v5182_v13  ;;  %7544 = vst [vmem:[#allocation26_spill] sm:$0xff] %v5195_v29  ;;  %v5198_v13 = vld [vmem:[#allocation4 + $0x1fc] ss:$36 sps:$4 sm:$0xff]  }
 0x2bb   :  { %7545 = vst [vmem:[#allocation27_spill] sm:$0xff] %v5198_v13 }
 0x2bc   :  { %3467 = vmatpush3.bf16.msra.mxu1 %v4938_v24 }
 0x2bd   :  { %3468 = vmatprep.subr.bf16.mxu1 %v4941_v26  ;;  %1736 = vmatpush1.bf16.msra.mxu0 %v5187_v14  ;;  %v5203_v14 = vld [vmem:[#allocation4 + $0x1f8] ss:$36 sps:$4 sm:$0xff]  }
 0x2be   :  { %1737 = vmatprep.subr.bf16.mxu0 %v5190_v7  ;;  %7546 = vst [vmem:[#allocation20_spill] sm:$0xff] %v5203_v14  ;;  %v5206_v7 = vld [vmem:[#allocation4 + $0x244] ss:$36 sps:$4 sm:$0xff]  }
 0x2bf   :  { %7547 = vst [vmem:[#allocation33_spill] sm:$0xff] %v5206_v7 }
 0x2c0   :  { %3469 = vmatpush3.bf16.msra.mxu1 %v4946_v22 }
 0x2c1   :  { %3470 = vmatprep.subr.bf16.mxu1 %v4949_v28  ;;  %1738 = vmatpush1.bf16.msra.mxu0 %v5195_v29  ;;  %v5212_v29 = vld [vmem:[#allocation4 + $0x240] ss:$36 sps:$4 sm:$0xff]  }
 0x2c2   :  { %1739 = vmatprep.subr.bf16.mxu0 %v5198_v13  ;;  %7548 = vst [vmem:[#allocation34_spill] sm:$0xff] %v5212_v29 }
 0x2c4   :  { %3471 = vmatpush3.bf16.msra.mxu1 %v4954_v30  ;;  %v5215_v30 = vld [vmem:[#allocation4 + $0x28c] ss:$36 sps:$4 sm:$0xff]  }
 0x2c5   :  { %1766 = vmatprep.subr.bf16.mxu1 %v4960_v32  ;;  %1740 = vmatpush1.bf16.msra.mxu0 %v5203_v14  ;;  %7549 = vst [vmem:[#allocation35_spill] sm:$0xff] %v5215_v30  ;;  %v5220_v14 = vld [vmem:[#allocation4 + $0x288] ss:$36 sps:$4 sm:$0xff]  }
 0x2c6   :  { %1741 = vmatprep.subr.bf16.mxu0 %v5206_v7  ;;  %7550 = vst [vmem:[#allocation36_spill] sm:$0xff] %v5220_v14 }
 0x2c7   :  { %1671 = vmatmul.mubr.bf16.vlgmr.msra.gmra.mrb[24].mxu1 %v5068_v52  ;;  %v5223_v52 = vld [vmem:[#allocation4 + $0x2d4] ss:$36 sps:$4 sm:$0xff]  }
 0x2c8   :  { %1767 = vmatpush1.bf16.msra.mxu1 %v4966_v34  ;;  %7551 = vst [vmem:[#allocation37_spill] sm:$0xff] %v5223_v52 }
 0x2c9   :  { %1768 = vmatprep.subr.bf16.mxu1 %v4969_v36  ;;  %1742 = vmatpush1.bf16.msra.mxu0 %v5212_v29  ;;  %v5228_v29 = vld [vmem:[#allocation4 + $0x2d0] ss:$36 sps:$4 sm:$0xff]  }
 0x2ca   :  { %1743 = vmatprep.subr.bf16.mxu0 %v5215_v30  ;;  %7552 = vst [vmem:[#allocation38_spill] sm:$0xff] %v5228_v29  ;;  %v5231_v30 = vld [vmem:[#allocation4 + $0x31c] ss:$36 sps:$4 sm:$0xff]  }
 0x2cb   :  { %7553 = vst [vmem:[#allocation39_spill] sm:$0xff] %v5231_v30 }
 0x2cc   :  { %1769 = vmatpush1.bf16.msra.mxu1 %v4974_v38 }
 0x2cd   :  { %1770 = vmatprep.subr.bf16.mxu1 %v4977_v40  ;;  %1744 = vmatpush1.bf16.msra.mxu0 %v5220_v14  ;;  %v5234_v40 = vld [vmem:[#allocation4 + $0xe0] ss:$36 sps:$4 sm:$0xff]   ;;  %v5237_v14 = vld [vmem:[#allocation4 + $0x12c] ss:$36 sps:$4 sm:$0xff]  }
 0x2ce   :  { %1745 = vmatprep.subr.bf16.mxu0 %v5223_v52  ;;  %7554 = vst [vmem:[#allocation40_spill] sm:$0xff] %v5234_v40  ;;  %7555 = vst [vmem:[#allocation41_spill] sm:$0xff] %v5237_v14  ;;  %v5240_v52 = vld [vmem:[#allocation4 + $0x318] ss:$36 sps:$4 sm:$0xff]  }
 0x2cf   :  { %7556 = vst [vmem:[#allocation42_spill] sm:$0xff] %v5240_v52 }
 0x2d0   :  { %1771 = vmatpush1.bf16.msra.mxu1 %v4982_v42 }
 0x2d1   :  { %1772 = vmatprep.subr.bf16.mxu1 %v4985_v44  ;;  %1746 = vmatpush1.bf16.msra.mxu0 %v5228_v29  ;;  %v5243_v44 = vld [vmem:[#allocation4 + $0x364] ss:$36 sps:$4 sm:$0xff]  }
 0x2d2   :  { %1747 = vmatprep.subr.bf16.mxu0 %v5231_v30  ;;  %7557 = vst [vmem:[#allocation43_spill] sm:$0xff] %v5243_v44  ;;  %v5246_v29 = vld [vmem:[#allocation4 + $0x128] ss:$36 sps:$4 sm:$0xff]   ;;  %v5249_v30 = vld [vmem:[#allocation4 + $0x174] ss:$36 sps:$4 sm:$0xff]  }
 0x2d3   :  { %7558 = vst [vmem:[#allocation44_spill] sm:$0xff] %v5246_v29  ;;  %7559 = vst [vmem:[#allocation45_spill] sm:$0xff] %v5249_v30 }
 0x2d4   :  { %1773 = vmatpush1.bf16.msra.mxu1 %v5234_v40  ;;  %v5252_v40 = vld [vmem:[#allocation4 + $0x360] ss:$36 sps:$4 sm:$0xff]  }
 0x2d5   :  { %1774 = vmatprep.subr.bf16.mxu1 %v5237_v14  ;;  %1748 = vmatpush1.bf16.msra.mxu0 %v5240_v52  ;;  %7560 = vst [vmem:[#allocation46_spill] sm:$0xff] %v5252_v40  ;;  %v5255_v14 = vld [vmem:[#allocation4 + $0x3ac] ss:$36 sps:$4 sm:$0xff]  }
 0x2d6   :  { %1749 = vmatprep.subr.bf16.mxu0 %v5243_v44  ;;  %7561 = vst [vmem:[#allocation47_spill] sm:$0xff] %v5255_v14  ;;  %v5258_v52 = vld [vmem:[#allocation4 + $0x170] ss:$36 sps:$4 sm:$0xff]   ;;  %v5261_v44 = vld [vmem:[#allocation4 + $0x1bc] ss:$36 sps:$4 sm:$0xff]  }
 0x2d7   :  { %7562 = vst [vmem:[#allocation48_spill] sm:$0xff] %v5258_v52  ;;  %7563 = vst [vmem:[#allocation49_spill] sm:$0xff] %v5261_v44 }
 0x2d8   :  { %1775 = vmatpush1.bf16.msra.mxu1 %v5246_v29  ;;  %v5264_v29 = vld [vmem:[#allocation4 + $0x3a8] ss:$36 sps:$4 sm:$0xff]  }
 0x2d9   :  { %1776 = vmatprep.subr.bf16.mxu1 %v5249_v30  ;;  %1750 = vmatpush1.bf16.msra.mxu0 %v5252_v40  ;;  %7564 = vst [vmem:[#allocation50_spill] sm:$0xff] %v5264_v29  ;;  %v5267_v30 = vld [vmem:[#allocation4 + $0x3f4] ss:$36 sps:$4 sm:$0xff]  }
 0x2da   :  { %1751 = vmatprep.subr.bf16.mxu0 %v5255_v14  ;;  %7565 = vst [vmem:[#allocation51_spill] sm:$0xff] %v5267_v30  ;;  %v5270_v40 = vld [vmem:[#allocation4 + $0x1b8] ss:$36 sps:$4 sm:$0xff]   ;;  %v5273_v14 = vld [vmem:[#allocation4 + $0x204] ss:$36 sps:$4 sm:$0xff]  }
 0x2db   :  { %7566 = vst [vmem:[#allocation52_spill] sm:$0xff] %v5270_v40  ;;  %7567 = vst [vmem:[#allocation53_spill] sm:$0xff] %v5273_v14 }
 0x2dc   :  { %1777 = vmatpush1.bf16.msra.mxu1 %v5258_v52  ;;  %v5276_v52 = vld [vmem:[#allocation4 + $0x3f0] ss:$36 sps:$4 sm:$0xff]  }
 0x2dd   :  { %1778 = vmatprep.subr.bf16.mxu1 %v5261_v44  ;;  %1752 = vmatpush1.bf16.msra.mxu0 %v5264_v29  ;;  %7568 = vst [vmem:[#allocation54_spill] sm:$0xff] %v5276_v52  ;;  %v5280_v44 = vld [vmem:[#allocation4 + $0x200] ss:$36 sps:$4 sm:$0xff]   ;;  %v5283_v29 = vld [vmem:[#allocation4 + $0x24c] ss:$36 sps:$4 sm:$0xff]  }
 0x2de   :  { %1753 = vmatprep.subr.bf16.mxu0 %v5267_v30  ;;  %7569 = vst [vmem:[#allocation55_spill] sm:$0xff] %v5280_v44  ;;  %7570 = vst [vmem:[#allocation56_spill] sm:$0xff] %v5283_v29 }
 0x2e0   :  { %1779 = vmatpush1.bf16.msra.mxu1 %v5270_v40  ;;  %v5288_v40 = vld [vmem:[#allocation4 + $0x248] ss:$36 sps:$4 sm:$0xff]  }
 0x2e1   :  { %1780 = vmatprep.subr.bf16.mxu1 %v5273_v14  ;;  %1754 = vmatpush1.bf16.msra.mxu0 %v5276_v52  ;;  %7571 = vst [vmem:[#allocation57_spill] sm:$0xff] %v5288_v40  ;;  %v5291_v14 = vld [vmem:[#allocation4 + $0x294] ss:$36 sps:$4 sm:$0xff]  }
 0x2e2   :  { %1755 = vmatprep.subr.bf16.mxu0 %v4607_v19  ;;  %7572 = vst [vmem:[#allocation58_spill] sm:$0xff] %v5291_v14  ;;  %v5294_v19 = vld [vmem:[#allocation4 + $0x290] ss:$36 sps:$4 sm:$0xff]  }
 0x2e3   :  { %7573 = vst [vmem:[#allocation59_spill] sm:$0xff] %v5294_v19 }
 0x2e4   :  { %1781 = vmatpush1.bf16.msra.mxu1 %v5280_v44  ;;  %v5297_v44 = vld [vmem:[#allocation4 + $0x2dc] ss:$36 sps:$4 sm:$0xff]  }
 0x2e5   :  { %1782 = vmatprep.subr.bf16.mxu1 %v5283_v29  ;;  %1756 = vmatpush1.bf16.msra.mxu0 %v4611_v23  ;;  %7574 = vst [vmem:[#allocation60_spill] sm:$0xff] %v5297_v44  ;;  %v5300_v29 = vld [vmem:[#allocation4 + $0x2d8] ss:$36 sps:$4 sm:$0xff]   ;;  %v5303_v23 = vld [vmem:[#allocation4 + $0x324] ss:$36 sps:$4 sm:$0xff]  }
 0x2e6   :  { %1807 = vmatprep.subr.bf16.mxu0 %v4617_v27  ;;  %7575 = vst [vmem:[#allocation61_spill] sm:$0xff] %v5300_v29  ;;  %7576 = vst [vmem:[#allocation62_spill] sm:$0xff] %v5303_v23  ;;  %v5306_v27 = vld [vmem:[#allocation4 + $0x320] ss:$36 sps:$4 sm:$0xff]  }
 0x2e7   :  { %7577 = vst [vmem:[#allocation63_spill] sm:$0xff] %v5306_v27 }
 0x2e8   :  { %1783 = vmatpush1.bf16.msra.mxu1 %v5288_v40 }
 0x2e9   :  { %1784 = vmatprep.subr.bf16.mxu1 %v5291_v14  ;;  %v5309_v14 = vld [vmem:[#allocation4 + $0x36c] ss:$36 sps:$4 sm:$0xff]  }
 0x2ea   :  { %7578 = vst [vmem:[#allocation64_spill] sm:$0xff] %v5309_v14 }
 0x2ec   :  { %1785 = vmatpush1.bf16.msra.mxu1 %v5294_v19  ;;  %v5312_v19 = vld [vmem:[#allocation4 + $0x368] ss:$36 sps:$4 sm:$0xff]  }
 0x2ed   :  { %1786 = vmatprep.subr.bf16.mxu1 %v5297_v44  ;;  %7579 = vst [vmem:[#allocation65_spill] sm:$0xff] %v5312_v19  ;;  %v5315_v44 = vld [vmem:[#allocation4 + $0x3b4] ss:$36 sps:$4 sm:$0xff]  }
 0x2ee   :  { %7580 = vst [vmem:[#allocation66_spill] sm:$0xff] %v5315_v44 }
 0x2f0   :  { %1787 = vmatpush1.bf16.msra.mxu1 %v5300_v29  ;;  %v5318_v29 = vld [vmem:[#allocation4 + $0x3b0] ss:$36 sps:$4 sm:$0xff]  }
 0x2f1   :  { %1788 = vmatprep.subr.bf16.mxu1 %v5303_v23  ;;  %7581 = vst [vmem:[#allocation67_spill] sm:$0xff] %v5318_v29  ;;  %v5321_v23 = vld [vmem:[#allocation4 + $0x3fc] ss:$36 sps:$4 sm:$0xff]  }
 0x2f2   :  { %7582 = vst [vmem:[#allocation68_spill] sm:$0xff] %v5321_v23 }
 0x2f4   :  { %1789 = vmatpush1.bf16.msra.mxu1 %v5306_v27  ;;  %v5324_v27 = vld [vmem:[#allocation4 + $0x3f8] ss:$36 sps:$4 sm:$0xff]  }
 0x2f5   :  { %1790 = vmatprep.subr.bf16.mxu1 %v5309_v14  ;;  %7583 = vst [vmem:[#allocation69_spill] sm:$0xff] %v5324_v27  ;;  %v5327_v14 = vld [vmem:[#allocation4 + $0x444] ss:$36 sps:$4 sm:$0xff]  }
 0x2f6   :  { %7584 = vst [vmem:[#allocation70_spill] sm:$0xff] %v5327_v14 }
 0x2f8   :  { %1791 = vmatpush1.bf16.msra.mxu1 %v5312_v19  ;;  %v5330_v19 = vld [vmem:[#allocation4 + $0x440] ss:$36 sps:$4 sm:$0xff]  }
 0x2f9   :  { %1792 = vmatprep.subr.bf16.mxu1 %v5315_v44  ;;  %7585 = vst [vmem:[#allocation71_spill] sm:$0xff] %v5330_v19  ;;  %v5333_v44 = vld [vmem:[#allocation4 + $0x1c] ss:$36 sps:$4 sm:$0xff]  }
 0x2fa   :  { %7586 = vst [vmem:[#allocation72_spill] sm:$0xff] %v5333_v44 }
 0x2fc   :  { %1793 = vmatpush1.bf16.msra.mxu1 %v5318_v29  ;;  %v7587_v29 = vld [vmem:[#allocation28_spill] sm:$0xff] }
 0x2fd   :  { %1794 = vmatprep.subr.bf16.mxu1 %v5321_v23  ;;  %v156_v40 = vadd.f32 %v7587_v29, %v7462_v50  ;;  %v7588_v23 = vld [vmem:[#allocation29_spill] sm:$0xff] }
 0x2fe   :  { %v158_v52 = vadd.f32 %v7588_v23, %v7464_v53  ;;  %v7589_v23 = vld [vmem:[#allocation23_spill] sm:$0xff] }
 0x2ff   :  { %v227_v53 = vadd.f32 %v7589_v23, %v4665_v0 }
 0x300   :  { %1795 = vmatpush1.bf16.msra.mxu1 %v5324_v27 }
 0x301   :  { %1796 = vmatprep.subr.bf16.mxu1 %v5327_v14 }
 0x304   :  { %1797 = vmatpush1.bf16.msra.mxu1 %v5330_v19 }
 0x305   :  { %1848 = vmatprep.subr.bf16.mxu1 %v5333_v44 }
 0x33a   :  { %v1508_v30 = vpop.f32.mrb[16].mxu1  ;;  %v1549_v27 = vpop.f32.mrb[28].mxu0 }
 0x33b   :  { %v1687_v42 = vadd.f32 %v1508_v30, %v156_v40  ;;  %v1510_v38 = vpop.f32.mrb[17].mxu1  ;;  %v1551_v36 = vpop.f32.mrb[29].mxu0  ;;  %v1697_v50 = vadd.f32 %v4670_v59, %v1549_v27 }
 0x33c   :  { %v1692_v14 = vadd.f32 %v1510_v38, %v158_v52  ;;  %v1512_v34 = vpop.f32.mrb[18].mxu1  ;;  %v1553_v7 = vpop.f32.mrb[30].mxu0 }
 0x33d   :  { %v1688_v32 = vmul.f32 0.5, %v1687_v42  ;;  %v1513_v19 = vpop.f32.mrb[19].mxu1  ;;  %v1554_v13 = vpop.f32.mrb[31].mxu0 }
 0x33e   :  { %v1693_v28 = vmul.f32 0.5, %v1692_v14 }
 0x33f   :  { %3933 = vtanh.f32 %v1688_v32 }
 0x340   :  { %3935 = vtanh.f32 %v1693_v28 }
 0x349   :  { %v3934_v44 = vpop.eup %3933 }
 0x34a   :  { %v1690_v22 = vmul.f32 0.5, %v3934_v44  ;;  %v3936_v40 = vpop.eup %3935 }
 0x34b   :  { %v1695_v34 = vmul.f32 0.5, %v3936_v40 }
 0x34c   :  { %v1691_v29 = vadd.f32 0.5, %v1690_v22  ;;  %v1678_v22 = vadd.f32 %v1551_v36, %v5041_v12 }
 0x34d   :  { %v1696_v7 = vadd.f32 0.5, %v1695_v34 }
 0x34e   :  { %v1698_v30 = vmul.f32 %v1697_v50, %v1691_v29 }
 0x34f   :  { %v1701_v38 = vsub.f32 1.0, %v1696_v7  ;;  %v1703_v14 = vmul.f32 %v1696_v7, %v5034_v2 }
 0x350   :  { %v1699_v26 = vadd.f32 %v1698_v30, %v227_v53 }
 0x352   :  { %3937 = vtanh.f32 %v1699_v26 }
 0x35c   :  { %v3938_v42 = vpop.eup %3937 }
 0x35d   :  { %v1702_v13 = vmul.f32 %v3938_v42, %v1701_v38 }
 0x35f   :  { %v5344_v28 = vadd.f32 %v1703_v14, %v1702_v13 }
 0x37a   :  { %v1590_v32 = vpop.f32.mrb[20].mxu1  ;;  %v1631_v59 = vpop.f32.mrb[32].mxu0 }
 0x37b   :  { %v1679_v44 = vadd.f32 %v1590_v32, %v5045_v9  ;;  %v1705_v52 = vadd.f32 %v1678_v22, %v1631_v59  ;;  %v1592_v50 = vpop.f32.mrb[21].mxu1  ;;  %v1633_v19 = vpop.f32.mrb[33].mxu0 }
 0x37c   :  { %v1594_v53 = vpop.f32.mrb[22].mxu1  ;;  %v1635_v26 = vpop.f32.mrb[34].mxu0  ;;  %v1680_v32 = vadd.f32 %v1592_v50, %v5056_v8  ;;  %v5359_v50 = vpack.c.bf16 %v5344_v28, %v5344_v28 }
 0x37d   :  { %v1710_v27 = vadd.f32 %v1679_v44, %v1633_v19  ;;  %v1595_v29 = vpop.f32.mrb[23].mxu1  ;;  %v1636_v23 = vpop.f32.mrb[35].mxu0  ;;  %v1706_v30 = vmul.f32 0.5, %v1705_v52 }
 0x37f   :  { %3939 = vtanh.f32 %v1706_v30  ;;  %v1711_v40 = vmul.f32 0.5, %v1710_v27 }
 0x381   :  { %3941 = vtanh.f32 %v1711_v40 }
 0x389   :  { %v3940_v2 = vpop.eup %3939 }
 0x38a   :  { %v1708_v34 = vmul.f32 0.5, %v3940_v2  ;;  %v5368_v2 = vld [vmem:[#allocation4 + $0x18] ss:$36 sps:$4 sm:$0xff]  }
 0x38b   :  { %v3942_v44 = vpop.eup %3941 }
 0x38c   :  { %v1709_v14 = vadd.f32 0.5, %v1708_v34  ;;  %v1713_v52 = vmul.f32 0.5, %v3942_v44  ;;  %v5373_v34 = vld [vmem:[#allocation4 + $0x5c] ss:$36 sps:$4 sm:$0xff]   ;;  %v5403_v44 = vld [vmem:[#allocation4 + $0xe8] ss:$36 sps:$4 sm:$0xff]  }
 0x38e   :  { %v1714_v53 = vadd.f32 0.5, %v1713_v52  ;;  %v5409_v52 = vld [vmem:[#allocation4 + $0x134] ss:$36 sps:$4 sm:$0xff]  }
 0x38f   :  { %7590 = vst [vmem:[#allocation73_spill] sm:$0xff] %v5409_v52 }
 0x390   :  { %v1719_v26 = vsub.f32 1.0, %v1714_v53  ;;  %v1721_v29 = vmul.f32 %v1714_v53, %v5060_v60  ;;  %v5365_v60 = vld [vmem:[#allocation4 + $0x10] ss:$36 sps:$4 sm:$0xff]   ;;  %v5412_v53 = vld [vmem:[#allocation4 + $0x13c] ss:$36 sps:$4 sm:$0xff]  }
 0x391   :  { %7591 = vst [vmem:[#allocation74_spill] sm:$0xff] %v5412_v53 }
 0x39a   :  { %v3472_v7 = vpop.f32.mrb[24].mxu1 }
 0x39b   :  { %v3473_v36 = vpop.f32.mrb[25].mxu1 }
 0x39c   :  { %v3474_v38 = vadd.f32 %v3473_v36, %v3472_v7  ;;  %v3475_v42 = vpop.f32.mrb[26].mxu1  ;;  %v5376_v7 = vld [vmem:[#allocation4 + $0x64] ss:$36 sps:$4 sm:$0xff]   ;;  %v5379_v36 = vld [vmem:[#allocation4 + $0x58] ss:$36 sps:$4 sm:$0xff]  }
 0x39d   :  { %v3476_v13 = vpop.f32.mrb[27].mxu1  ;;  %v5385_v42 = vld [vmem:[#allocation4 + $0xa4] ss:$36 sps:$4 sm:$0xff]  }
 0x39e   :  { %v1715_v22 = vadd.f32 %v3474_v38, %v5052_v6  ;;  %v5382_v38 = vld [vmem:[#allocation4 + $0x60] ss:$36 sps:$4 sm:$0xff]   ;;  %v5388_v13 = vld [vmem:[#allocation4 + $0xac] ss:$36 sps:$4 sm:$0xff]  }
 0x3a0   :  { %v1716_v59 = vmul.f32 %v1715_v22, %v1709_v14  ;;  %v5391_v14 = vld [vmem:[#allocation4 + $0xa0] ss:$36 sps:$4 sm:$0xff]   ;;  %v5394_v22 = vld [vmem:[#allocation4 + $0xa8] ss:$36 sps:$4 sm:$0xff]  }
 0x3a2   :  { %v1717_v19 = vadd.f32 %v1716_v59, %v1680_v32  ;;  %v5397_v32 = vld [vmem:[#allocation4 + $0xec] ss:$36 sps:$4 sm:$0xff]   ;;  %v5400_v59 = vld [vmem:[#allocation4 + $0xf4] ss:$36 sps:$4 sm:$0xff]  }
 0x3a4   :  { %3943 = vtanh.f32 %v1717_v19  ;;  %v5406_v19 = vld [vmem:[#allocation4 + $0xf0] ss:$36 sps:$4 sm:$0xff]  }
 0x3ae   :  { %v3944_v27 = vpop.eup %3943 }
 0x3af   :  { %v1720_v23 = vmul.f32 %v3944_v27, %v1719_v26  ;;  %v5415_v26 = vld [vmem:[#allocation4 + $0x130] ss:$36 sps:$4 sm:$0xff]   ;;  %v5418_v27 = vld [vmem:[#allocation4 + $0x138] ss:$36 sps:$4 sm:$0xff]  }
 0x3b0   :  { %7592 = vst [vmem:[#allocation75_spill] sm:$0xff] %v5415_v26  ;;  %7593 = vst [vmem:[#allocation76_spill] sm:$0xff] %v5418_v27 }
 0x3b1   :  { %v5351_v30 = vadd.f32 %v1721_v29, %v1720_v23  ;;  %v5421_v29 = vld [vmem:[#allocation4 + $0x17c] ss:$36 sps:$4 sm:$0xff]   ;;  %v5424_v23 = vld [vmem:[#allocation4 + $0x184] ss:$36 sps:$4 sm:$0xff]  }
 0x3b2   :  { %7594 = vst [vmem:[#allocation77_spill] sm:$0xff] %v5421_v29  ;;  %7595 = vst [vmem:[#allocation78_spill] sm:$0xff] %v5424_v23 }
 0x3b3   :  { %v5355_v40 = vpack.c.bf16 %v5351_v30, %v5351_v30 }
 0x3b5   :  { %1757 = vmatprep.mubr.bf16.mxu0 %v5355_v40  ;;  %1798 = vmatprep.mubr.bf16.mxu1 %v5355_v40 }
 0x3b6   :  { %1758 = vmatmul.mubr.bf16.vlgmr.msra.gmra.mrb[36].mxu0 %v5359_v50  ;;  %1799 = vmatmul.mubr.bf16.vlgmr.msra.gmra.mrb[28].mxu1 %v5359_v50 }
 0x3b7   :  { %1808 = vmatpush1.bf16.msra.mxu0 %v5365_v60  ;;  %1849 = vmatpush1.bf16.msra.mxu1 %v5368_v2 }
 0x3b8   :  { %1839 = vmatprep.mubr.bf16.mxu0 %v5355_v40  ;;  %1880 = vmatprep.mubr.bf16.mxu1 %v5355_v40 }
 0x3b9   :  { %1809 = vmatprep.subr.bf16.mxu0 %v5373_v34  ;;  %1850 = vmatprep.subr.bf16.mxu1 %v5376_v7 }
 0x3bb   :  { %1810 = vmatpush1.bf16.msra.mxu0 %v5379_v36  ;;  %1851 = vmatpush1.bf16.msra.mxu1 %v5382_v38 }
 0x3bc   :  { %1811 = vmatprep.subr.bf16.mxu0 %v5385_v42  ;;  %1852 = vmatprep.subr.bf16.mxu1 %v5388_v13 }
 0x3bf   :  { %1812 = vmatpush1.bf16.msra.mxu0 %v5391_v14  ;;  %1853 = vmatpush1.bf16.msra.mxu1 %v5394_v22 }
 0x3c0   :  { %1813 = vmatprep.subr.bf16.mxu0 %v5397_v32  ;;  %1854 = vmatprep.subr.bf16.mxu1 %v5400_v59 }
 0x3c3   :  { %1814 = vmatpush1.bf16.msra.mxu0 %v5403_v44  ;;  %1855 = vmatpush1.bf16.msra.mxu1 %v5406_v19 }
 0x3c4   :  { %1815 = vmatprep.subr.bf16.mxu0 %v5409_v52  ;;  %1856 = vmatprep.subr.bf16.mxu1 %v5412_v53  ;;  %v5427_v52 = vld [vmem:[#allocation4 + $0x178] ss:$36 sps:$4 sm:$0xff]   ;;  %v5430_v53 = vld [vmem:[#allocation4 + $0x180] ss:$36 sps:$4 sm:$0xff]  }
 0x3c5   :  { %7596 = vst [vmem:[#allocation79_spill] sm:$0xff] %v5427_v52  ;;  %7597 = vst [vmem:[#allocation80_spill] sm:$0xff] %v5430_v53 }
 0x3c7   :  { %1816 = vmatpush1.bf16.msra.mxu0 %v5415_v26  ;;  %1857 = vmatpush1.bf16.msra.mxu1 %v5418_v27  ;;  %v5433_v26 = vld [vmem:[#allocation4 + $0x1c4] ss:$36 sps:$4 sm:$0xff]   ;;  %v5436_v27 = vld [vmem:[#allocation4 + $0x1cc] ss:$36 sps:$4 sm:$0xff]  }
 0x3c8   :  { %1817 = vmatprep.subr.bf16.mxu0 %v5421_v29  ;;  %1858 = vmatprep.subr.bf16.mxu1 %v5424_v23  ;;  %7598 = vst [vmem:[#allocation81_spill] sm:$0xff] %v5433_v26  ;;  %7599 = vst [vmem:[#allocation82_spill] sm:$0xff] %v5436_v27  ;;  %v5439_v29 = vld [vmem:[#allocation4 + $0x1c0] ss:$36 sps:$4 sm:$0xff]   ;;  %v5442_v23 = vld [vmem:[#allocation4 + $0x1c8] ss:$36 sps:$4 sm:$0xff]  }
 0x3c9   :  { %7600 = vst [vmem:[#allocation83_spill] sm:$0xff] %v5439_v29  ;;  %7601 = vst [vmem:[#allocation84_spill] sm:$0xff] %v5442_v23 }
 0x3cb   :  { %1818 = vmatpush1.bf16.msra.mxu0 %v5427_v52  ;;  %1859 = vmatpush1.bf16.msra.mxu1 %v5430_v53  ;;  %v5445_v52 = vld [vmem:[#allocation4 + $0x20c] ss:$36 sps:$4 sm:$0xff]   ;;  %v5448_v53 = vld [vmem:[#allocation4 + $0x214] ss:$36 sps:$4 sm:$0xff]  }
 0x3cc   :  { %1819 = vmatprep.subr.bf16.mxu0 %v5433_v26  ;;  %1860 = vmatprep.subr.bf16.mxu1 %v5436_v27  ;;  %7602 = vst [vmem:[#allocation85_spill] sm:$0xff] %v5445_v52  ;;  %7603 = vst [vmem:[#allocation87_spill] sm:$0xff] %v5448_v53  ;;  %v5451_v26 = vld [vmem:[#allocation4 + $0x208] ss:$36 sps:$4 sm:$0xff]   ;;  %v5454_v27 = vld [vmem:[#allocation4 + $0x210] ss:$36 sps:$4 sm:$0xff]  }
 0x3cd   :  { %7604 = vst [vmem:[#allocation89_spill] sm:$0xff] %v5451_v26  ;;  %7605 = vst [vmem:[#allocation95_spill] sm:$0xff] %v5454_v27 }
 0x3cf   :  { %1820 = vmatpush1.bf16.msra.mxu0 %v5439_v29  ;;  %1861 = vmatpush1.bf16.msra.mxu1 %v5442_v23  ;;  %v5457_v29 = vld [vmem:[#allocation4 + $0x254] ss:$36 sps:$4 sm:$0xff]   ;;  %v5460_v23 = vld [vmem:[#allocation4 + $0x25c] ss:$36 sps:$4 sm:$0xff]  }
 0x3d0   :  { %1821 = vmatprep.subr.bf16.mxu0 %v5445_v52  ;;  %1862 = vmatprep.subr.bf16.mxu1 %v5448_v53  ;;  %v5463_v52 = vld [vmem:[#allocation4 + $0x250] ss:$36 sps:$4 sm:$0xff]   ;;  %v5466_v53 = vld [vmem:[#allocation4 + $0x258] ss:$36 sps:$4 sm:$0xff]  }
 0x3d1   :  { %7606 = vst [vmem:[#allocation28_spill] sm:$0xff] %v5466_v53 }
 0x3d3   :  { %1822 = vmatpush1.bf16.msra.mxu0 %v5451_v26  ;;  %1863 = vmatpush1.bf16.msra.mxu1 %v5454_v27  ;;  %v5469_v26 = vld [vmem:[#allocation4 + $0x29c] ss:$36 sps:$4 sm:$0xff]   ;;  %v5472_v27 = vld [vmem:[#allocation4 + $0x2a4] ss:$36 sps:$4 sm:$0xff]  }
 0x3d4   :  { %1823 = vmatprep.subr.bf16.mxu0 %v5457_v29  ;;  %1864 = vmatprep.subr.bf16.mxu1 %v5460_v23  ;;  %7607 = vst [vmem:[#allocation29_spill] sm:$0xff] %v5472_v27 }
 0x3d7   :  { %1824 = vmatpush1.bf16.msra.mxu0 %v5463_v52  ;;  %1865 = vmatpush1.bf16.msra.mxu1 %v5466_v53 }
 0x3d8   :  { %1825 = vmatprep.subr.bf16.mxu0 %v5469_v26  ;;  %1866 = vmatprep.subr.bf16.mxu1 %v5472_v27 }
 0x3db   :  { %1826 = vmatpush1.bf16.msra.mxu0 %v7504_v11  ;;  %1867 = vmatpush1.bf16.msra.mxu1 %v7505_v63  ;;  %v7608_v11 = vld [vmem:[#allocation86_spill] sm:$0xff]  ;;  %v7609_v63 = vld [vmem:[#allocation88_spill] sm:$0xff] }
 0x3dc   :  { %1827 = vmatprep.subr.bf16.mxu0 %v7506_v33  ;;  %1868 = vmatprep.subr.bf16.mxu1 %v7507_v5  ;;  %v7610_v33 = vld [vmem:[#allocation8_spill] sm:$0xff]  ;;  %v7613_v5 = vld [vmem:[#allocation10_spill] sm:$0xff] }
 0x3df   :  { %1828 = vmatpush1.bf16.msra.mxu0 %v7508_v35  ;;  %1869 = vmatpush1.bf16.msra.mxu1 %v7509_v39  ;;  %v7615_v35 = vld [vmem:[#allocation12_spill] sm:$0xff]  ;;  %v7616_v39 = vld [vmem:[#allocation13_spill] sm:$0xff] }
 0x3e0   :  { %1829 = vmatprep.subr.bf16.mxu0 %v7510_v41  ;;  %1870 = vmatprep.subr.bf16.mxu1 %v7511_v43  ;;  %v7617_v41 = vld [vmem:[#allocation14_spill] sm:$0xff] }
 0x3e1   :  { %v7621_v43 = vld [vmem:[#allocation18_spill] sm:$0xff] }
 0x3e3   :  { %1830 = vmatpush1.bf16.msra.mxu0 %v7512_v45  ;;  %1871 = vmatpush1.bf16.msra.mxu1 %v7513_v46  ;;  %v7623_v45 = vld [vmem:[#allocation19_spill] sm:$0xff]  ;;  %v7626_v46 = vld [vmem:[#allocation106_spill] sm:$0xff] }
 0x3e4   :  { %1831 = vmatprep.subr.bf16.mxu0 %v7514_v47  ;;  %1872 = vmatprep.subr.bf16.mxu1 %v7515_v48  ;;  %v7627_v47 = vld [vmem:[#allocation26_spill] sm:$0xff]  ;;  %v7630_v48 = vld [vmem:[#allocation108_spill] sm:$0xff] }
 0x3e7   :  { %1832 = vmatpush1.bf16.msra.mxu0 %v7516_v49  ;;  %1873 = vmatpush1.bf16.msra.mxu1 %v7517_v4  ;;  %v7631_v49 = vld [vmem:[#allocation20_spill] sm:$0xff]  ;;  %v7633_v4 = vld [vmem:[#allocation109_spill] sm:$0xff] }
 0x3e8   :  { %1833 = vmatprep.subr.bf16.mxu0 %v7518_v37  ;;  %1874 = vmatprep.subr.bf16.mxu1 %v7519_v54  ;;  %v7634_v37 = vld [vmem:[#allocation110_spill] sm:$0xff] }
 0x3e9   :  { %v7635_v54 = vld [vmem:[#allocation34_spill] sm:$0xff] }
 0x3eb   :  { %1834 = vmatpush1.bf16.msra.mxu0 %v7520_v56  ;;  %1875 = vmatpush1.bf16.msra.mxu1 %v7521_v58  ;;  %v7636_v56 = vld [vmem:[#allocation35_spill] sm:$0xff] }
 0x3ec   :  { %1835 = vmatprep.subr.bf16.mxu0 %v4844_v3  ;;  %1876 = vmatprep.subr.bf16.mxu1 %v7522_v15  ;;  %v7611_v3 = vld [vmem:[#allocation90_spill] sm:$0xff]  ;;  %v7637_v58 = vld [vmem:[#allocation111_spill] sm:$0xff]  ;;  %v7638_v15 = vld [vmem:[#allocation112_spill] sm:$0xff] }
 0x3ef   :  { %1836 = vmatpush1.bf16.msra.mxu0 %v7523_v17  ;;  %1877 = vmatpush1.bf16.msra.mxu1 %v4852_v1  ;;  %v7612_v1 = vld [vmem:[#allocation9_spill] sm:$0xff]  ;;  %v7639_v17 = vld [vmem:[#allocation36_spill] sm:$0xff] }
 0x3f0   :  { %1837 = vmatprep.subr.bf16.mxu0 %v7524_v55  ;;  %1878 = vmatprep.subr.bf16.mxu1 %v7608_v11  ;;  %v7640_v55 = vld [vmem:[#allocation37_spill] sm:$0xff]  ;;  %v7645_v11 = vld [vmem:[#allocation40_spill] sm:$0xff] }
 0x3f3   :  { %1838 = vmatpush1.bf16.msra.mxu0 %v7526_v31  ;;  %1879 = vmatpush1.bf16.msra.mxu1 %v7609_v63  ;;  %v7641_v31 = vld [vmem:[#allocation113_spill] sm:$0xff] }
 0x3f4   :  { %3478 = vmatprep.subr.bf16.mxu0 %v7528_v20  ;;  %1976 = vmatprep.subr.bf16.mxu1 %v7610_v33  ;;  %v7614_v20 = vld [vmem:[#allocation11_spill] sm:$0xff]  ;;  %v7646_v63 = vld [vmem:[#allocation41_spill] sm:$0xff] }
 0x3f6   :  { %1840 = vmatmul.mubr.bf16.vlgmr.msra.gmra.mrb[40].mxu0 %v5359_v50  ;;  %1881 = vmatmul.mubr.bf16.vlgmr.msra.gmra.mrb[32].mxu1 %v5359_v50 }
 0x3f7   :  { %3479 = vmatpush3.bf16.msra.mxu0 %v7611_v3  ;;  %1921 = vmatprep.mubr.bf16.mxu0 %v5355_v40  ;;  %v7643_v40 = vld [vmem:[#allocation38_spill] sm:$0xff] }
 0x3f8   :  { %3480 = vmatprep.subr.bf16.mxu0 %v4875_v25  ;;  %1977 = vmatpush1.bf16.msra.mxu1 %v7612_v1  ;;  %v7618_v25 = vld [vmem:[#allocation15_spill] sm:$0xff]  ;;  %v7647_v3 = vld [vmem:[#allocation42_spill] sm:$0xff] }
 0x3f9   :  { %1978 = vmatprep.subr.bf16.mxu1 %v7613_v5 }
 0x3fb   :  { %3481 = vmatpush3.bf16.msra.mxu0 %v4881_v61  ;;  %v7619_v61 = vld [vmem:[#allocation16_spill] sm:$0xff] }
 0x3fc   :  { %3482 = vmatprep.subr.bf16.mxu0 %v4887_v21  ;;  %1979 = vmatpush1.bf16.msra.mxu1 %v7614_v20  ;;  %v7620_v21 = vld [vmem:[#allocation17_spill] sm:$0xff] }
 0x3fd   :  { %1980 = vmatprep.subr.bf16.mxu1 %v7615_v35 }
 0x3ff   :  { %3483 = vmatpush3.bf16.msra.mxu0 %v7535_v51  ;;  %v7642_v51 = vld [vmem:[#allocation114_spill] sm:$0xff] }
 0x400   :  { %3484 = vmatprep.subr.bf16.mxu0 %v4901_v62  ;;  %1981 = vmatpush1.bf16.msra.mxu1 %v7616_v39  ;;  %v7622_v62 = vld [vmem:[#allocation104_spill] sm:$0xff] }
 0x401   :  { %1982 = vmatprep.subr.bf16.mxu1 %v7617_v41 }
 0x403   :  { %3485 = vmatpush3.bf16.msra.mxu0 %v4906_v16  ;;  %v7624_v16 = vld [vmem:[#allocation24_spill] sm:$0xff] }
 0x404   :  { %3486 = vmatprep.subr.bf16.mxu0 %v4913_v57  ;;  %1983 = vmatpush1.bf16.msra.mxu1 %v7618_v25  ;;  %v7625_v57 = vld [vmem:[#allocation105_spill] sm:$0xff] }
 0x405   :  { %1984 = vmatprep.subr.bf16.mxu1 %v7619_v61 }
 0x407   :  { %3487 = vmatpush3.bf16.msra.mxu0 %v4930_v18  ;;  %v7628_v18 = vld [vmem:[#allocation27_spill] sm:$0xff] }
 0x408   :  { %3488 = vmatprep.subr.bf16.mxu0 %v4933_v10  ;;  %1985 = vmatpush1.bf16.msra.mxu1 %v7620_v21  ;;  %v7629_v10 = vld [vmem:[#allocation107_spill] sm:$0xff] }
 0x409   :  { %1986 = vmatprep.subr.bf16.mxu1 %v7621_v43 }
 0x40b   :  { %3489 = vmatpush3.bf16.msra.mxu0 %v4938_v24  ;;  %v7632_v24 = vld [vmem:[#allocation33_spill] sm:$0xff] }
 0x40c   :  { %3490 = vmatprep.subr.bf16.mxu0 %v7622_v62  ;;  %1987 = vmatpush1.bf16.msra.mxu1 %v7623_v45  ;;  %v7648_v62 = vld [vmem:[#allocation43_spill] sm:$0xff] }
 0x40d   :  { %1988 = vmatprep.subr.bf16.mxu1 %v7624_v16 }
 0x40f   :  { %3491 = vmatpush3.bf16.msra.mxu0 %v7625_v57  ;;  %v7649_v57 = vld [vmem:[#allocation44_spill] sm:$0xff] }
 0x410   :  { %3492 = vmatprep.subr.bf16.mxu0 %v7626_v46  ;;  %1989 = vmatpush1.bf16.msra.mxu1 %v7627_v47  ;;  %v7650_v46 = vld [vmem:[#allocation45_spill] sm:$0xff] }
 0x411   :  { %1990 = vmatprep.subr.bf16.mxu1 %v7628_v18 }
 0x413   :  { %3493 = vmatpush3.bf16.msra.mxu0 %v7629_v10  ;;  %v7651_v10 = vld [vmem:[#allocation46_spill] sm:$0xff] }
 0x414   :  { %2017 = vmatprep.subr.bf16.mxu0 %v7630_v48  ;;  %1991 = vmatpush1.bf16.msra.mxu1 %v7631_v49  ;;  %v7652_v48 = vld [vmem:[#allocation47_spill] sm:$0xff] }
 0x415   :  { %1992 = vmatprep.subr.bf16.mxu1 %v7632_v24 }
 0x416   :  { %1922 = vmatmul.mubr.bf16.vlgmr.msra.gmra.mrb[44].mxu0 %v5359_v50  ;;  %v7644_v50 = vld [vmem:[#allocation39_spill] sm:$0xff] }
 0x417   :  { %2018 = vmatpush1.bf16.msra.mxu0 %v7633_v4  ;;  %v7653_v4 = vld [vmem:[#allocation48_spill] sm:$0xff] }
 0x418   :  { %2019 = vmatprep.subr.bf16.mxu0 %v7634_v37  ;;  %1993 = vmatpush1.bf16.msra.mxu1 %v7635_v54  ;;  %v7654_v37 = vld [vmem:[#allocation49_spill] sm:$0xff] }
 0x419   :  { %1994 = vmatprep.subr.bf16.mxu1 %v7636_v56 }
 0x41b   :  { %2020 = vmatpush1.bf16.msra.mxu0 %v7637_v58  ;;  %v7655_v58 = vld [vmem:[#allocation50_spill] sm:$0xff] }
 0x41c   :  { %2021 = vmatprep.subr.bf16.mxu0 %v7638_v15  ;;  %1995 = vmatpush1.bf16.msra.mxu1 %v7639_v17  ;;  %v7656_v15 = vld [vmem:[#allocation51_spill] sm:$0xff] }
 0x41d   :  { %1996 = vmatprep.subr.bf16.mxu1 %v7640_v55 }
 0x41f   :  { %2022 = vmatpush1.bf16.msra.mxu0 %v7641_v31  ;;  %v7657_v31 = vld [vmem:[#allocation52_spill] sm:$0xff] }
 0x420   :  { %2023 = vmatprep.subr.bf16.mxu0 %v7642_v51  ;;  %1997 = vmatpush1.bf16.msra.mxu1 %v7643_v40  ;;  %v7658_v51 = vld [vmem:[#allocation53_spill] sm:$0xff] }
 0x421   :  { %1998 = vmatprep.subr.bf16.mxu1 %v7644_v50 }
 0x423   :  { %2024 = vmatpush1.bf16.msra.mxu0 %v7645_v11 }
 0x424   :  { %2025 = vmatprep.subr.bf16.mxu0 %v7646_v63  ;;  %1999 = vmatpush1.bf16.msra.mxu1 %v7647_v3  ;;  %v7684_v63 = vld [vmem:[#allocation31_spill] sm:$0xff] }
 0x425   :  { %2000 = vmatprep.subr.bf16.mxu1 %v7648_v62  ;;  %v7659_v62 = vld [vmem:[#allocation54_spill] sm:$0xff] }
 0x427   :  { %2026 = vmatpush1.bf16.msra.mxu0 %v7649_v57  ;;  %v5566_v57 = vld [vmem:[#allocation4 + $0x43c] ss:$36 sps:$4 sm:$0xff]  }
 0x428   :  { %2027 = vmatprep.subr.bf16.mxu0 %v7650_v46  ;;  %2001 = vmatpush1.bf16.msra.mxu1 %v7651_v10  ;;  %7660 = vst [vmem:[#allocation23_spill] sm:$0xff] %v5566_v57  ;;  %v7661_v10 = vld [vmem:[#allocation55_spill] sm:$0xff]  ;;  %v7674_v46 = vld [vmem:[#allocation66_spill] sm:$0xff] }
 0x429   :  { %2002 = vmatprep.subr.bf16.mxu1 %v7652_v48  ;;  %v7662_v48 = vld [vmem:[#allocation56_spill] sm:$0xff] }
 0x42b   :  { %2028 = vmatpush1.bf16.msra.mxu0 %v7653_v4  ;;  %v5571_v4 = vld [vmem:[#allocation4 + $0x438] ss:$36 sps:$4 sm:$0xff]  }
 0x42c   :  { %2029 = vmatprep.subr.bf16.mxu0 %v7654_v37  ;;  %2003 = vmatpush1.bf16.msra.mxu1 %v7655_v58  ;;  %7663 = vst [vmem:[#allocation86_spill] sm:$0xff] %v5571_v4  ;;  %v5574_v58 = vld [vmem:[#allocation4 + $0x14] ss:$36 sps:$4 sm:$0xff]   ;;  %v7672_v37 = vld [vmem:[#allocation64_spill] sm:$0xff] }
 0x42d   :  { %2004 = vmatprep.subr.bf16.mxu1 %v7656_v15  ;;  %7664 = vst [vmem:[#allocation88_spill] sm:$0xff] %v5574_v58  ;;  %v7668_v15 = vld [vmem:[#allocation60_spill] sm:$0xff] }
 0x42f   :  { %2030 = vmatpush1.bf16.msra.mxu0 %v7657_v31  ;;  %v7665_v31 = vld [vmem:[#allocation57_spill] sm:$0xff] }
 0x430   :  { %2031 = vmatprep.subr.bf16.mxu0 %v7658_v51  ;;  %2005 = vmatpush1.bf16.msra.mxu1 %v7659_v62  ;;  %v7666_v51 = vld [vmem:[#allocation58_spill] sm:$0xff]  ;;  %v7667_v62 = vld [vmem:[#allocation59_spill] sm:$0xff] }
 0x431   :  { %2006 = vmatprep.subr.bf16.mxu1 %v5566_v57  ;;  %v7669_v57 = vld [vmem:[#allocation61_spill] sm:$0xff] }
 0x433   :  { %2032 = vmatpush1.bf16.msra.mxu0 %v7661_v10  ;;  %v7670_v10 = vld [vmem:[#allocation62_spill] sm:$0xff] }
 0x434   :  { %2033 = vmatprep.subr.bf16.mxu0 %v7662_v48  ;;  %2007 = vmatpush1.bf16.msra.mxu1 %v5571_v4  ;;  %v7671_v48 = vld [vmem:[#allocation63_spill] sm:$0xff]  ;;  %v7673_v4 = vld [vmem:[#allocation65_spill] sm:$0xff] }
 0x435   :  { %2058 = vmatprep.subr.bf16.mxu1 %v5574_v58  ;;  %v7675_v58 = vld [vmem:[#allocation67_spill] sm:$0xff] }
 0x437   :  { %2034 = vmatpush1.bf16.msra.mxu0 %v7665_v31  ;;  %v7676_v31 = vld [vmem:[#allocation68_spill] sm:$0xff] }
 0x438   :  { %2035 = vmatprep.subr.bf16.mxu0 %v7666_v51  ;;  %v7677_v51 = vld [vmem:[#allocation69_spill] sm:$0xff] }
 0x43b   :  { %2036 = vmatpush1.bf16.msra.mxu0 %v7667_v62  ;;  %v7678_v62 = vld [vmem:[#allocation70_spill] sm:$0xff] }
 0x43c   :  { %2037 = vmatprep.subr.bf16.mxu0 %v7668_v15  ;;  %v7679_v15 = vld [vmem:[#allocation71_spill] sm:$0xff] }
 0x43f   :  { %2038 = vmatpush1.bf16.msra.mxu0 %v7669_v57  ;;  %v7680_v57 = vld [vmem:[#allocation72_spill] sm:$0xff] }
 0x440   :  { %2039 = vmatprep.subr.bf16.mxu0 %v7670_v10  ;;  %v7681_v10 = vld [vmem:[#allocation21_spill] sm:$0xff] }
 0x443   :  { %2040 = vmatpush1.bf16.msra.mxu0 %v7671_v48  ;;  %v7682_v48 = vld [vmem:[#allocation30_spill] sm:$0xff] }
 0x444   :  { %2041 = vmatprep.subr.bf16.mxu0 %v7672_v37  ;;  %v160_v3 = vadd.f32 %v7682_v48, %v7681_v10  ;;  %v7683_v37 = vld [vmem:[#allocation22_spill] sm:$0xff] }
 0x447   :  { %2042 = vmatpush1.bf16.msra.mxu0 %v7673_v4  ;;  %v162_v4 = vadd.f32 %v7684_v63, %v7683_v37  ;;  %v5600_v63 = vld [vmem:[%s6819_s4] ss:$0 sm:$0xff] }
 0x448   :  { %2043 = vmatprep.subr.bf16.mxu0 %v7674_v46  ;;  %7685 = vst [vmem:[#allocation8_spill] sm:$0xff] %v5600_v63 }
 0x44b   :  { %2044 = vmatpush1.bf16.msra.mxu0 %v7675_v58 }
 0x44c   :  { %2045 = vmatprep.subr.bf16.mxu0 %v7676_v31 }
 0x44f   :  { %2046 = vmatpush1.bf16.msra.mxu0 %v7677_v51 }
 0x450   :  { %2047 = vmatprep.subr.bf16.mxu0 %v7678_v62 }
 0x453   :  { %2048 = vmatpush1.bf16.msra.mxu0 %v7679_v15 }
 0x454   :  { %2099 = vmatprep.subr.bf16.mxu0 %v7680_v57 }
 0x489   :  { %v1759_v11 = vpop.f32.mrb[36].mxu0  ;;  %v1800_v46 = vpop.f32.mrb[28].mxu1 }
 0x48a   :  { %v1938_v50 = vadd.f32 %v1759_v11, %v160_v3  ;;  %v1761_v58 = vpop.f32.mrb[37].mxu0  ;;  %v1802_v40 = vpop.f32.mrb[29].mxu1  ;;  %v1948_v11 = vadd.f32 %v5600_v63, %v1800_v46  ;;  %v7686_v3 = vld [vmem:[#allocation25_spill] sm:$0xff] }
 0x48b   :  { %v1943_v31 = vadd.f32 %v1761_v58, %v162_v4  ;;  %v1763_v55 = vpop.f32.mrb[38].mxu0  ;;  %v1804_v51 = vpop.f32.mrb[30].mxu1 }
 0x48c   :  { %v1939_v17 = vmul.f32 0.5, %v1938_v50  ;;  %v1764_v62 = vpop.f32.mrb[39].mxu0  ;;  %v1805_v56 = vpop.f32.mrb[31].mxu1  ;;  %v230_v55 = vadd.f32 %v7686_v3, %v4665_v0  ;;  %v1929_v51 = vadd.f32 %v1802_v40, %v5041_v12 }
 0x48d   :  { %v1944_v15 = vmul.f32 0.5, %v1943_v31 }
 0x48e   :  { %3945 = vtanh.f32 %v1939_v17 }
 0x48f   :  { %3947 = vtanh.f32 %v1944_v15 }
 0x498   :  { %v3946_v57 = vpop.eup %3945 }
 0x499   :  { %v1941_v54 = vmul.f32 0.5, %v3946_v57  ;;  %v3948_v50 = vpop.eup %3947 }
 0x49a   :  { %v1946_v56 = vmul.f32 0.5, %v3948_v50 }
 0x49b   :  { %v1942_v48 = vadd.f32 0.5, %v1941_v54 }
 0x49c   :  { %v1947_v17 = vadd.f32 0.5, %v1946_v56 }
 0x49d   :  { %v1949_v4 = vmul.f32 %v1948_v11, %v1942_v48 }
 0x49e   :  { %v1952_v58 = vsub.f32 1.0, %v1947_v17  ;;  %v1954_v54 = vmul.f32 %v1947_v17, %v5344_v28 }
 0x49f   :  { %v1950_v62 = vadd.f32 %v1949_v4, %v230_v55 }
 0x4a1   :  { %3949 = vtanh.f32 %v1950_v62 }
 0x4ab   :  { %v3950_v15 = vpop.eup %3949 }
 0x4ac   :  { %v1953_v57 = vmul.f32 %v3950_v15, %v1952_v58 }
 0x4ae   :  { %v5606_v31 = vadd.f32 %v1954_v54, %v1953_v57 }
 0x4c9   :  { %v1841_v37 = vpop.f32.mrb[40].mxu0  ;;  %v1882_v46 = vpop.f32.mrb[32].mxu1 }
 0x4ca   :  { %v1930_v63 = vadd.f32 %v1841_v37, %v5045_v9  ;;  %v1956_v3 = vadd.f32 %v1929_v51, %v1882_v46  ;;  %v1843_v48 = vpop.f32.mrb[41].mxu0  ;;  %v1884_v11 = vpop.f32.mrb[33].mxu1 }
 0x4cb   :  { %v1845_v55 = vpop.f32.mrb[42].mxu0  ;;  %v1886_v4 = vpop.f32.mrb[34].mxu1  ;;  %v1931_v46 = vadd.f32 %v1843_v48, %v5056_v8  ;;  %v7688_v48 = vld [vmem:[#allocation74_spill] sm:$0xff] }
 0x4cc   :  { %v1961_v50 = vadd.f32 %v1930_v63, %v1884_v11  ;;  %v1846_v62 = vpop.f32.mrb[43].mxu0  ;;  %v1887_v56 = vpop.f32.mrb[35].mxu1  ;;  %v1957_v0 = vmul.f32 0.5, %v1956_v3 }
 0x4ce   :  { %3951 = vtanh.f32 %v1957_v0  ;;  %v1962_v58 = vmul.f32 0.5, %v1961_v50 }
 0x4d0   :  { %3953 = vtanh.f32 %v1962_v58 }
 0x4d8   :  { %v3952_v28 = vpop.eup %3951 }
 0x4d9   :  { %v1959_v17 = vmul.f32 0.5, %v3952_v28  ;;  %v7689_v28 = vld [vmem:[#allocation75_spill] sm:$0xff] }
 0x4da   :  { %v3954_v63 = vpop.eup %3953 }
 0x4db   :  { %v1960_v37 = vadd.f32 0.5, %v1959_v17  ;;  %v1964_v3 = vmul.f32 0.5, %v3954_v63  ;;  %v7690_v17 = vld [vmem:[#allocation76_spill] sm:$0xff]  ;;  %v7699_v63 = vld [vmem:[#allocation85_spill] sm:$0xff] }
 0x4dd   :  { %v1965_v0 = vadd.f32 0.5, %v1964_v3  ;;  %v7701_v3 = vld [vmem:[#allocation89_spill] sm:$0xff] }
 0x4df   :  { %v1970_v4 = vsub.f32 1.0, %v1965_v0  ;;  %v1972_v62 = vmul.f32 %v1965_v0, %v5351_v30  ;;  %v7687_v30 = vld [vmem:[#allocation73_spill] sm:$0xff]  ;;  %v7702_v0 = vld [vmem:[#allocation95_spill] sm:$0xff] }
 0x4e9   :  { %v3494_v15 = vpop.f32.mrb[44].mxu0 }
 0x4ea   :  { %v3495_v40 = vpop.f32.mrb[45].mxu0 }
 0x4eb   :  { %v3496_v57 = vadd.f32 %v3495_v40, %v3494_v15  ;;  %v3497_v54 = vpop.f32.mrb[46].mxu0  ;;  %v7691_v15 = vld [vmem:[#allocation77_spill] sm:$0xff]  ;;  %v7692_v40 = vld [vmem:[#allocation78_spill] sm:$0xff] }
 0x4ec   :  { %v3498_v12 = vpop.f32.mrb[47].mxu0  ;;  %v7694_v54 = vld [vmem:[#allocation80_spill] sm:$0xff] }
 0x4ed   :  { %v1966_v51 = vadd.f32 %v3496_v57, %v5052_v6  ;;  %v5621_v6 = vpack.c.bf16 %v5606_v31, %v5606_v31  ;;  %v7693_v57 = vld [vmem:[#allocation79_spill] sm:$0xff] }
 0x4ef   :  { %v1967_v55 = vmul.f32 %v1966_v51, %v1960_v37  ;;  %v7695_v37 = vld [vmem:[#allocation81_spill] sm:$0xff]  ;;  %v7696_v51 = vld [vmem:[#allocation82_spill] sm:$0xff] }
 0x4f1   :  { %v1968_v11 = vadd.f32 %v1967_v55, %v1931_v46  ;;  %v7697_v46 = vld [vmem:[#allocation83_spill] sm:$0xff]  ;;  %v7698_v55 = vld [vmem:[#allocation84_spill] sm:$0xff] }
 0x4f3   :  { %3955 = vtanh.f32 %v1968_v11  ;;  %v7700_v11 = vld [vmem:[#allocation87_spill] sm:$0xff] }
 0x4fd   :  { %v3956_v50 = vpop.eup %3955 }
 0x4fe   :  { %v1971_v56 = vmul.f32 %v3956_v50, %v1970_v4  ;;  %v5665_v4 = vld [vmem:[#allocation4 + $0x298] ss:$36 sps:$4 sm:$0xff]   ;;  %v5668_v50 = vld [vmem:[#allocation4 + $0x2a0] ss:$36 sps:$4 sm:$0xff]  }
 0x4ff   :  { %7703 = vst [vmem:[#allocation90_spill] sm:$0xff] %v5665_v4  ;;  %7704 = vst [vmem:[#allocation9_spill] sm:$0xff] %v5668_v50 }
 0x500   :  { %v5613_v58 = vadd.f32 %v1972_v62, %v1971_v56  ;;  %v5671_v62 = vld [vmem:[#allocation4 + $0x2e4] ss:$36 sps:$4 sm:$0xff]   ;;  %v5674_v56 = vld [vmem:[#allocation4 + $0x2ec] ss:$36 sps:$4 sm:$0xff]  }
 0x501   :  { %7705 = vst [vmem:[#allocation10_spill] sm:$0xff] %v5671_v62  ;;  %7706 = vst [vmem:[#allocation11_spill] sm:$0xff] %v5674_v56 }
 0x502   :  { %v5617_v12 = vpack.c.bf16 %v5613_v58, %v5613_v58 }
 0x504   :  { %2008 = vmatprep.mubr.bf16.mxu1 %v5617_v12  ;;  %2049 = vmatprep.mubr.bf16.mxu0 %v5617_v12 }
 0x505   :  { %2009 = vmatmul.mubr.bf16.vlgmr.msra.gmra.mrb[36].mxu1 %v5621_v6  ;;  %2050 = vmatmul.mubr.bf16.vlgmr.msra.gmra.mrb[48].mxu0 %v5621_v6 }
 0x506   :  { %2059 = vmatpush1.bf16.msra.mxu1 %v5365_v60  ;;  %2100 = vmatpush1.bf16.msra.mxu0 %v5368_v2 }
 0x507   :  { %2090 = vmatprep.mubr.bf16.mxu1 %v5617_v12  ;;  %2131 = vmatprep.mubr.bf16.mxu0 %v5617_v12 }
 0x508   :  { %2060 = vmatprep.subr.bf16.mxu1 %v5373_v34  ;;  %2101 = vmatprep.subr.bf16.mxu0 %v5376_v7 }
 0x50a   :  { %2061 = vmatpush1.bf16.msra.mxu1 %v5379_v36  ;;  %2102 = vmatpush1.bf16.msra.mxu0 %v5382_v38 }
 0x50b   :  { %2062 = vmatprep.subr.bf16.mxu1 %v5385_v42  ;;  %2103 = vmatprep.subr.bf16.mxu0 %v5388_v13 }
 0x50e   :  { %2063 = vmatpush1.bf16.msra.mxu1 %v5391_v14  ;;  %2104 = vmatpush1.bf16.msra.mxu0 %v5394_v22 }
 0x50f   :  { %2064 = vmatprep.subr.bf16.mxu1 %v5397_v32  ;;  %2105 = vmatprep.subr.bf16.mxu0 %v5400_v59 }
 0x512   :  { %2065 = vmatpush1.bf16.msra.mxu1 %v5403_v44  ;;  %2106 = vmatpush1.bf16.msra.mxu0 %v5406_v19 }
 0x513   :  { %2066 = vmatprep.subr.bf16.mxu1 %v7687_v30  ;;  %2107 = vmatprep.subr.bf16.mxu0 %v7688_v48 }
 0x516   :  { %2067 = vmatpush1.bf16.msra.mxu1 %v7689_v28  ;;  %2108 = vmatpush1.bf16.msra.mxu0 %v7690_v17 }
 0x517   :  { %2068 = vmatprep.subr.bf16.mxu1 %v7691_v15  ;;  %2109 = vmatprep.subr.bf16.mxu0 %v7692_v40 }
 0x51a   :  { %2069 = vmatpush1.bf16.msra.mxu1 %v7693_v57  ;;  %2110 = vmatpush1.bf16.msra.mxu0 %v7694_v54 }
 0x51b   :  { %2070 = vmatprep.subr.bf16.mxu1 %v7695_v37  ;;  %2111 = vmatprep.subr.bf16.mxu0 %v7696_v51 }
 0x51e   :  { %2071 = vmatpush1.bf16.msra.mxu1 %v7697_v46  ;;  %2112 = vmatpush1.bf16.msra.mxu0 %v7698_v55 }
 0x51f   :  { %2072 = vmatprep.subr.bf16.mxu1 %v7699_v63  ;;  %2113 = vmatprep.subr.bf16.mxu0 %v7700_v11 }
 0x522   :  { %2073 = vmatpush1.bf16.msra.mxu1 %v7701_v3  ;;  %2114 = vmatpush1.bf16.msra.mxu0 %v7702_v0 }
 0x523   :  { %2074 = vmatprep.subr.bf16.mxu1 %v5457_v29  ;;  %2115 = vmatprep.subr.bf16.mxu0 %v5460_v23 }
 0x526   :  { %2075 = vmatpush1.bf16.msra.mxu1 %v5463_v52  ;;  %2116 = vmatpush1.bf16.msra.mxu0 %v5466_v53  ;;  %v5677_v53 = vld [vmem:[#allocation4 + $0x2e0] ss:$36 sps:$4 sm:$0xff]  }
 0x527   :  { %2076 = vmatprep.subr.bf16.mxu1 %v5469_v26  ;;  %2117 = vmatprep.subr.bf16.mxu0 %v5472_v27  ;;  %7707 = vst [vmem:[#allocation12_spill] sm:$0xff] %v5677_v53  ;;  %v5680_v27 = vld [vmem:[#allocation4 + $0x2e8] ss:$36 sps:$4 sm:$0xff]  }
 0x528   :  { %7708 = vst [vmem:[#allocation13_spill] sm:$0xff] %v5680_v27 }
 0x52a   :  { %2077 = vmatpush1.bf16.msra.mxu1 %v5665_v4  ;;  %2118 = vmatpush1.bf16.msra.mxu0 %v5668_v50  ;;  %v5683_v4 = vld [vmem:[#allocation4 + $0x32c] ss:$36 sps:$4 sm:$0xff]   ;;  %v5686_v50 = vld [vmem:[#allocation4 + $0x334] ss:$36 sps:$4 sm:$0xff]  }
 0x52b   :  { %2078 = vmatprep.subr.bf16.mxu1 %v5671_v62  ;;  %2119 = vmatprep.subr.bf16.mxu0 %v5674_v56  ;;  %7709 = vst [vmem:[#allocation14_spill] sm:$0xff] %v5683_v4  ;;  %7710 = vst [vmem:[#allocation15_spill] sm:$0xff] %v5686_v50  ;;  %v5689_v62 = vld [vmem:[#allocation4 + $0x328] ss:$36 sps:$4 sm:$0xff]   ;;  %v5692_v56 = vld [vmem:[#allocation4 + $0x330] ss:$36 sps:$4 sm:$0xff]  }
 0x52c   :  { %7711 = vst [vmem:[#allocation16_spill] sm:$0xff] %v5689_v62  ;;  %7712 = vst [vmem:[#allocation17_spill] sm:$0xff] %v5692_v56 }
 0x52e   :  { %2079 = vmatpush1.bf16.msra.mxu1 %v5677_v53  ;;  %2120 = vmatpush1.bf16.msra.mxu0 %v5680_v27  ;;  %v5695_v53 = vld [vmem:[#allocation4 + $0x374] ss:$36 sps:$4 sm:$0xff]   ;;  %v5698_v27 = vld [vmem:[#allocation4 + $0x37c] ss:$36 sps:$4 sm:$0xff]  }
 0x52f   :  { %2080 = vmatprep.subr.bf16.mxu1 %v5683_v4  ;;  %2121 = vmatprep.subr.bf16.mxu0 %v5686_v50  ;;  %7713 = vst [vmem:[#allocation18_spill] sm:$0xff] %v5695_v53  ;;  %7714 = vst [vmem:[#allocation104_spill] sm:$0xff] %v5698_v27  ;;  %v5701_v4 = vld [vmem:[#allocation4 + $0x370] ss:$36 sps:$4 sm:$0xff]   ;;  %v5704_v50 = vld [vmem:[#allocation4 + $0x378] ss:$36 sps:$4 sm:$0xff]  }
 0x530   :  { %7715 = vst [vmem:[#allocation19_spill] sm:$0xff] %v5701_v4  ;;  %7716 = vst [vmem:[#allocation24_spill] sm:$0xff] %v5704_v50 }
 0x532   :  { %2081 = vmatpush1.bf16.msra.mxu1 %v5689_v62  ;;  %2122 = vmatpush1.bf16.msra.mxu0 %v5692_v56  ;;  %v5707_v62 = vld [vmem:[#allocation4 + $0x3bc] ss:$36 sps:$4 sm:$0xff]   ;;  %v5710_v56 = vld [vmem:[#allocation4 + $0x3c4] ss:$36 sps:$4 sm:$0xff]  }
 0x533   :  { %2082 = vmatprep.subr.bf16.mxu1 %v5695_v53  ;;  %2123 = vmatprep.subr.bf16.mxu0 %v5698_v27  ;;  %7717 = vst [vmem:[#allocation105_spill] sm:$0xff] %v5707_v62  ;;  %7718 = vst [vmem:[#allocation106_spill] sm:$0xff] %v5710_v56  ;;  %v5713_v53 = vld [vmem:[#allocation4 + $0x3b8] ss:$36 sps:$4 sm:$0xff]   ;;  %v5716_v27 = vld [vmem:[#allocation4 + $0x3c0] ss:$36 sps:$4 sm:$0xff]  }
 0x534   :  { %7719 = vst [vmem:[#allocation26_spill] sm:$0xff] %v5713_v53  ;;  %7720 = vst [vmem:[#allocation27_spill] sm:$0xff] %v5716_v27 }
 0x536   :  { %2083 = vmatpush1.bf16.msra.mxu1 %v5701_v4  ;;  %2124 = vmatpush1.bf16.msra.mxu0 %v5704_v50  ;;  %v5719_v4 = vld [vmem:[#allocation4 + $0x404] ss:$36 sps:$4 sm:$0xff]   ;;  %v5722_v50 = vld [vmem:[#allocation4 + $0x40c] ss:$36 sps:$4 sm:$0xff]  }
 0x537   :  { %2084 = vmatprep.subr.bf16.mxu1 %v5707_v62  ;;  %2125 = vmatprep.subr.bf16.mxu0 %v5710_v56  ;;  %7721 = vst [vmem:[#allocation107_spill] sm:$0xff] %v5719_v4  ;;  %7722 = vst [vmem:[#allocation108_spill] sm:$0xff] %v5722_v50  ;;  %v5725_v62 = vld [vmem:[#allocation4 + $0x400] ss:$36 sps:$4 sm:$0xff]   ;;  %v5728_v56 = vld [vmem:[#allocation4 + $0x408] ss:$36 sps:$4 sm:$0xff]  }
 0x538   :  { %7723 = vst [vmem:[#allocation20_spill] sm:$0xff] %v5725_v62 }
 0x53a   :  { %2085 = vmatpush1.bf16.msra.mxu1 %v5713_v53  ;;  %2126 = vmatpush1.bf16.msra.mxu0 %v5716_v27  ;;  %v5731_v53 = vld [vmem:[#allocation4 + $0x44c] ss:$36 sps:$4 sm:$0xff]   ;;  %v5734_v27 = vld [vmem:[#allocation4 + $0x454] ss:$36 sps:$4 sm:$0xff]  }
 0x53b   :  { %2086 = vmatprep.subr.bf16.mxu1 %v5719_v4  ;;  %2127 = vmatprep.subr.bf16.mxu0 %v5722_v50  ;;  %7724 = vst [vmem:[#allocation33_spill] sm:$0xff] %v5731_v53  ;;  %v5737_v4 = vld [vmem:[#allocation4 + $0x448] ss:$36 sps:$4 sm:$0xff]   ;;  %v5740_v50 = vld [vmem:[#allocation4 + $0x450] ss:$36 sps:$4 sm:$0xff]  }
 0x53c   :  { %7725 = vst [vmem:[#allocation109_spill] sm:$0xff] %v5737_v4 }
 0x53e   :  { %2087 = vmatpush1.bf16.msra.mxu1 %v5725_v62  ;;  %2128 = vmatpush1.bf16.msra.mxu0 %v5728_v56  ;;  %v5743_v62 = vld [vmem:[#allocation4 + $0x260] ss:$36 sps:$4 sm:$0xff]  }
 0x53f   :  { %2088 = vmatprep.subr.bf16.mxu1 %v5731_v53  ;;  %2129 = vmatprep.subr.bf16.mxu0 %v5734_v27  ;;  %7726 = vst [vmem:[#allocation110_spill] sm:$0xff] %v5743_v62  ;;  %v5749_v53 = vld [vmem:[#allocation4 + $0x20] ss:$36 sps:$4 sm:$0xff]  }
 0x540   :  { %7727 = vst [vmem:[#allocation111_spill] sm:$0xff] %v5749_v53 }
 0x542   :  { %2089 = vmatpush1.bf16.msra.mxu1 %v5737_v4  ;;  %2130 = vmatpush1.bf16.msra.mxu0 %v5740_v50  ;;  %v5753_v4 = vld [vmem:[#allocation4 + $0x2a8] ss:$36 sps:$4 sm:$0xff]  }
 0x543   :  { %3500 = vmatprep.subr.bf16.mxu1 %v5743_v62  ;;  %2227 = vmatprep.subr.bf16.mxu0 %v7610_v33  ;;  %7728 = vst [vmem:[#allocation112_spill] sm:$0xff] %v5753_v4  ;;  %v5758_v62 = vld [vmem:[#allocation4 + $0x68] ss:$36 sps:$4 sm:$0xff]   ;;  %v5761_v33 = vld [vmem:[#allocation4 + $0x2f0] ss:$36 sps:$4 sm:$0xff]  }
 0x544   :  { %7729 = vst [vmem:[#allocation113_spill] sm:$0xff] %v5758_v62  ;;  %7730 = vst [vmem:[#allocation114_spill] sm:$0xff] %v5761_v33 }
 0x545   :  { %2091 = vmatmul.mubr.bf16.vlgmr.msra.gmra.mrb[40].mxu1 %v5621_v6  ;;  %2132 = vmatmul.mubr.bf16.vlgmr.msra.gmra.mrb[52].mxu0 %v5621_v6 }
 0x546   :  { %3501 = vmatpush3.bf16.msra.mxu1 %v5749_v53  ;;  %2172 = vmatprep.mubr.bf16.mxu1 %v5617_v12  ;;  %v5766_v12 = vld [vmem:[#allocation4 + $0xb0] ss:$36 sps:$4 sm:$0xff]  }
 0x547   :  { %3502 = vmatprep.subr.bf16.mxu1 %v5753_v4  ;;  %2228 = vmatpush1.bf16.msra.mxu0 %v7612_v1  ;;  %7731 = vst [vmem:[#allocation30_spill] sm:$0xff] %v5766_v12  ;;  %v5769_v4 = vld [vmem:[#allocation4 + $0x338] ss:$36 sps:$4 sm:$0xff]  }
 0x548   :  { %2229 = vmatprep.subr.bf16.mxu0 %v7613_v5  ;;  %7732 = vst [vmem:[#allocation31_spill] sm:$0xff] %v5769_v4  ;;  %v5774_v1 = vld [vmem:[#allocation4 + $0xf8] ss:$36 sps:$4 sm:$0xff]   ;;  %v5777_v5 = vld [vmem:[#allocation4 + $0x380] ss:$36 sps:$4 sm:$0xff]  }
 0x549   :  { %7733 = vst [vmem:[#allocation25_spill] sm:$0xff] %v5774_v1  ;;  %7734 = vst [vmem:[#allocation73_spill] sm:$0xff] %v5777_v5 }
 0x54a   :  { %3503 = vmatpush3.bf16.msra.mxu1 %v5758_v62 }
 0x54b   :  { %3504 = vmatprep.subr.bf16.mxu1 %v5761_v33  ;;  %2230 = vmatpush1.bf16.msra.mxu0 %v7614_v20  ;;  %v5782_v20 = vld [vmem:[#allocation4 + $0x140] ss:$36 sps:$4 sm:$0xff]  }
 0x54c   :  { %2231 = vmatprep.subr.bf16.mxu0 %v7615_v35  ;;  %7735 = vst [vmem:[#allocation74_spill] sm:$0xff] %v5782_v20  ;;  %v5785_v35 = vld [vmem:[#allocation4 + $0x3c8] ss:$36 sps:$4 sm:$0xff]  }
 0x54d   :  { %7736 = vst [vmem:[#allocation75_spill] sm:$0xff] %v5785_v35 }
 0x54e   :  { %3505 = vmatpush3.bf16.msra.mxu1 %v5766_v12 }
 0x54f   :  { %3506 = vmatprep.subr.bf16.mxu1 %v5769_v4  ;;  %2232 = vmatpush1.bf16.msra.mxu0 %v7616_v39  ;;  %v5790_v39 = vld [vmem:[#allocation4 + $0x188] ss:$36 sps:$4 sm:$0xff]  }
 0x550   :  { %2233 = vmatprep.subr.bf16.mxu0 %v7617_v41  ;;  %7737 = vst [vmem:[#allocation76_spill] sm:$0xff] %v5790_v39  ;;  %v5793_v41 = vld [vmem:[#allocation4 + $0x410] ss:$36 sps:$4 sm:$0xff]  }
 0x551   :  { %7738 = vst [vmem:[#allocation77_spill] sm:$0xff] %v5793_v41 }
 0x552   :  { %3507 = vmatpush3.bf16.msra.mxu1 %v5774_v1 }
 0x553   :  { %3508 = vmatprep.subr.bf16.mxu1 %v5777_v5  ;;  %2234 = vmatpush1.bf16.msra.mxu0 %v7618_v25  ;;  %v5798_v25 = vld [vmem:[#allocation4 + $0x1d0] ss:$36 sps:$4 sm:$0xff]  }
 0x554   :  { %2235 = vmatprep.subr.bf16.mxu0 %v7619_v61  ;;  %7739 = vst [vmem:[#allocation78_spill] sm:$0xff] %v5798_v25  ;;  %v5801_v61 = vld [vmem:[#allocation4 + $0x458] ss:$36 sps:$4 sm:$0xff]  }
 0x555   :  { %7740 = vst [vmem:[#allocation79_spill] sm:$0xff] %v5801_v61 }
 0x556   :  { %3509 = vmatpush3.bf16.msra.mxu1 %v5782_v20 }
 0x557   :  { %3510 = vmatprep.subr.bf16.mxu1 %v5785_v35  ;;  %2236 = vmatpush1.bf16.msra.mxu0 %v7620_v21  ;;  %v5806_v21 = vld [vmem:[#allocation4 + $0x218] ss:$36 sps:$4 sm:$0xff]  }
 0x558   :  { %2237 = vmatprep.subr.bf16.mxu0 %v7621_v43  ;;  %7741 = vst [vmem:[#allocation80_spill] sm:$0xff] %v5806_v21  ;;  %v5809_v43 = vld [vmem:[#allocation4 + $0xc] ss:$36 sps:$4 sm:$0xff]  }
 0x559   :  { %7742 = vst [vmem:[#allocation81_spill] sm:$0xff] %v5809_v43 }
 0x55a   :  { %3511 = vmatpush3.bf16.msra.mxu1 %v5790_v39 }
 0x55b   :  { %3512 = vmatprep.subr.bf16.mxu1 %v5793_v41  ;;  %2238 = vmatpush1.bf16.msra.mxu0 %v7623_v45  ;;  %v5815_v45 = vld [vmem:[#allocation4 + $0x8] ss:$36 sps:$4 sm:$0xff]  }
 0x55c   :  { %2239 = vmatprep.subr.bf16.mxu0 %v7624_v16  ;;  %7743 = vst [vmem:[#allocation82_spill] sm:$0xff] %v5815_v45  ;;  %v5818_v16 = vld [vmem:[#allocation4 + $0x54] ss:$36 sps:$4 sm:$0xff]   ;;  %v7793_v41 = vld [vmem:[#allocation92_spill] sm:$0xff] }
 0x55d   :  { %7744 = vst [vmem:[#allocation83_spill] sm:$0xff] %v5818_v16 }
 0x55e   :  { %3513 = vmatpush3.bf16.msra.mxu1 %v5798_v25  ;;  %v7762_v25 = vld [vmem:[#allocation47_spill] sm:$0xff] }
 0x55f   :  { %3514 = vmatprep.subr.bf16.mxu1 %v5801_v61  ;;  %2240 = vmatpush1.bf16.msra.mxu0 %v7627_v47  ;;  %v7745_v47 = vld [vmem:[#allocation34_spill] sm:$0xff]  ;;  %v7760_v61 = vld [vmem:[#allocation45_spill] sm:$0xff] }
 0x560   :  { %2241 = vmatprep.subr.bf16.mxu0 %v7628_v18  ;;  %v7746_v18 = vld [vmem:[#allocation35_spill] sm:$0xff] }
 0x562   :  { %3515 = vmatpush3.bf16.msra.mxu1 %v5806_v21  ;;  %v5823_v21 = vld [vmem:[#allocation4 + $0x50] ss:$36 sps:$4 sm:$0xff]  }
 0x563   :  { %2268 = vmatprep.subr.bf16.mxu1 %v5809_v43  ;;  %2242 = vmatpush1.bf16.msra.mxu0 %v7631_v49  ;;  %7747 = vst [vmem:[#allocation84_spill] sm:$0xff] %v5823_v21  ;;  %v5826_v49 = vld [vmem:[#allocation4 + $0x9c] ss:$36 sps:$4 sm:$0xff]   ;;  %v7756_v43 = vld [vmem:[#allocation41_spill] sm:$0xff] }
 0x564   :  { %2243 = vmatprep.subr.bf16.mxu0 %v7632_v24  ;;  %7748 = vst [vmem:[#allocation85_spill] sm:$0xff] %v5826_v49  ;;  %v7749_v24 = vld [vmem:[#allocation36_spill] sm:$0xff] }
 0x565   :  { %2173 = vmatmul.mubr.bf16.vlgmr.msra.gmra.mrb[44].mxu1 %v5621_v6  ;;  %v7750_v6 = vld [vmem:[#allocation37_spill] sm:$0xff] }
 0x566   :  { %2269 = vmatpush1.bf16.msra.mxu1 %v5815_v45  ;;  %v5831_v45 = vld [vmem:[#allocation4 + $0x98] ss:$36 sps:$4 sm:$0xff]  }
 0x567   :  { %2270 = vmatprep.subr.bf16.mxu1 %v5818_v16  ;;  %2244 = vmatpush1.bf16.msra.mxu0 %v7745_v47  ;;  %7751 = vst [vmem:[#allocation87_spill] sm:$0xff] %v5831_v45  ;;  %v5834_v16 = vld [vmem:[#allocation4 + $0xe4] ss:$36 sps:$4 sm:$0xff]   ;;  %v7753_v47 = vld [vmem:[#allocation38_spill] sm:$0xff] }
 0x568   :  { %2245 = vmatprep.subr.bf16.mxu0 %v7746_v18  ;;  %7752 = vst [vmem:[#allocation89_spill] sm:$0xff] %v5834_v16  ;;  %v7754_v18 = vld [vmem:[#allocation39_spill] sm:$0xff] }
 0x56a   :  { %2271 = vmatpush1.bf16.msra.mxu1 %v5823_v21  ;;  %v7755_v21 = vld [vmem:[#allocation40_spill] sm:$0xff] }
 0x56b   :  { %2272 = vmatprep.subr.bf16.mxu1 %v5826_v49  ;;  %2246 = vmatpush1.bf16.msra.mxu0 %v7749_v24  ;;  %v7757_v49 = vld [vmem:[#allocation42_spill] sm:$0xff]  ;;  %v7758_v24 = vld [vmem:[#allocation43_spill] sm:$0xff] }
 0x56c   :  { %2247 = vmatprep.subr.bf16.mxu0 %v7750_v6  ;;  %v7759_v6 = vld [vmem:[#allocation44_spill] sm:$0xff] }
 0x56e   :  { %2273 = vmatpush1.bf16.msra.mxu1 %v5831_v45  ;;  %v7761_v45 = vld [vmem:[#allocation46_spill] sm:$0xff] }
 0x56f   :  { %2274 = vmatprep.subr.bf16.mxu1 %v5834_v16  ;;  %2248 = vmatpush1.bf16.msra.mxu0 %v7753_v47  ;;  %v7763_v16 = vld [vmem:[#allocation48_spill] sm:$0xff]  ;;  %v7764_v47 = vld [vmem:[#allocation49_spill] sm:$0xff] }
 0x570   :  { %2249 = vmatprep.subr.bf16.mxu0 %v7754_v18  ;;  %v7765_v18 = vld [vmem:[#allocation50_spill] sm:$0xff] }
 0x572   :  { %2275 = vmatpush1.bf16.msra.mxu1 %v7755_v21  ;;  %v7766_v21 = vld [vmem:[#allocation51_spill] sm:$0xff] }
 0x573   :  { %2276 = vmatprep.subr.bf16.mxu1 %v7756_v43  ;;  %2250 = vmatpush1.bf16.msra.mxu0 %v7757_v49  ;;  %v7767_v43 = vld [vmem:[#allocation52_spill] sm:$0xff]  ;;  %v7768_v49 = vld [vmem:[#allocation53_spill] sm:$0xff] }
 0x574   :  { %2251 = vmatprep.subr.bf16.mxu0 %v7758_v24  ;;  %v7769_v24 = vld [vmem:[#allocation54_spill] sm:$0xff] }
 0x576   :  { %2277 = vmatpush1.bf16.msra.mxu1 %v7759_v6  ;;  %v7770_v6 = vld [vmem:[#allocation23_spill] sm:$0xff] }
 0x577   :  { %2278 = vmatprep.subr.bf16.mxu1 %v7760_v61  ;;  %2252 = vmatpush1.bf16.msra.mxu0 %v7761_v45  ;;  %v7771_v61 = vld [vmem:[#allocation55_spill] sm:$0xff]  ;;  %v7772_v45 = vld [vmem:[#allocation56_spill] sm:$0xff] }
 0x578   :  { %2253 = vmatprep.subr.bf16.mxu0 %v7762_v25  ;;  %v7773_v25 = vld [vmem:[#allocation86_spill] sm:$0xff] }
 0x57a   :  { %2279 = vmatpush1.bf16.msra.mxu1 %v7763_v16  ;;  %v7774_v16 = vld [vmem:[#allocation88_spill] sm:$0xff] }
 0x57b   :  { %2280 = vmatprep.subr.bf16.mxu1 %v7764_v47  ;;  %2254 = vmatpush1.bf16.msra.mxu0 %v7765_v18  ;;  %v7775_v47 = vld [vmem:[#allocation57_spill] sm:$0xff]  ;;  %v7776_v18 = vld [vmem:[#allocation58_spill] sm:$0xff] }
 0x57c   :  { %2255 = vmatprep.subr.bf16.mxu0 %v7766_v21  ;;  %v7777_v21 = vld [vmem:[#allocation59_spill] sm:$0xff] }
 0x57e   :  { %2281 = vmatpush1.bf16.msra.mxu1 %v7767_v43  ;;  %v7778_v43 = vld [vmem:[#allocation60_spill] sm:$0xff] }
 0x57f   :  { %2282 = vmatprep.subr.bf16.mxu1 %v7768_v49  ;;  %2256 = vmatpush1.bf16.msra.mxu0 %v7769_v24  ;;  %v7779_v49 = vld [vmem:[#allocation61_spill] sm:$0xff]  ;;  %v7780_v24 = vld [vmem:[#allocation62_spill] sm:$0xff] }
 0x580   :  { %2257 = vmatprep.subr.bf16.mxu0 %v7770_v6  ;;  %v7781_v6 = vld [vmem:[#allocation63_spill] sm:$0xff] }
 0x582   :  { %2283 = vmatpush1.bf16.msra.mxu1 %v7771_v61  ;;  %v7782_v61 = vld [vmem:[#allocation64_spill] sm:$0xff] }
 0x583   :  { %2284 = vmatprep.subr.bf16.mxu1 %v7772_v45  ;;  %2258 = vmatpush1.bf16.msra.mxu0 %v7773_v25  ;;  %v7783_v45 = vld [vmem:[#allocation65_spill] sm:$0xff]  ;;  %v7784_v25 = vld [vmem:[#allocation66_spill] sm:$0xff] }
 0x584   :  { %2309 = vmatprep.subr.bf16.mxu0 %v7774_v16  ;;  %v7785_v16 = vld [vmem:[#allocation67_spill] sm:$0xff] }
 0x586   :  { %2285 = vmatpush1.bf16.msra.mxu1 %v7775_v47  ;;  %v7786_v47 = vld [vmem:[#allocation68_spill] sm:$0xff] }
 0x587   :  { %2286 = vmatprep.subr.bf16.mxu1 %v7776_v18  ;;  %v7787_v18 = vld [vmem:[#allocation69_spill] sm:$0xff] }
 0x58a   :  { %2287 = vmatpush1.bf16.msra.mxu1 %v7777_v21  ;;  %v7788_v21 = vld [vmem:[#allocation70_spill] sm:$0xff] }
 0x58b   :  { %2288 = vmatprep.subr.bf16.mxu1 %v7778_v43  ;;  %v7789_v43 = vld [vmem:[#allocation71_spill] sm:$0xff] }
 0x58e   :  { %2289 = vmatpush1.bf16.msra.mxu1 %v7779_v49  ;;  %v7790_v49 = vld [vmem:[#allocation72_spill] sm:$0xff] }
 0x58f   :  { %2290 = vmatprep.subr.bf16.mxu1 %v7780_v24 }
 0x592   :  { %2291 = vmatpush1.bf16.msra.mxu1 %v7781_v6  ;;  %v7791_v6 = vld [vmem:[#allocation91_spill] sm:$0xff] }
 0x593   :  { %2292 = vmatprep.subr.bf16.mxu1 %v7782_v61  ;;  %v166_v24 = vadd.f32 %v7791_v6, %v7681_v10  ;;  %v7792_v61 = vld [vmem:[#allocation22_spill] sm:$0xff]  ;;  %v7794_v10 = vld [vmem:[#allocation8_spill] sm:$0xff] }
 0x596   :  { %2293 = vmatpush1.bf16.msra.mxu1 %v7783_v45  ;;  %v168_v45 = vadd.f32 %v7793_v41, %v7792_v61  ;;  %v7795_v41 = vld [vmem:[#allocation32_spill] sm:$0xff]  ;;  %v7796_v61 = vld [vmem:[#allocation99_spill] sm:$0xff] }
 0x597   :  { %2294 = vmatprep.subr.bf16.mxu1 %v7784_v25  ;;  %v235_v62 = vadd.f32 %v7796_v61, %v7795_v41 }
 0x59a   :  { %2295 = vmatpush1.bf16.msra.mxu1 %v7785_v16 }
 0x59b   :  { %2296 = vmatprep.subr.bf16.mxu1 %v7786_v47 }
 0x59e   :  { %2297 = vmatpush1.bf16.msra.mxu1 %v7787_v18 }
 0x59f   :  { %2298 = vmatprep.subr.bf16.mxu1 %v7788_v21 }
 0x5a2   :  { %2299 = vmatpush1.bf16.msra.mxu1 %v7789_v43 }
 0x5a3   :  { %2350 = vmatprep.subr.bf16.mxu1 %v7790_v49 }
 0x5d8   :  { %v2010_v39 = vpop.f32.mrb[36].mxu1  ;;  %v2051_v25 = vpop.f32.mrb[48].mxu0 }
 0x5d9   :  { %v2189_v35 = vadd.f32 %v2010_v39, %v166_v24  ;;  %v2012_v16 = vpop.f32.mrb[37].mxu1  ;;  %v2053_v20 = vpop.f32.mrb[49].mxu0  ;;  %v2199_v33 = vadd.f32 %v7794_v10, %v2051_v25 }
 0x5da   :  { %v2194_v47 = vadd.f32 %v2012_v16, %v168_v45  ;;  %v2014_v5 = vpop.f32.mrb[38].mxu1  ;;  %v2055_v18 = vpop.f32.mrb[50].mxu0 }
 0x5db   :  { %v2190_v1 = vmul.f32 0.5, %v2189_v35  ;;  %v2015_v21 = vpop.f32.mrb[39].mxu1  ;;  %v2056_v4 = vpop.f32.mrb[51].mxu0  ;;  %v7797_v18 = vld [vmem:[#allocation7_spill] sm:$0xff] }
 0x5dc   :  { %v2195_v43 = vmul.f32 0.5, %v2194_v47 }
 0x5dd   :  { %3957 = vtanh.f32 %v2190_v1 }
 0x5de   :  { %3959 = vtanh.f32 %v2195_v43 }
 0x5e7   :  { %v3958_v49 = vpop.eup %3957 }
 0x5e8   :  { %v2192_v12 = vmul.f32 0.5, %v3958_v49  ;;  %v3960_v24 = vpop.eup %3959 }
 0x5e9   :  { %v2197_v5 = vmul.f32 0.5, %v3960_v24 }
 0x5ea   :  { %v2193_v6 = vadd.f32 0.5, %v2192_v12  ;;  %v2180_v12 = vadd.f32 %v2053_v20, %v7797_v18 }
 0x5eb   :  { %v2198_v45 = vadd.f32 0.5, %v2197_v5 }
 0x5ec   :  { %v2200_v39 = vmul.f32 %v2199_v33, %v2193_v6 }
 0x5ed   :  { %v2203_v35 = vsub.f32 1.0, %v2198_v45  ;;  %v2205_v1 = vmul.f32 %v2198_v45, %v5606_v31 }
 0x5ee   :  { %v2201_v53 = vadd.f32 %v2200_v39, %v235_v62 }
 0x5f0   :  { %3961 = vtanh.f32 %v2201_v53 }
 0x5fa   :  { %v3962_v16 = vpop.eup %3961 }
 0x5fb   :  { %v2204_v4 = vmul.f32 %v3962_v16, %v2203_v35 }
 0x5fd   :  { %v5883_v47 = vadd.f32 %v2205_v1, %v2204_v4 }
 0x618   :  { %v2092_v21 = vpop.f32.mrb[40].mxu1  ;;  %v2133_v25 = vpop.f32.mrb[52].mxu0 }
 0x619   :  { %v2181_v43 = vadd.f32 %v2092_v21, %v5045_v9  ;;  %v2207_v61 = vadd.f32 %v2180_v12, %v2133_v25  ;;  %v2094_v33 = vpop.f32.mrb[41].mxu1  ;;  %v2135_v49 = vpop.f32.mrb[53].mxu0  ;;  %v5890_v12 = vld [vmem:[%s6821_s6] ss:$0 sm:$0xff] }
 0x61a   :  { %v2096_v62 = vpop.f32.mrb[42].mxu1  ;;  %v2137_v53 = vpop.f32.mrb[54].mxu0 }
 0x61b   :  { %v2212_v6 = vadd.f32 %v2181_v43, %v2135_v49  ;;  %v2097_v39 = vpop.f32.mrb[43].mxu1  ;;  %v2138_v24 = vpop.f32.mrb[55].mxu0  ;;  %v2208_v5 = vmul.f32 0.5, %v2207_v61  ;;  %v2182_v43 = vadd.f32 %v2094_v33, %v5056_v8  ;;  %v5903_v33 = vpack.c.bf16 %v5883_v47, %v5883_v47 }
 0x61d   :  { %3963 = vtanh.f32 %v2208_v5  ;;  %v2213_v35 = vmul.f32 0.5, %v2212_v6 }
 0x61f   :  { %3965 = vtanh.f32 %v2213_v35 }
 0x627   :  { %v3964_v31 = vpop.eup %3963 }
 0x628   :  { %v2210_v45 = vmul.f32 0.5, %v3964_v31 }
 0x629   :  { %v3966_v49 = vpop.eup %3965 }
 0x62a   :  { %v2211_v21 = vadd.f32 0.5, %v2210_v45  ;;  %v2215_v53 = vmul.f32 0.5, %v3966_v49  ;;  %v7828_v45 = vld [vmem:[#allocation30_spill] sm:$0xff]  ;;  %v7837_v49 = vld [vmem:[#allocation75_spill] sm:$0xff] }
 0x62c   :  { %v2216_v6 = vadd.f32 0.5, %v2215_v53  ;;  %v6017_v53 = vld [vmem:[#allocation4 + $0x16c] ss:$36 sps:$4 sm:$0xff]  }
 0x62d   :  { %7839 = vst [vmem:[#allocation38_spill] sm:$0xff] %v6017_v53 }
 0x62e   :  { %v2221_v39 = vsub.f32 1.0, %v2216_v6 }
 0x638   :  { %v3516_v16 = vpop.f32.mrb[44].mxu1 }
 0x639   :  { %v3517_v20 = vpop.f32.mrb[45].mxu1 }
 0x63a   :  { %v3518_v4 = vadd.f32 %v3517_v20, %v3516_v16  ;;  %v3519_v1 = vpop.f32.mrb[46].mxu1  ;;  %v7829_v16 = vld [vmem:[#allocation31_spill] sm:$0xff]  ;;  %v5998_v20 = vld [vmem:[#allocation4 + $0x90] ss:$36 sps:$4 sm:$0xff]  }
 0x63b   :  { %v3520_v18 = vpop.f32.mrb[47].mxu1  ;;  %7830 = vst [vmem:[#allocation95_spill] sm:$0xff] %v5998_v20  ;;  %v7832_v1 = vld [vmem:[#allocation25_spill] sm:$0xff] }
 0x63c   :  { %v2217_v25 = vadd.f32 %v5890_v12, %v3518_v4  ;;  %v2223_v18 = vmul.f32 %v2216_v6, %v5613_v58  ;;  %v7816_v58 = vld [vmem:[#allocation26_spill] sm:$0xff]  ;;  %v7840_v6 = vld [vmem:[#allocation76_spill] sm:$0xff] }
 0x63d   :  { %v6001_v4 = vld [vmem:[#allocation4 + $0xdc] ss:$36 sps:$4 sm:$0xff]  }
 0x63e   :  { %v2218_v61 = vmul.f32 %v2217_v25, %v2211_v21  ;;  %7831 = vst [vmem:[#allocation34_spill] sm:$0xff] %v6001_v4  ;;  %v7833_v21 = vld [vmem:[#allocation73_spill] sm:$0xff]  ;;  %v6006_v25 = vld [vmem:[#allocation4 + $0xd8] ss:$36 sps:$4 sm:$0xff]  }
 0x63f   :  { %7834 = vst [vmem:[#allocation35_spill] sm:$0xff] %v6006_v25 }
 0x640   :  { %v2219_v62 = vadd.f32 %v2218_v61, %v2182_v43  ;;  %v6009_v43 = vld [vmem:[#allocation4 + $0x124] ss:$36 sps:$4 sm:$0xff]   ;;  %v7836_v61 = vld [vmem:[#allocation74_spill] sm:$0xff] }
 0x641   :  { %7835 = vst [vmem:[#allocation36_spill] sm:$0xff] %v6009_v43 }
 0x642   :  { %3967 = vtanh.f32 %v2219_v62  ;;  %v6014_v62 = vld [vmem:[#allocation4 + $0x120] ss:$36 sps:$4 sm:$0xff]  }
 0x643   :  { %7838 = vst [vmem:[#allocation37_spill] sm:$0xff] %v6014_v62 }
 0x64c   :  { %v3968_v24 = vpop.eup %3967 }
 0x64d   :  { %v2222_v5 = vmul.f32 %v3968_v24, %v2221_v39  ;;  %v7841_v39 = vld [vmem:[#allocation77_spill] sm:$0xff]  ;;  %v6022_v24 = vld [vmem:[#allocation4 + $0x168] ss:$36 sps:$4 sm:$0xff]  }
 0x64e   :  { %7842 = vst [vmem:[#allocation39_spill] sm:$0xff] %v6022_v24 }
 0x64f   :  { %v5895_v35 = vadd.f32 %v2223_v18, %v2222_v5  ;;  %v6025_v18 = vld [vmem:[#allocation4 + $0x1b4] ss:$36 sps:$4 sm:$0xff]  }
 0x650   :  { %7843 = vst [vmem:[#allocation40_spill] sm:$0xff] %v6025_v18  ;;  %v7844_v5 = vld [vmem:[#allocation78_spill] sm:$0xff] }
 0x651   :  { %v5899_v31 = vpack.c.bf16 %v5895_v35, %v5895_v35 }
 0x653   :  { %2259 = vmatprep.mubr.bf16.mxu0 %v5899_v31  ;;  %2300 = vmatprep.mubr.bf16.mxu1 %v5899_v31 }
 0x654   :  { %2260 = vmatmul.mubr.bf16.vlgmr.msra.gmra.mrb[56].mxu0 %v5903_v33  ;;  %2301 = vmatmul.mubr.bf16.vlgmr.msra.gmra.mrb[48].mxu1 %v5903_v33 }
 0x655   :  { %2310 = vmatpush1.bf16.msra.mxu0 %v5365_v60  ;;  %2351 = vmatpush1.bf16.msra.mxu1 %v5368_v2  ;;  %v7798_v60 = vld [vmem:[#allocation28_spill] sm:$0xff]  ;;  %v7799_v2 = vld [vmem:[#allocation29_spill] sm:$0xff] }
 0x656   :  { %2341 = vmatprep.mubr.bf16.mxu0 %v5899_v31  ;;  %2382 = vmatprep.mubr.bf16.mxu1 %v5899_v31 }
 0x657   :  { %2311 = vmatprep.subr.bf16.mxu0 %v5373_v34  ;;  %2352 = vmatprep.subr.bf16.mxu1 %v5376_v7  ;;  %v7800_v34 = vld [vmem:[#allocation90_spill] sm:$0xff]  ;;  %v7801_v7 = vld [vmem:[#allocation9_spill] sm:$0xff] }
 0x659   :  { %2312 = vmatpush1.bf16.msra.mxu0 %v5379_v36  ;;  %2353 = vmatpush1.bf16.msra.mxu1 %v5382_v38  ;;  %v7802_v36 = vld [vmem:[#allocation10_spill] sm:$0xff]  ;;  %v7803_v38 = vld [vmem:[#allocation11_spill] sm:$0xff] }
 0x65a   :  { %2313 = vmatprep.subr.bf16.mxu0 %v5385_v42  ;;  %2354 = vmatprep.subr.bf16.mxu1 %v5388_v13  ;;  %v7804_v42 = vld [vmem:[#allocation12_spill] sm:$0xff]  ;;  %v7805_v13 = vld [vmem:[#allocation13_spill] sm:$0xff] }
 0x65d   :  { %2314 = vmatpush1.bf16.msra.mxu0 %v5391_v14  ;;  %2355 = vmatpush1.bf16.msra.mxu1 %v5394_v22  ;;  %v7806_v14 = vld [vmem:[#allocation14_spill] sm:$0xff]  ;;  %v7807_v22 = vld [vmem:[#allocation15_spill] sm:$0xff] }
 0x65e   :  { %2315 = vmatprep.subr.bf16.mxu0 %v5397_v32  ;;  %2356 = vmatprep.subr.bf16.mxu1 %v5400_v59  ;;  %v7808_v32 = vld [vmem:[#allocation16_spill] sm:$0xff]  ;;  %v7809_v59 = vld [vmem:[#allocation17_spill] sm:$0xff] }
 0x661   :  { %2316 = vmatpush1.bf16.msra.mxu0 %v5403_v44  ;;  %2357 = vmatpush1.bf16.msra.mxu1 %v5406_v19  ;;  %v7810_v44 = vld [vmem:[#allocation18_spill] sm:$0xff]  ;;  %v7811_v19 = vld [vmem:[#allocation104_spill] sm:$0xff] }
 0x662   :  { %2317 = vmatprep.subr.bf16.mxu0 %v7687_v30  ;;  %2358 = vmatprep.subr.bf16.mxu1 %v7688_v48  ;;  %v7817_v30 = vld [vmem:[#allocation27_spill] sm:$0xff] }
 0x663   :  { %v7818_v48 = vld [vmem:[#allocation107_spill] sm:$0xff] }
 0x665   :  { %2318 = vmatpush1.bf16.msra.mxu0 %v7689_v28  ;;  %2359 = vmatpush1.bf16.msra.mxu1 %v7690_v17  ;;  %v7819_v28 = vld [vmem:[#allocation108_spill] sm:$0xff] }
 0x666   :  { %2319 = vmatprep.subr.bf16.mxu0 %v7691_v15  ;;  %2360 = vmatprep.subr.bf16.mxu1 %v7692_v40  ;;  %v7820_v17 = vld [vmem:[#allocation20_spill] sm:$0xff]  ;;  %v7821_v15 = vld [vmem:[#allocation33_spill] sm:$0xff] }
 0x667   :  { %v7822_v40 = vld [vmem:[#allocation109_spill] sm:$0xff] }
 0x669   :  { %2320 = vmatpush1.bf16.msra.mxu0 %v7693_v57  ;;  %2361 = vmatpush1.bf16.msra.mxu1 %v7694_v54  ;;  %v7823_v57 = vld [vmem:[#allocation110_spill] sm:$0xff]  ;;  %v5974_v54 = vld [vmem:[#allocation4 + $0x4] ss:$36 sps:$4 sm:$0xff]  }
 0x66a   :  { %2321 = vmatprep.subr.bf16.mxu0 %v7695_v37  ;;  %2362 = vmatprep.subr.bf16.mxu1 %v7696_v51  ;;  %v7824_v37 = vld [vmem:[#allocation111_spill] sm:$0xff]  ;;  %v7825_v51 = vld [vmem:[#allocation112_spill] sm:$0xff] }
 0x66d   :  { %2322 = vmatpush1.bf16.msra.mxu0 %v7697_v46  ;;  %2363 = vmatpush1.bf16.msra.mxu1 %v7698_v55  ;;  %v5982_v46 = vld [vmem:[#allocation4] ss:$36 sps:$4 sm:$0xff]   ;;  %v5985_v55 = vld [vmem:[#allocation4 + $0x4c] ss:$36 sps:$4 sm:$0xff]  }
 0x66e   :  { %2323 = vmatprep.subr.bf16.mxu0 %v7699_v63  ;;  %2364 = vmatprep.subr.bf16.mxu1 %v7700_v11  ;;  %v7826_v63 = vld [vmem:[#allocation113_spill] sm:$0xff]  ;;  %v7827_v11 = vld [vmem:[#allocation114_spill] sm:$0xff] }
 0x671   :  { %2324 = vmatpush1.bf16.msra.mxu0 %v7701_v3  ;;  %2365 = vmatpush1.bf16.msra.mxu1 %v7702_v0  ;;  %v5990_v3 = vld [vmem:[#allocation4 + $0x48] ss:$36 sps:$4 sm:$0xff]   ;;  %v5993_v0 = vld [vmem:[#allocation4 + $0x94] ss:$36 sps:$4 sm:$0xff]  }
 0x672   :  { %2325 = vmatprep.subr.bf16.mxu0 %v5457_v29  ;;  %2366 = vmatprep.subr.bf16.mxu1 %v5460_v23  ;;  %v7814_v29 = vld [vmem:[#allocation105_spill] sm:$0xff]  ;;  %v7815_v23 = vld [vmem:[#allocation106_spill] sm:$0xff] }
 0x675   :  { %2326 = vmatpush1.bf16.msra.mxu0 %v5463_v52  ;;  %2367 = vmatpush1.bf16.msra.mxu1 %v7798_v60  ;;  %v7812_v52 = vld [vmem:[#allocation19_spill] sm:$0xff]  ;;  %v6030_v60 = vld [vmem:[#allocation4 + $0x1b0] ss:$36 sps:$4 sm:$0xff]  }
 0x676   :  { %2327 = vmatprep.subr.bf16.mxu0 %v5469_v26  ;;  %2368 = vmatprep.subr.bf16.mxu1 %v7799_v2  ;;  %v7813_v26 = vld [vmem:[#allocation24_spill] sm:$0xff]  ;;  %7846 = vst [vmem:[#allocation41_spill] sm:$0xff] %v6030_v60  ;;  %v6033_v2 = vld [vmem:[#allocation4 + $0x1fc] ss:$36 sps:$4 sm:$0xff]  }
 0x677   :  { %7847 = vst [vmem:[#allocation42_spill] sm:$0xff] %v6033_v2 }
 0x679   :  { %2328 = vmatpush1.bf16.msra.mxu0 %v7800_v34  ;;  %2369 = vmatpush1.bf16.msra.mxu1 %v7801_v7 }
 0x67a   :  { %2329 = vmatprep.subr.bf16.mxu0 %v7802_v36  ;;  %2370 = vmatprep.subr.bf16.mxu1 %v7803_v38 }
 0x67d   :  { %2330 = vmatpush1.bf16.msra.mxu0 %v7804_v42  ;;  %2371 = vmatpush1.bf16.msra.mxu1 %v7805_v13 }
 0x67e   :  { %2331 = vmatprep.subr.bf16.mxu0 %v7806_v14  ;;  %2372 = vmatprep.subr.bf16.mxu1 %v7807_v22 }
 0x681   :  { %2332 = vmatpush1.bf16.msra.mxu0 %v7808_v32  ;;  %2373 = vmatpush1.bf16.msra.mxu1 %v7809_v59 }
 0x682   :  { %2333 = vmatprep.subr.bf16.mxu0 %v7810_v44  ;;  %2374 = vmatprep.subr.bf16.mxu1 %v7811_v19 }
 0x685   :  { %2334 = vmatpush1.bf16.msra.mxu0 %v7812_v52  ;;  %2375 = vmatpush1.bf16.msra.mxu1 %v7813_v26 }
 0x686   :  { %2335 = vmatprep.subr.bf16.mxu0 %v7814_v29  ;;  %2376 = vmatprep.subr.bf16.mxu1 %v7815_v23 }
 0x689   :  { %2336 = vmatpush1.bf16.msra.mxu0 %v7816_v58  ;;  %2377 = vmatpush1.bf16.msra.mxu1 %v7817_v30 }
 0x68a   :  { %2337 = vmatprep.subr.bf16.mxu0 %v7818_v48  ;;  %2378 = vmatprep.subr.bf16.mxu1 %v7819_v28 }
 0x68d   :  { %2338 = vmatpush1.bf16.msra.mxu0 %v7820_v17  ;;  %2379 = vmatpush1.bf16.msra.mxu1 %v5728_v56 }
 0x68e   :  { %2339 = vmatprep.subr.bf16.mxu0 %v7821_v15  ;;  %2380 = vmatprep.subr.bf16.mxu1 %v5734_v27 }
 0x691   :  { %2340 = vmatpush1.bf16.msra.mxu0 %v7822_v40  ;;  %2381 = vmatpush1.bf16.msra.mxu1 %v5740_v50 }
 0x692   :  { %3522 = vmatprep.subr.bf16.mxu0 %v7823_v57  ;;  %2478 = vmatprep.subr.bf16.mxu1 %v5974_v54 }
 0x694   :  { %2342 = vmatmul.mubr.bf16.vlgmr.msra.gmra.mrb[60].mxu0 %v5903_v33  ;;  %2383 = vmatmul.mubr.bf16.vlgmr.msra.gmra.mrb[52].mxu1 %v5903_v33 }
 0x695   :  { %3523 = vmatpush3.bf16.msra.mxu0 %v7824_v37  ;;  %2423 = vmatprep.mubr.bf16.mxu0 %v5899_v31  ;;  %v7845_v31 = vld [vmem:[#allocation79_spill] sm:$0xff] }
 0x696   :  { %3524 = vmatprep.subr.bf16.mxu0 %v7825_v51  ;;  %2479 = vmatpush1.bf16.msra.mxu1 %v5982_v46 }
 0x697   :  { %2480 = vmatprep.subr.bf16.mxu1 %v5985_v55 }
 0x699   :  { %3525 = vmatpush3.bf16.msra.mxu0 %v7826_v63 }
 0x69a   :  { %3526 = vmatprep.subr.bf16.mxu0 %v7827_v11  ;;  %2481 = vmatpush1.bf16.msra.mxu1 %v5990_v3 }
 0x69b   :  { %2482 = vmatprep.subr.bf16.mxu1 %v5993_v0 }
 0x69d   :  { %3527 = vmatpush3.bf16.msra.mxu0 %v7828_v45 }
 0x69e   :  { %3528 = vmatprep.subr.bf16.mxu0 %v7829_v16  ;;  %2483 = vmatpush1.bf16.msra.mxu1 %v5998_v20 }
 0x69f   :  { %2484 = vmatprep.subr.bf16.mxu1 %v6001_v4 }
 0x6a1   :  { %3529 = vmatpush3.bf16.msra.mxu0 %v7832_v1 }
 0x6a2   :  { %3530 = vmatprep.subr.bf16.mxu0 %v7833_v21  ;;  %2485 = vmatpush1.bf16.msra.mxu1 %v6006_v25 }
 0x6a3   :  { %2486 = vmatprep.subr.bf16.mxu1 %v6009_v43 }
 0x6a5   :  { %3531 = vmatpush3.bf16.msra.mxu0 %v7836_v61 }
 0x6a6   :  { %3532 = vmatprep.subr.bf16.mxu0 %v7837_v49  ;;  %2487 = vmatpush1.bf16.msra.mxu1 %v6014_v62 }
 0x6a7   :  { %2488 = vmatprep.subr.bf16.mxu1 %v6017_v53 }
 0x6a9   :  { %3533 = vmatpush3.bf16.msra.mxu0 %v7840_v6  ;;  %v7849_v6 = vld [vmem:[#allocation81_spill] sm:$0xff] }
 0x6aa   :  { %3534 = vmatprep.subr.bf16.mxu0 %v7841_v39  ;;  %2489 = vmatpush1.bf16.msra.mxu1 %v6022_v24  ;;  %v7848_v39 = vld [vmem:[#allocation80_spill] sm:$0xff]  ;;  %v6038_v24 = vld [vmem:[#allocation4 + $0x1f8] ss:$36 sps:$4 sm:$0xff]  }
 0x6ab   :  { %2490 = vmatprep.subr.bf16.mxu1 %v6025_v18  ;;  %7850 = vst [vmem:[#allocation43_spill] sm:$0xff] %v6038_v24  ;;  %v6041_v18 = vld [vmem:[#allocation4 + $0x244] ss:$36 sps:$4 sm:$0xff]  }
 0x6ac   :  { %7851 = vst [vmem:[#allocation44_spill] sm:$0xff] %v6041_v18 }
 0x6ad   :  { %3535 = vmatpush3.bf16.msra.mxu0 %v7844_v5  ;;  %v6047_v5 = vld [vmem:[#allocation4 + $0x240] ss:$36 sps:$4 sm:$0xff]  }
 0x6ae   :  { %3536 = vmatprep.subr.bf16.mxu0 %v7845_v31  ;;  %2491 = vmatpush1.bf16.msra.mxu1 %v6030_v60  ;;  %v7852_v31 = vld [vmem:[#allocation82_spill] sm:$0xff]  ;;  %v7853_v60 = vld [vmem:[#allocation83_spill] sm:$0xff]  ;;  %7854 = vst [vmem:[#allocation45_spill] sm:$0xff] %v6047_v5 }
 0x6af   :  { %2492 = vmatprep.subr.bf16.mxu1 %v6033_v2  ;;  %v6055_v2 = vld [vmem:[#allocation4 + $0x288] ss:$36 sps:$4 sm:$0xff]  }
 0x6b0   :  { %7858 = vst [vmem:[#allocation47_spill] sm:$0xff] %v6055_v2 }
 0x6b1   :  { %3537 = vmatpush3.bf16.msra.mxu0 %v7848_v39  ;;  %v6050_v39 = vld [vmem:[#allocation4 + $0x28c] ss:$36 sps:$4 sm:$0xff]  }
 0x6b2   :  { %2519 = vmatprep.subr.bf16.mxu0 %v7849_v6  ;;  %2493 = vmatpush1.bf16.msra.mxu1 %v6038_v24  ;;  %7855 = vst [vmem:[#allocation46_spill] sm:$0xff] %v6050_v39  ;;  %v7856_v6 = vld [vmem:[#allocation84_spill] sm:$0xff]  ;;  %v7857_v24 = vld [vmem:[#allocation85_spill] sm:$0xff] }
 0x6b3   :  { %2494 = vmatprep.subr.bf16.mxu1 %v6041_v18  ;;  %v7903_v18 = vld [vmem:[#allocation94_spill] sm:$0xff] }
 0x6b4   :  { %2424 = vmatmul.mubr.bf16.vlgmr.msra.gmra.mrb[64].mxu0 %v5903_v33  ;;  %v6058_v33 = vld [vmem:[#allocation4 + $0x2d4] ss:$36 sps:$4 sm:$0xff]  }
 0x6b5   :  { %2520 = vmatpush1.bf16.msra.mxu0 %v7852_v31  ;;  %7859 = vst [vmem:[#allocation48_spill] sm:$0xff] %v6058_v33  ;;  %v7861_v31 = vld [vmem:[#allocation89_spill] sm:$0xff] }
 0x6b6   :  { %2521 = vmatprep.subr.bf16.mxu0 %v7853_v60  ;;  %2495 = vmatpush1.bf16.msra.mxu1 %v6047_v5  ;;  %v7860_v60 = vld [vmem:[#allocation87_spill] sm:$0xff]  ;;  %v6063_v5 = vld [vmem:[#allocation4 + $0x2d0] ss:$36 sps:$4 sm:$0xff]  }
 0x6b7   :  { %2496 = vmatprep.subr.bf16.mxu1 %v6050_v39  ;;  %7862 = vst [vmem:[#allocation49_spill] sm:$0xff] %v6063_v5  ;;  %v6066_v39 = vld [vmem:[#allocation4 + $0x31c] ss:$36 sps:$4 sm:$0xff]  }
 0x6b8   :  { %7863 = vst [vmem:[#allocation50_spill] sm:$0xff] %v6066_v39 }
 0x6b9   :  { %2522 = vmatpush1.bf16.msra.mxu0 %v7856_v6  ;;  %v6123_v6 = vld [vmem:[#allocation4 + $0x248] ss:$36 sps:$4 sm:$0xff]  }
 0x6ba   :  { %2523 = vmatprep.subr.bf16.mxu0 %v7857_v24  ;;  %2497 = vmatpush1.bf16.msra.mxu1 %v6055_v2  ;;  %v6069_v24 = vld [vmem:[#allocation4 + $0xe0] ss:$36 sps:$4 sm:$0xff]   ;;  %v6072_v2 = vld [vmem:[#allocation4 + $0x12c] ss:$36 sps:$4 sm:$0xff]   ;;  %7884 = vst [vmem:[#allocation68_spill] sm:$0xff] %v6123_v6 }
 0x6bb   :  { %2498 = vmatprep.subr.bf16.mxu1 %v6058_v33  ;;  %7864 = vst [vmem:[#allocation51_spill] sm:$0xff] %v6069_v24  ;;  %7865 = vst [vmem:[#allocation52_spill] sm:$0xff] %v6072_v2  ;;  %v6075_v33 = vld [vmem:[#allocation4 + $0x318] ss:$36 sps:$4 sm:$0xff]  }
 0x6bc   :  { %7866 = vst [vmem:[#allocation53_spill] sm:$0xff] %v6075_v33 }
 0x6bd   :  { %2524 = vmatpush1.bf16.msra.mxu0 %v7860_v60  ;;  %v6115_v60 = vld [vmem:[#allocation4 + $0x200] ss:$36 sps:$4 sm:$0xff]  }
 0x6be   :  { %2525 = vmatprep.subr.bf16.mxu0 %v7861_v31  ;;  %2499 = vmatpush1.bf16.msra.mxu1 %v6063_v5  ;;  %v6078_v31 = vld [vmem:[#allocation4 + $0x364] ss:$36 sps:$4 sm:$0xff]   ;;  %7880 = vst [vmem:[#allocation66_spill] sm:$0xff] %v6115_v60 }
 0x6bf   :  { %2500 = vmatprep.subr.bf16.mxu1 %v6066_v39  ;;  %7867 = vst [vmem:[#allocation54_spill] sm:$0xff] %v6078_v31  ;;  %v6081_v5 = vld [vmem:[#allocation4 + $0x128] ss:$36 sps:$4 sm:$0xff]   ;;  %v6084_v39 = vld [vmem:[#allocation4 + $0x174] ss:$36 sps:$4 sm:$0xff]  }
 0x6c0   :  { %7868 = vst [vmem:[#allocation55_spill] sm:$0xff] %v6081_v5  ;;  %7869 = vst [vmem:[#allocation56_spill] sm:$0xff] %v6084_v39 }
 0x6c1   :  { %2526 = vmatpush1.bf16.msra.mxu0 %v6069_v24  ;;  %v6087_v24 = vld [vmem:[#allocation4 + $0x360] ss:$36 sps:$4 sm:$0xff]  }
 0x6c2   :  { %2527 = vmatprep.subr.bf16.mxu0 %v6072_v2  ;;  %2501 = vmatpush1.bf16.msra.mxu1 %v6075_v33  ;;  %7870 = vst [vmem:[#allocation57_spill] sm:$0xff] %v6087_v24  ;;  %v6090_v2 = vld [vmem:[#allocation4 + $0x3ac] ss:$36 sps:$4 sm:$0xff]  }
 0x6c3   :  { %2502 = vmatprep.subr.bf16.mxu1 %v6078_v31  ;;  %7871 = vst [vmem:[#allocation58_spill] sm:$0xff] %v6090_v2  ;;  %v6093_v33 = vld [vmem:[#allocation4 + $0x170] ss:$36 sps:$4 sm:$0xff]   ;;  %v6096_v31 = vld [vmem:[#allocation4 + $0x1bc] ss:$36 sps:$4 sm:$0xff]  }
 0x6c4   :  { %7872 = vst [vmem:[#allocation59_spill] sm:$0xff] %v6093_v33  ;;  %7873 = vst [vmem:[#allocation60_spill] sm:$0xff] %v6096_v31 }
 0x6c5   :  { %2528 = vmatpush1.bf16.msra.mxu0 %v6081_v5  ;;  %v6099_v5 = vld [vmem:[#allocation4 + $0x3a8] ss:$36 sps:$4 sm:$0xff]  }
 0x6c6   :  { %2529 = vmatprep.subr.bf16.mxu0 %v6084_v39  ;;  %2503 = vmatpush1.bf16.msra.mxu1 %v6087_v24  ;;  %7874 = vst [vmem:[#allocation61_spill] sm:$0xff] %v6099_v5  ;;  %v6102_v39 = vld [vmem:[#allocation4 + $0x3f4] ss:$36 sps:$4 sm:$0xff]  }
 0x6c7   :  { %2504 = vmatprep.subr.bf16.mxu1 %v6090_v2  ;;  %7875 = vst [vmem:[#allocation62_spill] sm:$0xff] %v6102_v39  ;;  %v6105_v24 = vld [vmem:[#allocation4 + $0x1b8] ss:$36 sps:$4 sm:$0xff]   ;;  %v6108_v2 = vld [vmem:[#allocation4 + $0x204] ss:$36 sps:$4 sm:$0xff]  }
 0x6c8   :  { %7876 = vst [vmem:[#allocation63_spill] sm:$0xff] %v6105_v24  ;;  %7877 = vst [vmem:[#allocation64_spill] sm:$0xff] %v6108_v2 }
 0x6c9   :  { %2530 = vmatpush1.bf16.msra.mxu0 %v6093_v33  ;;  %v6111_v33 = vld [vmem:[#allocation4 + $0x3f0] ss:$36 sps:$4 sm:$0xff]  }
 0x6ca   :  { %2531 = vmatprep.subr.bf16.mxu0 %v6096_v31  ;;  %2505 = vmatpush1.bf16.msra.mxu1 %v6099_v5  ;;  %7878 = vst [vmem:[#allocation65_spill] sm:$0xff] %v6111_v33  ;;  %v7879_v31 = vld [vmem:[#allocation23_spill] sm:$0xff]  ;;  %v6118_v5 = vld [vmem:[#allocation4 + $0x24c] ss:$36 sps:$4 sm:$0xff]  }
 0x6cb   :  { %2506 = vmatprep.subr.bf16.mxu1 %v6102_v39  ;;  %7881 = vst [vmem:[#allocation67_spill] sm:$0xff] %v6118_v5  ;;  %v7882_v39 = vld [vmem:[#allocation86_spill] sm:$0xff] }
 0x6cd   :  { %2532 = vmatpush1.bf16.msra.mxu0 %v6105_v24  ;;  %v7883_v24 = vld [vmem:[#allocation88_spill] sm:$0xff] }
 0x6ce   :  { %2533 = vmatprep.subr.bf16.mxu0 %v6108_v2  ;;  %2507 = vmatpush1.bf16.msra.mxu1 %v6111_v33  ;;  %v6126_v2 = vld [vmem:[#allocation4 + $0x294] ss:$36 sps:$4 sm:$0xff]  }
 0x6cf   :  { %2508 = vmatprep.subr.bf16.mxu1 %v7879_v31  ;;  %7885 = vst [vmem:[#allocation69_spill] sm:$0xff] %v6126_v2  ;;  %v6129_v31 = vld [vmem:[#allocation4 + $0x290] ss:$36 sps:$4 sm:$0xff]  }
 0x6d0   :  { %7886 = vst [vmem:[#allocation70_spill] sm:$0xff] %v6129_v31 }
 0x6d1   :  { %2534 = vmatpush1.bf16.msra.mxu0 %v6115_v60  ;;  %v6132_v60 = vld [vmem:[#allocation4 + $0x2dc] ss:$36 sps:$4 sm:$0xff]  }
 0x6d2   :  { %2535 = vmatprep.subr.bf16.mxu0 %v6118_v5  ;;  %2509 = vmatpush1.bf16.msra.mxu1 %v7882_v39  ;;  %7887 = vst [vmem:[#allocation71_spill] sm:$0xff] %v6132_v60  ;;  %v6135_v5 = vld [vmem:[#allocation4 + $0x2d8] ss:$36 sps:$4 sm:$0xff]   ;;  %v6138_v39 = vld [vmem:[#allocation4 + $0x324] ss:$36 sps:$4 sm:$0xff]  }
 0x6d3   :  { %2560 = vmatprep.subr.bf16.mxu1 %v7883_v24  ;;  %7888 = vst [vmem:[#allocation72_spill] sm:$0xff] %v6135_v5  ;;  %7889 = vst [vmem:[#allocation91_spill] sm:$0xff] %v6138_v39  ;;  %v6141_v24 = vld [vmem:[#allocation4 + $0x320] ss:$36 sps:$4 sm:$0xff]  }
 0x6d4   :  { %7890 = vst [vmem:[#allocation92_spill] sm:$0xff] %v6141_v24 }
 0x6d5   :  { %2536 = vmatpush1.bf16.msra.mxu0 %v6123_v6  ;;  %v7901_v6 = vld [vmem:[#allocation93_spill] sm:$0xff] }
 0x6d6   :  { %2537 = vmatprep.subr.bf16.mxu0 %v6126_v2  ;;  %v6144_v2 = vld [vmem:[#allocation4 + $0x36c] ss:$36 sps:$4 sm:$0xff]  }
 0x6d7   :  { %7891 = vst [vmem:[#allocation8_spill] sm:$0xff] %v6144_v2 }
 0x6d9   :  { %2538 = vmatpush1.bf16.msra.mxu0 %v6129_v31  ;;  %v6147_v31 = vld [vmem:[#allocation4 + $0x368] ss:$36 sps:$4 sm:$0xff]  }
 0x6da   :  { %2539 = vmatprep.subr.bf16.mxu0 %v6132_v60  ;;  %7892 = vst [vmem:[#allocation99_spill] sm:$0xff] %v6147_v31  ;;  %v6150_v60 = vld [vmem:[#allocation4 + $0x3b4] ss:$36 sps:$4 sm:$0xff]  }
 0x6db   :  { %7893 = vst [vmem:[#allocation28_spill] sm:$0xff] %v6150_v60 }
 0x6dd   :  { %2540 = vmatpush1.bf16.msra.mxu0 %v6135_v5  ;;  %v6153_v5 = vld [vmem:[#allocation4 + $0x3b0] ss:$36 sps:$4 sm:$0xff]  }
 0x6de   :  { %2541 = vmatprep.subr.bf16.mxu0 %v6138_v39  ;;  %7894 = vst [vmem:[#allocation29_spill] sm:$0xff] %v6153_v5  ;;  %v6156_v39 = vld [vmem:[#allocation4 + $0x3fc] ss:$36 sps:$4 sm:$0xff]  }
 0x6df   :  { %7895 = vst [vmem:[#allocation90_spill] sm:$0xff] %v6156_v39 }
 0x6e1   :  { %2542 = vmatpush1.bf16.msra.mxu0 %v6141_v24  ;;  %v6159_v24 = vld [vmem:[#allocation4 + $0x3f8] ss:$36 sps:$4 sm:$0xff]  }
 0x6e2   :  { %2543 = vmatprep.subr.bf16.mxu0 %v6144_v2  ;;  %7896 = vst [vmem:[#allocation9_spill] sm:$0xff] %v6159_v24  ;;  %v6162_v2 = vld [vmem:[#allocation4 + $0x444] ss:$36 sps:$4 sm:$0xff]  }
 0x6e3   :  { %7897 = vst [vmem:[#allocation10_spill] sm:$0xff] %v6162_v2 }
 0x6e5   :  { %2544 = vmatpush1.bf16.msra.mxu0 %v6147_v31  ;;  %v6165_v31 = vld [vmem:[#allocation4 + $0x440] ss:$36 sps:$4 sm:$0xff]  }
 0x6e6   :  { %2545 = vmatprep.subr.bf16.mxu0 %v6150_v60  ;;  %7898 = vst [vmem:[#allocation11_spill] sm:$0xff] %v6165_v31  ;;  %v6168_v60 = vld [vmem:[#allocation4 + $0x1c] ss:$36 sps:$4 sm:$0xff]  }
 0x6e7   :  { %7899 = vst [vmem:[#allocation12_spill] sm:$0xff] %v6168_v60 }
 0x6e9   :  { %2546 = vmatpush1.bf16.msra.mxu0 %v6153_v5  ;;  %v7900_v5 = vld [vmem:[#allocation21_spill] sm:$0xff] }
 0x6ea   :  { %2547 = vmatprep.subr.bf16.mxu0 %v6156_v39  ;;  %v170_v33 = vadd.f32 %v7901_v6, %v7900_v5  ;;  %v7902_v39 = vld [vmem:[#allocation22_spill] sm:$0xff] }
 0x6eb   :  { %v172_v53 = vadd.f32 %v7903_v18, %v7902_v39  ;;  %v7904_v18 = vld [vmem:[#allocation103_spill] sm:$0xff] }
 0x6ec   :  { %v238_v39 = vadd.f32 %v7904_v18, %v7795_v41 }
 0x6ed   :  { %2548 = vmatpush1.bf16.msra.mxu0 %v6159_v24 }
 0x6ee   :  { %2549 = vmatprep.subr.bf16.mxu0 %v6162_v2 }
 0x6f1   :  { %2550 = vmatpush1.bf16.msra.mxu0 %v6165_v31 }
 0x6f2   :  { %2601 = vmatprep.subr.bf16.mxu0 %v6168_v60 }
 0x727   :  { %v2261_v62 = vpop.f32.mrb[56].mxu0  ;;  %v2302_v24 = vpop.f32.mrb[48].mxu1 }
 0x728   :  { %v2440_v49 = vadd.f32 %v2261_v62, %v170_v33  ;;  %v2263_v61 = vpop.f32.mrb[57].mxu0  ;;  %v2304_v43 = vpop.f32.mrb[49].mxu1  ;;  %v2450_v5 = vadd.f32 %v7794_v10, %v2302_v24 }
 0x729   :  { %v2445_v2 = vadd.f32 %v2263_v61, %v172_v53  ;;  %v2265_v25 = vpop.f32.mrb[58].mxu0  ;;  %v2306_v21 = vpop.f32.mrb[50].mxu1  ;;  %v7905_v53 = vld [vmem:[#allocation7_spill] sm:$0xff] }
 0x72a   :  { %v2441_v1 = vmul.f32 0.5, %v2440_v49  ;;  %v2266_v31 = vpop.f32.mrb[59].mxu0  ;;  %v2307_v4 = vpop.f32.mrb[51].mxu1 }
 0x72b   :  { %v2446_v20 = vmul.f32 0.5, %v2445_v2 }
 0x72c   :  { %3969 = vtanh.f32 %v2441_v1 }
 0x72d   :  { %3971 = vtanh.f32 %v2446_v20 }
 0x736   :  { %v3970_v60 = vpop.eup %3969 }
 0x737   :  { %v2443_v16 = vmul.f32 0.5, %v3970_v60  ;;  %v3972_v33 = vpop.eup %3971 }
 0x738   :  { %v2448_v25 = vmul.f32 0.5, %v3972_v33 }
 0x739   :  { %v2444_v6 = vadd.f32 0.5, %v2443_v16  ;;  %v2431_v16 = vadd.f32 %v2304_v43, %v7905_v53 }
 0x73a   :  { %v2449_v21 = vadd.f32 0.5, %v2448_v25 }
 0x73b   :  { %v2451_v62 = vmul.f32 %v2450_v5, %v2444_v6 }
 0x73c   :  { %v2454_v61 = vsub.f32 1.0, %v2449_v21  ;;  %v2456_v1 = vmul.f32 %v2449_v21, %v5883_v47 }
 0x73d   :  { %v2452_v45 = vadd.f32 %v2451_v62, %v238_v39 }
 0x73f   :  { %3973 = vtanh.f32 %v2452_v45 }
 0x749   :  { %v3974_v49 = vpop.eup %3973 }
 0x74a   :  { %v2455_v4 = vmul.f32 %v3974_v49, %v2454_v61 }
 0x74c   :  { %v6179_v20 = vadd.f32 %v2456_v1, %v2455_v4 }
 0x767   :  { %v2343_v60 = vpop.f32.mrb[60].mxu0  ;;  %v2384_v10 = vpop.f32.mrb[52].mxu1 }
 0x768   :  { %v2432_v2 = vadd.f32 %v2343_v60, %v5045_v9  ;;  %v2458_v31 = vadd.f32 %v2431_v16, %v2384_v10  ;;  %v2345_v5 = vpop.f32.mrb[61].mxu0  ;;  %v2386_v24 = vpop.f32.mrb[53].mxu1 }
 0x769   :  { %v2347_v39 = vpop.f32.mrb[62].mxu0  ;;  %v2388_v45 = vpop.f32.mrb[54].mxu1  ;;  %v2433_v10 = vadd.f32 %v2345_v5, %v5056_v8  ;;  %v6194_v5 = vpack.c.bf16 %v6179_v20, %v6179_v20 }
 0x76a   :  { %v2463_v6 = vadd.f32 %v2432_v2, %v2386_v24  ;;  %v2348_v18 = vpop.f32.mrb[63].mxu0  ;;  %v2389_v62 = vpop.f32.mrb[55].mxu1  ;;  %v2459_v33 = vmul.f32 0.5, %v2458_v31 }
 0x76c   :  { %3975 = vtanh.f32 %v2459_v33  ;;  %v2464_v25 = vmul.f32 0.5, %v2463_v6 }
 0x76e   :  { %3977 = vtanh.f32 %v2464_v25 }
 0x776   :  { %v3976_v47 = vpop.eup %3975 }
 0x777   :  { %v2461_v21 = vmul.f32 0.5, %v3976_v47 }
 0x778   :  { %v3978_v2 = vpop.eup %3977 }
 0x779   :  { %v2462_v60 = vadd.f32 0.5, %v2461_v21  ;;  %v2466_v31 = vmul.f32 0.5, %v3978_v2  ;;  %v6203_v21 = vld [vmem:[#allocation4 + $0x18] ss:$36 sps:$4 sm:$0xff]  }
 0x77a   :  { %7906 = vst [vmem:[#allocation13_spill] sm:$0xff] %v6203_v21  ;;  %v6235_v2 = vld [vmem:[#allocation4 + $0xf4] ss:$36 sps:$4 sm:$0xff]  }
 0x77b   :  { %v2467_v45 = vadd.f32 0.5, %v2466_v31  ;;  %7911 = vst [vmem:[#allocation18_spill] sm:$0xff] %v6235_v2  ;;  %v6241_v31 = vld [vmem:[#allocation4 + $0xf0] ss:$36 sps:$4 sm:$0xff]  }
 0x77c   :  { %7912 = vst [vmem:[#allocation104_spill] sm:$0xff] %v6241_v31 }
 0x77d   :  { %v2472_v6 = vsub.f32 1.0, %v2467_v45  ;;  %v2474_v62 = vmul.f32 %v2467_v45, %v5895_v35  ;;  %v6200_v35 = vld [vmem:[#allocation4 + $0x10] ss:$36 sps:$4 sm:$0xff]  }
 0x77e   :  { %v6244_v45 = vld [vmem:[#allocation4 + $0x134] ss:$36 sps:$4 sm:$0xff]  }
 0x77f   :  { %7913 = vst [vmem:[#allocation19_spill] sm:$0xff] %v6244_v45 }
 0x787   :  { %v3538_v61 = vpop.f32.mrb[64].mxu0 }
 0x788   :  { %v3539_v43 = vpop.f32.mrb[65].mxu0 }
 0x789   :  { %v3540_v49 = vadd.f32 %v3539_v43, %v3538_v61  ;;  %v3541_v4 = vpop.f32.mrb[66].mxu0  ;;  %v6208_v61 = vld [vmem:[#allocation4 + $0x5c] ss:$36 sps:$4 sm:$0xff]   ;;  %v6211_v43 = vld [vmem:[#allocation4 + $0x64] ss:$36 sps:$4 sm:$0xff]  }
 0x78a   :  { %v3542_v1 = vpop.f32.mrb[67].mxu0  ;;  %7907 = vst [vmem:[#allocation14_spill] sm:$0xff] %v6211_v43  ;;  %v6217_v4 = vld [vmem:[#allocation4 + $0x60] ss:$36 sps:$4 sm:$0xff]  }
 0x78b   :  { %v2468_v16 = vadd.f32 %v5890_v12, %v3540_v49  ;;  %v6214_v49 = vld [vmem:[#allocation4 + $0x58] ss:$36 sps:$4 sm:$0xff]   ;;  %7908 = vst [vmem:[#allocation15_spill] sm:$0xff] %v6217_v4  ;;  %v6220_v1 = vld [vmem:[#allocation4 + $0xa4] ss:$36 sps:$4 sm:$0xff]  }
 0x78d   :  { %v2469_v39 = vmul.f32 %v2468_v16, %v2462_v60  ;;  %v6223_v60 = vld [vmem:[#allocation4 + $0xac] ss:$36 sps:$4 sm:$0xff]   ;;  %v6226_v16 = vld [vmem:[#allocation4 + $0xa0] ss:$36 sps:$4 sm:$0xff]  }
 0x78e   :  { %7909 = vst [vmem:[#allocation16_spill] sm:$0xff] %v6223_v60 }
 0x78f   :  { %v2470_v24 = vadd.f32 %v2469_v39, %v2433_v10  ;;  %v6229_v10 = vld [vmem:[#allocation4 + $0xa8] ss:$36 sps:$4 sm:$0xff]  }
 0x790   :  { %7910 = vst [vmem:[#allocation17_spill] sm:$0xff] %v6229_v10  ;;  %v6232_v39 = vld [vmem:[#allocation4 + $0xec] ss:$36 sps:$4 sm:$0xff]  }
 0x791   :  { %3979 = vtanh.f32 %v2470_v24  ;;  %v6238_v24 = vld [vmem:[#allocation4 + $0xe8] ss:$36 sps:$4 sm:$0xff]  }
 0x79b   :  { %v3980_v18 = vpop.eup %3979 }
 0x79c   :  { %v2473_v33 = vmul.f32 %v3980_v18, %v2472_v6  ;;  %v6247_v6 = vld [vmem:[#allocation4 + $0x13c] ss:$36 sps:$4 sm:$0xff]   ;;  %v6250_v18 = vld [vmem:[#allocation4 + $0x130] ss:$36 sps:$4 sm:$0xff]  }
 0x79d   :  { %7914 = vst [vmem:[#allocation24_spill] sm:$0xff] %v6247_v6  ;;  %7915 = vst [vmem:[#allocation105_spill] sm:$0xff] %v6250_v18 }
 0x79e   :  { %v6186_v25 = vadd.f32 %v2474_v62, %v2473_v33  ;;  %v6253_v62 = vld [vmem:[#allocation4 + $0x138] ss:$36 sps:$4 sm:$0xff]  }
 0x79f   :  { %7916 = vst [vmem:[#allocation106_spill] sm:$0xff] %v6253_v62  ;;  %v6256_v33 = vld [vmem:[#allocation4 + $0x17c] ss:$36 sps:$4 sm:$0xff]  }
 0x7a0   :  { %v6190_v47 = vpack.c.bf16 %v6186_v25, %v6186_v25  ;;  %7917 = vst [vmem:[#allocation26_spill] sm:$0xff] %v6256_v33 }
 0x7a2   :  { %2510 = vmatprep.mubr.bf16.mxu1 %v6190_v47  ;;  %2551 = vmatprep.mubr.bf16.mxu0 %v6190_v47 }
 0x7a3   :  { %2511 = vmatmul.mubr.bf16.vlgmr.msra.gmra.mrb[56].mxu1 %v6194_v5  ;;  %2552 = vmatmul.mubr.bf16.vlgmr.msra.gmra.mrb[68].mxu0 %v6194_v5 }
 0x7a4   :  { %2561 = vmatpush1.bf16.msra.mxu1 %v6200_v35  ;;  %2602 = vmatpush1.bf16.msra.mxu0 %v6203_v21 }
 0x7a5   :  { %2592 = vmatprep.mubr.bf16.mxu1 %v6190_v47  ;;  %2633 = vmatprep.mubr.bf16.mxu0 %v6190_v47 }
 0x7a6   :  { %2562 = vmatprep.subr.bf16.mxu1 %v6208_v61  ;;  %2603 = vmatprep.subr.bf16.mxu0 %v6211_v43 }
 0x7a8   :  { %2563 = vmatpush1.bf16.msra.mxu1 %v6214_v49  ;;  %2604 = vmatpush1.bf16.msra.mxu0 %v6217_v4 }
 0x7a9   :  { %2564 = vmatprep.subr.bf16.mxu1 %v6220_v1  ;;  %2605 = vmatprep.subr.bf16.mxu0 %v6223_v60 }
 0x7ac   :  { %2565 = vmatpush1.bf16.msra.mxu1 %v6226_v16  ;;  %2606 = vmatpush1.bf16.msra.mxu0 %v6229_v10 }
 0x7ad   :  { %2566 = vmatprep.subr.bf16.mxu1 %v6232_v39  ;;  %2607 = vmatprep.subr.bf16.mxu0 %v6235_v2 }
 0x7b0   :  { %2567 = vmatpush1.bf16.msra.mxu1 %v6238_v24  ;;  %2608 = vmatpush1.bf16.msra.mxu0 %v6241_v31  ;;  %v6259_v31 = vld [vmem:[#allocation4 + $0x184] ss:$36 sps:$4 sm:$0xff]  }
 0x7b1   :  { %2568 = vmatprep.subr.bf16.mxu1 %v6244_v45  ;;  %2609 = vmatprep.subr.bf16.mxu0 %v6247_v6  ;;  %7918 = vst [vmem:[#allocation27_spill] sm:$0xff] %v6259_v31  ;;  %v6262_v45 = vld [vmem:[#allocation4 + $0x178] ss:$36 sps:$4 sm:$0xff]   ;;  %v6265_v6 = vld [vmem:[#allocation4 + $0x180] ss:$36 sps:$4 sm:$0xff]  }
 0x7b2   :  { %7919 = vst [vmem:[#allocation107_spill] sm:$0xff] %v6262_v45  ;;  %7920 = vst [vmem:[#allocation108_spill] sm:$0xff] %v6265_v6 }
 0x7b4   :  { %2569 = vmatpush1.bf16.msra.mxu1 %v6250_v18  ;;  %2610 = vmatpush1.bf16.msra.mxu0 %v6253_v62  ;;  %v6268_v18 = vld [vmem:[#allocation4 + $0x1c4] ss:$36 sps:$4 sm:$0xff]   ;;  %v6271_v62 = vld [vmem:[#allocation4 + $0x1cc] ss:$36 sps:$4 sm:$0xff]  }
 0x7b5   :  { %2570 = vmatprep.subr.bf16.mxu1 %v6256_v33  ;;  %2611 = vmatprep.subr.bf16.mxu0 %v6259_v31  ;;  %7921 = vst [vmem:[#allocation20_spill] sm:$0xff] %v6268_v18  ;;  %7922 = vst [vmem:[#allocation33_spill] sm:$0xff] %v6271_v62  ;;  %v6274_v33 = vld [vmem:[#allocation4 + $0x1c0] ss:$36 sps:$4 sm:$0xff]   ;;  %v6277_v31 = vld [vmem:[#allocation4 + $0x1c8] ss:$36 sps:$4 sm:$0xff]  }
 0x7b6   :  { %7923 = vst [vmem:[#allocation109_spill] sm:$0xff] %v6274_v33  ;;  %7924 = vst [vmem:[#allocation110_spill] sm:$0xff] %v6277_v31 }
 0x7b8   :  { %2571 = vmatpush1.bf16.msra.mxu1 %v6262_v45  ;;  %2612 = vmatpush1.bf16.msra.mxu0 %v6265_v6  ;;  %v6280_v45 = vld [vmem:[#allocation4 + $0x20c] ss:$36 sps:$4 sm:$0xff]   ;;  %v6283_v6 = vld [vmem:[#allocation4 + $0x214] ss:$36 sps:$4 sm:$0xff]  }
 0x7b9   :  { %2572 = vmatprep.subr.bf16.mxu1 %v6268_v18  ;;  %2613 = vmatprep.subr.bf16.mxu0 %v6271_v62  ;;  %7925 = vst [vmem:[#allocation111_spill] sm:$0xff] %v6280_v45  ;;  %7926 = vst [vmem:[#allocation112_spill] sm:$0xff] %v6283_v6  ;;  %v6286_v18 = vld [vmem:[#allocation4 + $0x208] ss:$36 sps:$4 sm:$0xff]   ;;  %v6289_v62 = vld [vmem:[#allocation4 + $0x210] ss:$36 sps:$4 sm:$0xff]  }
 0x7ba   :  { %7927 = vst [vmem:[#allocation113_spill] sm:$0xff] %v6286_v18  ;;  %7928 = vst [vmem:[#allocation114_spill] sm:$0xff] %v6289_v62 }
 0x7bc   :  { %2573 = vmatpush1.bf16.msra.mxu1 %v6274_v33  ;;  %2614 = vmatpush1.bf16.msra.mxu0 %v6277_v31  ;;  %v6292_v33 = vld [vmem:[#allocation4 + $0x254] ss:$36 sps:$4 sm:$0xff]   ;;  %v6295_v31 = vld [vmem:[#allocation4 + $0x25c] ss:$36 sps:$4 sm:$0xff]  }
 0x7bd   :  { %2574 = vmatprep.subr.bf16.mxu1 %v6280_v45  ;;  %2615 = vmatprep.subr.bf16.mxu0 %v6283_v6  ;;  %7929 = vst [vmem:[#allocation23_spill] sm:$0xff] %v6295_v31  ;;  %v6298_v45 = vld [vmem:[#allocation4 + $0x250] ss:$36 sps:$4 sm:$0xff]   ;;  %v6301_v6 = vld [vmem:[#allocation4 + $0x258] ss:$36 sps:$4 sm:$0xff]  }
 0x7be   :  { %7930 = vst [vmem:[#allocation86_spill] sm:$0xff] %v6301_v6 }
 0x7c0   :  { %2575 = vmatpush1.bf16.msra.mxu1 %v6286_v18  ;;  %2616 = vmatpush1.bf16.msra.mxu0 %v6289_v62  ;;  %v6304_v18 = vld [vmem:[#allocation4 + $0x29c] ss:$36 sps:$4 sm:$0xff]   ;;  %v6307_v62 = vld [vmem:[#allocation4 + $0x2a4] ss:$36 sps:$4 sm:$0xff]  }
 0x7c1   :  { %2576 = vmatprep.subr.bf16.mxu1 %v6292_v33  ;;  %2617 = vmatprep.subr.bf16.mxu0 %v6295_v31  ;;  %7931 = vst [vmem:[#allocation88_spill] sm:$0xff] %v6307_v62 }
 0x7c4   :  { %2577 = vmatpush1.bf16.msra.mxu1 %v6298_v45  ;;  %2618 = vmatpush1.bf16.msra.mxu0 %v6301_v6 }
 0x7c5   :  { %2578 = vmatprep.subr.bf16.mxu1 %v6304_v18  ;;  %2619 = vmatprep.subr.bf16.mxu0 %v6307_v62 }
 0x7c8   :  { %2579 = vmatpush1.bf16.msra.mxu1 %v7800_v34  ;;  %2620 = vmatpush1.bf16.msra.mxu0 %v7801_v7  ;;  %v7935_v34 = vld [vmem:[#allocation34_spill] sm:$0xff]  ;;  %v7936_v7 = vld [vmem:[#allocation25_spill] sm:$0xff] }
 0x7c9   :  { %2580 = vmatprep.subr.bf16.mxu1 %v7802_v36  ;;  %2621 = vmatprep.subr.bf16.mxu0 %v7803_v38  ;;  %v7937_v36 = vld [vmem:[#allocation73_spill] sm:$0xff]  ;;  %v7938_v38 = vld [vmem:[#allocation35_spill] sm:$0xff] }
 0x7cc   :  { %2581 = vmatpush1.bf16.msra.mxu1 %v7804_v42  ;;  %2622 = vmatpush1.bf16.msra.mxu0 %v7805_v13  ;;  %v7939_v42 = vld [vmem:[#allocation36_spill] sm:$0xff]  ;;  %v7940_v13 = vld [vmem:[#allocation74_spill] sm:$0xff] }
 0x7cd   :  { %2582 = vmatprep.subr.bf16.mxu1 %v7806_v14  ;;  %2623 = vmatprep.subr.bf16.mxu0 %v7807_v22  ;;  %v7941_v14 = vld [vmem:[#allocation75_spill] sm:$0xff]  ;;  %v7942_v22 = vld [vmem:[#allocation37_spill] sm:$0xff] }
 0x7d0   :  { %2583 = vmatpush1.bf16.msra.mxu1 %v7808_v32  ;;  %2624 = vmatpush1.bf16.msra.mxu0 %v7809_v59  ;;  %v7943_v32 = vld [vmem:[#allocation38_spill] sm:$0xff]  ;;  %v7944_v59 = vld [vmem:[#allocation76_spill] sm:$0xff] }
 0x7d1   :  { %2584 = vmatprep.subr.bf16.mxu1 %v7810_v44  ;;  %2625 = vmatprep.subr.bf16.mxu0 %v7811_v19  ;;  %v7945_v44 = vld [vmem:[#allocation77_spill] sm:$0xff]  ;;  %v7946_v19 = vld [vmem:[#allocation39_spill] sm:$0xff] }
 0x7d4   :  { %2585 = vmatpush1.bf16.msra.mxu1 %v7812_v52  ;;  %2626 = vmatpush1.bf16.msra.mxu0 %v7813_v26  ;;  %v7947_v52 = vld [vmem:[#allocation40_spill] sm:$0xff]  ;;  %v7948_v26 = vld [vmem:[#allocation78_spill] sm:$0xff] }
 0x7d5   :  { %2586 = vmatprep.subr.bf16.mxu1 %v7814_v29  ;;  %2627 = vmatprep.subr.bf16.mxu0 %v7815_v23  ;;  %v7949_v29 = vld [vmem:[#allocation79_spill] sm:$0xff]  ;;  %v7950_v23 = vld [vmem:[#allocation41_spill] sm:$0xff] }
 0x7d8   :  { %2587 = vmatpush1.bf16.msra.mxu1 %v7816_v58  ;;  %2628 = vmatpush1.bf16.msra.mxu0 %v7817_v30  ;;  %v7951_v58 = vld [vmem:[#allocation42_spill] sm:$0xff]  ;;  %v7952_v30 = vld [vmem:[#allocation80_spill] sm:$0xff] }
 0x7d9   :  { %2588 = vmatprep.subr.bf16.mxu1 %v7818_v48  ;;  %2629 = vmatprep.subr.bf16.mxu0 %v7819_v28  ;;  %v7953_v48 = vld [vmem:[#allocation81_spill] sm:$0xff]  ;;  %v7954_v28 = vld [vmem:[#allocation43_spill] sm:$0xff] }
 0x7dc   :  { %2589 = vmatpush1.bf16.msra.mxu1 %v7820_v17  ;;  %2630 = vmatpush1.bf16.msra.mxu0 %v5728_v56  ;;  %v7934_v56 = vld [vmem:[#allocation95_spill] sm:$0xff]  ;;  %v7955_v17 = vld [vmem:[#allocation44_spill] sm:$0xff] }
 0x7dd   :  { %2590 = vmatprep.subr.bf16.mxu1 %v7821_v15  ;;  %2631 = vmatprep.subr.bf16.mxu0 %v5734_v27  ;;  %v7932_v27 = vld [vmem:[#allocation30_spill] sm:$0xff] }
 0x7de   :  { %v7956_v15 = vld [vmem:[#allocation82_spill] sm:$0xff] }
 0x7e0   :  { %2591 = vmatpush1.bf16.msra.mxu1 %v7822_v40  ;;  %2632 = vmatpush1.bf16.msra.mxu0 %v5740_v50  ;;  %v7933_v50 = vld [vmem:[#allocation31_spill] sm:$0xff] }
 0x7e1   :  { %3544 = vmatprep.subr.bf16.mxu1 %v7823_v57  ;;  %2729 = vmatprep.subr.bf16.mxu0 %v5974_v54  ;;  %v7957_v40 = vld [vmem:[#allocation83_spill] sm:$0xff]  ;;  %v7958_v57 = vld [vmem:[#allocation45_spill] sm:$0xff]  ;;  %v7959_v54 = vld [vmem:[#allocation46_spill] sm:$0xff] }
 0x7e3   :  { %2593 = vmatmul.mubr.bf16.vlgmr.msra.gmra.mrb[60].mxu1 %v6194_v5  ;;  %2634 = vmatmul.mubr.bf16.vlgmr.msra.gmra.mrb[72].mxu0 %v6194_v5 }
 0x7e4   :  { %3545 = vmatpush3.bf16.msra.mxu1 %v7824_v37  ;;  %2674 = vmatprep.mubr.bf16.mxu1 %v6190_v47  ;;  %v7960_v37 = vld [vmem:[#allocation84_spill] sm:$0xff]  ;;  %v7968_v47 = vld [vmem:[#allocation51_spill] sm:$0xff] }
 0x7e5   :  { %3546 = vmatprep.subr.bf16.mxu1 %v7825_v51  ;;  %2730 = vmatpush1.bf16.msra.mxu0 %v5982_v46  ;;  %v7961_v51 = vld [vmem:[#allocation85_spill] sm:$0xff]  ;;  %v7962_v46 = vld [vmem:[#allocation47_spill] sm:$0xff] }
 0x7e6   :  { %2731 = vmatprep.subr.bf16.mxu0 %v5985_v55  ;;  %v7963_v55 = vld [vmem:[#allocation48_spill] sm:$0xff] }
 0x7e8   :  { %3547 = vmatpush3.bf16.msra.mxu1 %v7826_v63  ;;  %v7964_v63 = vld [vmem:[#allocation87_spill] sm:$0xff] }
 0x7e9   :  { %3548 = vmatprep.subr.bf16.mxu1 %v7827_v11  ;;  %2732 = vmatpush1.bf16.msra.mxu0 %v5990_v3  ;;  %v7965_v11 = vld [vmem:[#allocation89_spill] sm:$0xff] }
 0x7ea   :  { %2733 = vmatprep.subr.bf16.mxu0 %v5993_v0  ;;  %v7966_v3 = vld [vmem:[#allocation49_spill] sm:$0xff]  ;;  %v7967_v0 = vld [vmem:[#allocation50_spill] sm:$0xff] }
 0x7ec   :  { %3549 = vmatpush3.bf16.msra.mxu1 %v7932_v27  ;;  %v7970_v27 = vld [vmem:[#allocation53_spill] sm:$0xff] }
 0x7ed   :  { %3550 = vmatprep.subr.bf16.mxu1 %v7933_v50  ;;  %2734 = vmatpush1.bf16.msra.mxu0 %v7934_v56  ;;  %v7971_v50 = vld [vmem:[#allocation54_spill] sm:$0xff]  ;;  %v7972_v56 = vld [vmem:[#allocation55_spill] sm:$0xff] }
 0x7ee   :  { %2735 = vmatprep.subr.bf16.mxu0 %v7935_v34  ;;  %v7973_v34 = vld [vmem:[#allocation56_spill] sm:$0xff] }
 0x7f0   :  { %3551 = vmatpush3.bf16.msra.mxu1 %v7936_v7  ;;  %v7974_v7 = vld [vmem:[#allocation57_spill] sm:$0xff] }
 0x7f1   :  { %3552 = vmatprep.subr.bf16.mxu1 %v7937_v36  ;;  %2736 = vmatpush1.bf16.msra.mxu0 %v7938_v38  ;;  %v7975_v36 = vld [vmem:[#allocation58_spill] sm:$0xff]  ;;  %v7976_v38 = vld [vmem:[#allocation59_spill] sm:$0xff] }
 0x7f2   :  { %2737 = vmatprep.subr.bf16.mxu0 %v7939_v42  ;;  %v7977_v42 = vld [vmem:[#allocation60_spill] sm:$0xff] }
 0x7f4   :  { %3553 = vmatpush3.bf16.msra.mxu1 %v7940_v13  ;;  %v7978_v13 = vld [vmem:[#allocation61_spill] sm:$0xff] }
 0x7f5   :  { %3554 = vmatprep.subr.bf16.mxu1 %v7941_v14  ;;  %2738 = vmatpush1.bf16.msra.mxu0 %v7942_v22  ;;  %v7979_v14 = vld [vmem:[#allocation62_spill] sm:$0xff]  ;;  %v7980_v22 = vld [vmem:[#allocation63_spill] sm:$0xff] }
 0x7f6   :  { %2739 = vmatprep.subr.bf16.mxu0 %v7943_v32  ;;  %v7981_v32 = vld [vmem:[#allocation64_spill] sm:$0xff] }
 0x7f8   :  { %3555 = vmatpush3.bf16.msra.mxu1 %v7944_v59  ;;  %v7982_v59 = vld [vmem:[#allocation65_spill] sm:$0xff] }
 0x7f9   :  { %3556 = vmatprep.subr.bf16.mxu1 %v7945_v44  ;;  %2740 = vmatpush1.bf16.msra.mxu0 %v7946_v19  ;;  %v4256_v44 = vld [vmem:[#allocation4 + $0x43c] ss:$36 sps:$4 sm:$0xff]  }
 0x7fa   :  { %2741 = vmatprep.subr.bf16.mxu0 %v7947_v52  ;;  %v7983_v19 = vld [vmem:[#allocation66_spill] sm:$0xff]  ;;  %v7984_v52 = vld [vmem:[#allocation67_spill] sm:$0xff] }
 0x7fc   :  { %3557 = vmatpush3.bf16.msra.mxu1 %v7948_v26  ;;  %v4257_v26 = vld [vmem:[#allocation4 + $0x438] ss:$36 sps:$4 sm:$0xff]  }
 0x7fd   :  { %3558 = vmatprep.subr.bf16.mxu1 %v7949_v29  ;;  %2742 = vmatpush1.bf16.msra.mxu0 %v7950_v23  ;;  %v6403_v29 = vld [vmem:[#allocation4 + $0x14] ss:$36 sps:$4 sm:$0xff]   ;;  %v7985_v23 = vld [vmem:[#allocation68_spill] sm:$0xff] }
 0x7fe   :  { %2743 = vmatprep.subr.bf16.mxu0 %v7951_v58  ;;  %v7986_v58 = vld [vmem:[#allocation69_spill] sm:$0xff] }
 0x800   :  { %3559 = vmatpush3.bf16.msra.mxu1 %v7952_v30  ;;  %v7987_v30 = vld [vmem:[#allocation70_spill] sm:$0xff] }
 0x801   :  { %2770 = vmatprep.subr.bf16.mxu1 %v7953_v48  ;;  %2744 = vmatpush1.bf16.msra.mxu0 %v7954_v28  ;;  %v7988_v48 = vld [vmem:[#allocation71_spill] sm:$0xff]  ;;  %v7989_v28 = vld [vmem:[#allocation72_spill] sm:$0xff] }
 0x802   :  { %2745 = vmatprep.subr.bf16.mxu0 %v7955_v17  ;;  %v7990_v17 = vld [vmem:[#allocation91_spill] sm:$0xff] }
 0x803   :  { %2675 = vmatmul.mubr.bf16.vlgmr.msra.gmra.mrb[64].mxu1 %v6194_v5  ;;  %v7969_v5 = vld [vmem:[#allocation52_spill] sm:$0xff] }
 0x804   :  { %2771 = vmatpush1.bf16.msra.mxu1 %v7956_v15  ;;  %v7991_v15 = vld [vmem:[#allocation92_spill] sm:$0xff] }
 0x805   :  { %2772 = vmatprep.subr.bf16.mxu1 %v7957_v40  ;;  %2746 = vmatpush1.bf16.msra.mxu0 %v7958_v57  ;;  %v7992_v40 = vld [vmem:[#allocation8_spill] sm:$0xff]  ;;  %v7993_v57 = vld [vmem:[#allocation99_spill] sm:$0xff] }
 0x806   :  { %2747 = vmatprep.subr.bf16.mxu0 %v7959_v54  ;;  %v7994_v54 = vld [vmem:[#allocation28_spill] sm:$0xff] }
 0x808   :  { %2773 = vmatpush1.bf16.msra.mxu1 %v7960_v37  ;;  %v7995_v37 = vld [vmem:[#allocation29_spill] sm:$0xff] }
 0x809   :  { %2774 = vmatprep.subr.bf16.mxu1 %v7961_v51  ;;  %2748 = vmatpush1.bf16.msra.mxu0 %v7962_v46  ;;  %v7996_v51 = vld [vmem:[#allocation90_spill] sm:$0xff]  ;;  %v7997_v46 = vld [vmem:[#allocation9_spill] sm:$0xff] }
 0x80a   :  { %2749 = vmatprep.subr.bf16.mxu0 %v7963_v55  ;;  %v7998_v55 = vld [vmem:[#allocation10_spill] sm:$0xff] }
 0x80c   :  { %2775 = vmatpush1.bf16.msra.mxu1 %v7964_v63  ;;  %v7999_v63 = vld [vmem:[#allocation11_spill] sm:$0xff] }
 0x80d   :  { %2776 = vmatprep.subr.bf16.mxu1 %v7965_v11  ;;  %2750 = vmatpush1.bf16.msra.mxu0 %v7966_v3  ;;  %v8000_v11 = vld [vmem:[#allocation12_spill] sm:$0xff]  ;;  %v8001_v3 = vld [vmem:[#allocation21_spill] sm:$0xff] }
 0x80e   :  { %2751 = vmatprep.subr.bf16.mxu0 %v7967_v0  ;;  %v8002_v0 = vld [vmem:[#allocation96_spill] sm:$0xff] }
 0x810   :  { %2777 = vmatpush1.bf16.msra.mxu1 %v7968_v47 }
 0x811   :  { %2778 = vmatprep.subr.bf16.mxu1 %v7969_v5  ;;  %2752 = vmatpush1.bf16.msra.mxu0 %v7970_v27  ;;  %v176_v27 = vadd.f32 %v8002_v0, %v8001_v3 }
 0x812   :  { %2753 = vmatprep.subr.bf16.mxu0 %v7971_v50  ;;  %v8003_v50 = vld [vmem:[#allocation22_spill] sm:$0xff] }
 0x814   :  { %2779 = vmatpush1.bf16.msra.mxu1 %v7972_v56 }
 0x815   :  { %2780 = vmatprep.subr.bf16.mxu1 %v7973_v34  ;;  %2754 = vmatpush1.bf16.msra.mxu0 %v7974_v7  ;;  %v8004_v7 = vld [vmem:[#allocation98_spill] sm:$0xff] }
 0x816   :  { %2755 = vmatprep.subr.bf16.mxu0 %v7975_v36  ;;  %v178_v36 = vadd.f32 %v8004_v7, %v8003_v50  ;;  %v6429_v7 = vld [vmem:[%s6819_s4] ss:$0 sm:$0xff] }
 0x817   :  { %8005 = vst [vmem:[#allocation93_spill] sm:$0xff] %v6429_v7 }
 0x818   :  { %2781 = vmatpush1.bf16.msra.mxu1 %v7976_v38 }
 0x819   :  { %2782 = vmatprep.subr.bf16.mxu1 %v7977_v42  ;;  %2756 = vmatpush1.bf16.msra.mxu0 %v7978_v13 }
 0x81a   :  { %2757 = vmatprep.subr.bf16.mxu0 %v7979_v14 }
 0x81c   :  { %2783 = vmatpush1.bf16.msra.mxu1 %v7980_v22 }
 0x81d   :  { %2784 = vmatprep.subr.bf16.mxu1 %v7981_v32  ;;  %2758 = vmatpush1.bf16.msra.mxu0 %v7982_v59 }
 0x81e   :  { %2759 = vmatprep.subr.bf16.mxu0 %v4256_v44 }
 0x820   :  { %2785 = vmatpush1.bf16.msra.mxu1 %v7983_v19 }
 0x821   :  { %2786 = vmatprep.subr.bf16.mxu1 %v7984_v52  ;;  %2760 = vmatpush1.bf16.msra.mxu0 %v4257_v26 }
 0x822   :  { %2811 = vmatprep.subr.bf16.mxu0 %v6403_v29 }
 0x824   :  { %2787 = vmatpush1.bf16.msra.mxu1 %v7985_v23 }
 0x825   :  { %2788 = vmatprep.subr.bf16.mxu1 %v7986_v58 }
 0x828   :  { %2789 = vmatpush1.bf16.msra.mxu1 %v7987_v30 }
 0x829   :  { %2790 = vmatprep.subr.bf16.mxu1 %v7988_v48 }
 0x82c   :  { %2791 = vmatpush1.bf16.msra.mxu1 %v7989_v28 }
 0x82d   :  { %2792 = vmatprep.subr.bf16.mxu1 %v7990_v17 }
 0x830   :  { %2793 = vmatpush1.bf16.msra.mxu1 %v7991_v15 }
 0x831   :  { %2794 = vmatprep.subr.bf16.mxu1 %v7992_v40 }
 0x834   :  { %2795 = vmatpush1.bf16.msra.mxu1 %v7993_v57 }
 0x835   :  { %2796 = vmatprep.subr.bf16.mxu1 %v7994_v54 }
 0x838   :  { %2797 = vmatpush1.bf16.msra.mxu1 %v7995_v37 }
 0x839   :  { %2798 = vmatprep.subr.bf16.mxu1 %v7996_v51 }
 0x83c   :  { %2799 = vmatpush1.bf16.msra.mxu1 %v7997_v46 }
 0x83d   :  { %2800 = vmatprep.subr.bf16.mxu1 %v7998_v55 }
 0x840   :  { %2801 = vmatpush1.bf16.msra.mxu1 %v7999_v63 }
 0x841   :  { %2852 = vmatprep.subr.bf16.mxu1 %v8000_v11 }
 0x876   :  { %v2512_v13 = vpop.f32.mrb[56].mxu1  ;;  %v2553_v14 = vpop.f32.mrb[68].mxu0 }
 0x877   :  { %v2691_v59 = vadd.f32 %v2512_v13, %v176_v27  ;;  %v2514_v44 = vpop.f32.mrb[57].mxu1  ;;  %v2555_v26 = vpop.f32.mrb[69].mxu0  ;;  %v2701_v27 = vadd.f32 %v6429_v7, %v2553_v14 }
 0x878   :  { %v2696_v51 = vadd.f32 %v2514_v44, %v178_v36  ;;  %v2516_v37 = vpop.f32.mrb[58].mxu1  ;;  %v2557_v46 = vpop.f32.mrb[70].mxu0  ;;  %v8006_v36 = vld [vmem:[#allocation97_spill] sm:$0xff]  ;;  %v2682_v44 = vadd.f32 %v2555_v26, %v7905_v53 }
 0x879   :  { %v2692_v54 = vmul.f32 0.5, %v2691_v59  ;;  %v2517_v55 = vpop.f32.mrb[59].mxu1  ;;  %v2558_v57 = vpop.f32.mrb[71].mxu0  ;;  %v243_v37 = vadd.f32 %v8006_v36, %v7795_v41 }
 0x87a   :  { %v2697_v63 = vmul.f32 0.5, %v2696_v51 }
 0x87b   :  { %3981 = vtanh.f32 %v2692_v54 }
 0x87c   :  { %3983 = vtanh.f32 %v2697_v63 }
 0x885   :  { %v3982_v11 = vpop.eup %3981 }
 0x886   :  { %v2694_v40 = vmul.f32 0.5, %v3982_v11  ;;  %v3984_v13 = vpop.eup %3983 }
 0x887   :  { %v2699_v57 = vmul.f32 0.5, %v3984_v13 }
 0x888   :  { %v2695_v0 = vadd.f32 0.5, %v2694_v40 }
 0x889   :  { %v2700_v54 = vadd.f32 0.5, %v2699_v57 }
 0x88a   :  { %v2702_v46 = vmul.f32 %v2701_v27, %v2695_v0 }
 0x88b   :  { %v2705_v51 = vsub.f32 1.0, %v2700_v54  ;;  %v2707_v40 = vmul.f32 %v2700_v54, %v6179_v20 }
 0x88c   :  { %v2703_v55 = vadd.f32 %v2702_v46, %v243_v37 }
 0x88e   :  { %3985 = vtanh.f32 %v2703_v55 }
 0x898   :  { %v3986_v63 = vpop.eup %3985 }
 0x899   :  { %v2706_v11 = vmul.f32 %v3986_v63, %v2705_v51 }
 0x89b   :  { %v6435_v59 = vadd.f32 %v2707_v40, %v2706_v11 }
 0x8b6   :  { %v2594_v50 = vpop.f32.mrb[60].mxu1  ;;  %v2635_v14 = vpop.f32.mrb[72].mxu0 }
 0x8b7   :  { %v2683_v7 = vadd.f32 %v2594_v50, %v5045_v9  ;;  %v2709_v36 = vadd.f32 %v2682_v44, %v2635_v14  ;;  %v2596_v0 = vpop.f32.mrb[61].mxu1  ;;  %v2637_v27 = vpop.f32.mrb[73].mxu0 }
 0x8b8   :  { %v2598_v37 = vpop.f32.mrb[62].mxu1  ;;  %v2639_v46 = vpop.f32.mrb[74].mxu0  ;;  %v2684_v14 = vadd.f32 %v2596_v0, %v5056_v8  ;;  %v8008_v0 = vld [vmem:[#allocation19_spill] sm:$0xff] }
 0x8b9   :  { %v2714_v13 = vadd.f32 %v2683_v7, %v2637_v27  ;;  %v2599_v55 = vpop.f32.mrb[63].mxu1  ;;  %v2640_v57 = vpop.f32.mrb[75].mxu0  ;;  %v2710_v41 = vmul.f32 0.5, %v2709_v36 }
 0x8bb   :  { %3987 = vtanh.f32 %v2710_v41  ;;  %v2715_v51 = vmul.f32 0.5, %v2714_v13 }
 0x8bd   :  { %3989 = vtanh.f32 %v2715_v51 }
 0x8c5   :  { %v3988_v20 = vpop.eup %3987 }
 0x8c6   :  { %v2712_v54 = vmul.f32 0.5, %v3988_v20  ;;  %v8009_v20 = vld [vmem:[#allocation24_spill] sm:$0xff] }
 0x8c7   :  { %v3990_v7 = vpop.eup %3989 }
 0x8c8   :  { %v2713_v50 = vadd.f32 0.5, %v2712_v54  ;;  %v2717_v36 = vmul.f32 0.5, %v3990_v7  ;;  %v8010_v54 = vld [vmem:[#allocation105_spill] sm:$0xff]  ;;  %v8019_v7 = vld [vmem:[#allocation110_spill] sm:$0xff] }
 0x8ca   :  { %v2718_v41 = vadd.f32 0.5, %v2717_v36  ;;  %v8021_v36 = vld [vmem:[#allocation112_spill] sm:$0xff] }
 0x8cc   :  { %v2723_v46 = vsub.f32 1.0, %v2718_v41  ;;  %v2725_v55 = vmul.f32 %v2718_v41, %v6186_v25  ;;  %v8007_v25 = vld [vmem:[#allocation104_spill] sm:$0xff]  ;;  %v8022_v41 = vld [vmem:[#allocation113_spill] sm:$0xff] }
 0x8d6   :  { %v3560_v63 = vpop.f32.mrb[64].mxu1 }
 0x8d7   :  { %v3561_v26 = vpop.f32.mrb[65].mxu1 }
 0x8d8   :  { %v3562_v11 = vadd.f32 %v3561_v26, %v3560_v63  ;;  %v3563_v40 = vpop.f32.mrb[66].mxu1  ;;  %v8011_v63 = vld [vmem:[#allocation106_spill] sm:$0xff] }
 0x8d9   :  { %v3564_v53 = vpop.f32.mrb[67].mxu1  ;;  %v8012_v26 = vld [vmem:[#allocation26_spill] sm:$0xff]  ;;  %v8014_v40 = vld [vmem:[#allocation107_spill] sm:$0xff] }
 0x8da   :  { %v2719_v44 = vadd.f32 %v5890_v12, %v3562_v11  ;;  %v6450_v12 = vpack.c.bf16 %v6435_v59, %v6435_v59  ;;  %v8013_v11 = vld [vmem:[#allocation27_spill] sm:$0xff] }
 0x8dc   :  { %v2720_v37 = vmul.f32 %v2719_v44, %v2713_v50  ;;  %v8015_v50 = vld [vmem:[#allocation108_spill] sm:$0xff] }
 0x8dd   :  { %v8016_v44 = vld [vmem:[#allocation20_spill] sm:$0xff] }
 0x8de   :  { %v2721_v27 = vadd.f32 %v2720_v37, %v2684_v14  ;;  %v8017_v14 = vld [vmem:[#allocation33_spill] sm:$0xff] }
 0x8df   :  { %v8018_v37 = vld [vmem:[#allocation109_spill] sm:$0xff] }
 0x8e0   :  { %3991 = vtanh.f32 %v2721_v27  ;;  %v8020_v27 = vld [vmem:[#allocation111_spill] sm:$0xff] }
 0x8ea   :  { %v3992_v13 = vpop.eup %3991 }
 0x8eb   :  { %v2724_v57 = vmul.f32 %v3992_v13, %v2723_v46  ;;  %v8023_v46 = vld [vmem:[#allocation114_spill] sm:$0xff] }
 0x8ec   :  { %v6494_v13 = vld [vmem:[#allocation4 + $0x298] ss:$36 sps:$4 sm:$0xff]  }
 0x8ed   :  { %v6442_v51 = vadd.f32 %v2725_v55, %v2724_v57  ;;  %v6497_v55 = vld [vmem:[#allocation4 + $0x2a0] ss:$36 sps:$4 sm:$0xff]  }
 0x8ee   :  { %8024 = vst [vmem:[#allocation94_spill] sm:$0xff] %v6497_v55  ;;  %v6500_v57 = vld [vmem:[#allocation4 + $0x2e4] ss:$36 sps:$4 sm:$0xff]  }
 0x8ef   :  { %v6446_v53 = vpack.c.bf16 %v6442_v51, %v6442_v51 }
 0x8f1   :  { %2761 = vmatprep.mubr.bf16.mxu0 %v6446_v53  ;;  %2802 = vmatprep.mubr.bf16.mxu1 %v6446_v53 }
 0x8f2   :  { %2762 = vmatmul.mubr.bf16.vlgmr.msra.gmra.mrb[76].mxu0 %v6450_v12  ;;  %2803 = vmatmul.mubr.bf16.vlgmr.msra.gmra.mrb[68].mxu1 %v6450_v12 }
 0x8f3   :  { %2812 = vmatpush1.bf16.msra.mxu0 %v6200_v35  ;;  %2853 = vmatpush1.bf16.msra.mxu1 %v6203_v21  ;;  %v4294_v21 = vld [vmem:[#allocation4 + $0x50] ss:$36 sps:$4 sm:$0xff]  }
 0x8f4   :  { %2843 = vmatprep.mubr.bf16.mxu0 %v6446_v53  ;;  %2884 = vmatprep.mubr.bf16.mxu1 %v6446_v53 }
 0x8f5   :  { %2813 = vmatprep.subr.bf16.mxu0 %v6208_v61  ;;  %2854 = vmatprep.subr.bf16.mxu1 %v6211_v43  ;;  %v6584_v43 = vld [vmem:[#allocation4 + $0x68] ss:$36 sps:$4 sm:$0xff]  }
 0x8f6   :  { %8039 = vst [vmem:[#allocation77_spill] sm:$0xff] %v6584_v43 }
 0x8f7   :  { %2814 = vmatpush1.bf16.msra.mxu0 %v6214_v49  ;;  %2855 = vmatpush1.bf16.msra.mxu1 %v6217_v4  ;;  %v4291_v4 = vld [vmem:[#allocation4 + $0x54] ss:$36 sps:$4 sm:$0xff]  }
 0x8f8   :  { %2815 = vmatprep.subr.bf16.mxu0 %v6220_v1  ;;  %2856 = vmatprep.subr.bf16.mxu1 %v6223_v60  ;;  %v6577_v60 = vld [vmem:[#allocation4 + $0x20] ss:$36 sps:$4 sm:$0xff]  }
 0x8f9   :  { %8037 = vst [vmem:[#allocation38_spill] sm:$0xff] %v6577_v60 }
 0x8fb   :  { %2816 = vmatpush1.bf16.msra.mxu0 %v6226_v16  ;;  %2857 = vmatpush1.bf16.msra.mxu1 %v6229_v10  ;;  %v6572_v10 = vld [vmem:[#allocation4 + $0x260] ss:$36 sps:$4 sm:$0xff]  }
 0x8fc   :  { %2817 = vmatprep.subr.bf16.mxu0 %v6232_v39  ;;  %2858 = vmatprep.subr.bf16.mxu1 %v6235_v2  ;;  %v6566_v2 = vld [vmem:[#allocation4 + $0x448] ss:$36 sps:$4 sm:$0xff]  }
 0x8ff   :  { %2818 = vmatpush1.bf16.msra.mxu0 %v6238_v24  ;;  %2859 = vmatpush1.bf16.msra.mxu1 %v8007_v25  ;;  %v6560_v25 = vld [vmem:[#allocation4 + $0x44c] ss:$36 sps:$4 sm:$0xff]  }
 0x900   :  { %2819 = vmatprep.subr.bf16.mxu0 %v8008_v0  ;;  %2860 = vmatprep.subr.bf16.mxu1 %v8009_v20  ;;  %v6554_v20 = vld [vmem:[#allocation4 + $0x400] ss:$36 sps:$4 sm:$0xff]  }
 0x903   :  { %2820 = vmatpush1.bf16.msra.mxu0 %v8010_v54  ;;  %2861 = vmatpush1.bf16.msra.mxu1 %v8011_v63  ;;  %v6548_v63 = vld [vmem:[#allocation4 + $0x404] ss:$36 sps:$4 sm:$0xff]  }
 0x904   :  { %2821 = vmatprep.subr.bf16.mxu0 %v8012_v26  ;;  %2862 = vmatprep.subr.bf16.mxu1 %v8013_v11  ;;  %v6542_v11 = vld [vmem:[#allocation4 + $0x3b8] ss:$36 sps:$4 sm:$0xff]  }
 0x907   :  { %2822 = vmatpush1.bf16.msra.mxu0 %v8014_v40  ;;  %2863 = vmatpush1.bf16.msra.mxu1 %v8015_v50  ;;  %v6536_v50 = vld [vmem:[#allocation4 + $0x3bc] ss:$36 sps:$4 sm:$0xff]  }
 0x908   :  { %2823 = vmatprep.subr.bf16.mxu0 %v8016_v44  ;;  %2864 = vmatprep.subr.bf16.mxu1 %v8017_v14  ;;  %v6530_v14 = vld [vmem:[#allocation4 + $0x370] ss:$36 sps:$4 sm:$0xff]  }
 0x90b   :  { %2824 = vmatpush1.bf16.msra.mxu0 %v8018_v37  ;;  %2865 = vmatpush1.bf16.msra.mxu1 %v8019_v7  ;;  %v6524_v7 = vld [vmem:[#allocation4 + $0x374] ss:$36 sps:$4 sm:$0xff]  }
 0x90c   :  { %2825 = vmatprep.subr.bf16.mxu0 %v8020_v27  ;;  %2866 = vmatprep.subr.bf16.mxu1 %v8021_v36  ;;  %v6518_v36 = vld [vmem:[#allocation4 + $0x328] ss:$36 sps:$4 sm:$0xff]  }
 0x90f   :  { %2826 = vmatpush1.bf16.msra.mxu0 %v8022_v41  ;;  %2867 = vmatpush1.bf16.msra.mxu1 %v8023_v46  ;;  %v6512_v46 = vld [vmem:[#allocation4 + $0x32c] ss:$36 sps:$4 sm:$0xff]  }
 0x910   :  { %2827 = vmatprep.subr.bf16.mxu0 %v6292_v33  ;;  %2868 = vmatprep.subr.bf16.mxu1 %v6295_v31  ;;  %v6503_v31 = vld [vmem:[#allocation4 + $0x2ec] ss:$36 sps:$4 sm:$0xff]  }
 0x911   :  { %8025 = vst [vmem:[#allocation103_spill] sm:$0xff] %v6503_v31 }
 0x913   :  { %2828 = vmatpush1.bf16.msra.mxu0 %v6298_v45  ;;  %2869 = vmatpush1.bf16.msra.mxu1 %v6301_v6  ;;  %v6506_v6 = vld [vmem:[#allocation4 + $0x2e0] ss:$36 sps:$4 sm:$0xff]  }
 0x914   :  { %2829 = vmatprep.subr.bf16.mxu0 %v6304_v18  ;;  %2870 = vmatprep.subr.bf16.mxu1 %v6307_v62  ;;  %v6509_v62 = vld [vmem:[#allocation4 + $0x2e8] ss:$36 sps:$4 sm:$0xff]  }
 0x915   :  { %8026 = vst [vmem:[#allocation30_spill] sm:$0xff] %v6509_v62 }
 0x917   :  { %2830 = vmatpush1.bf16.msra.mxu0 %v6494_v13  ;;  %2871 = vmatpush1.bf16.msra.mxu1 %v6497_v55  ;;  %v6515_v55 = vld [vmem:[#allocation4 + $0x334] ss:$36 sps:$4 sm:$0xff]  }
 0x918   :  { %2831 = vmatprep.subr.bf16.mxu0 %v6500_v57  ;;  %2872 = vmatprep.subr.bf16.mxu1 %v6503_v31  ;;  %8027 = vst [vmem:[#allocation31_spill] sm:$0xff] %v6515_v55  ;;  %v6521_v31 = vld [vmem:[#allocation4 + $0x330] ss:$36 sps:$4 sm:$0xff]  }
 0x919   :  { %8028 = vst [vmem:[#allocation95_spill] sm:$0xff] %v6521_v31 }
 0x91b   :  { %2832 = vmatpush1.bf16.msra.mxu0 %v6506_v6  ;;  %2873 = vmatpush1.bf16.msra.mxu1 %v6509_v62  ;;  %v6527_v62 = vld [vmem:[#allocation4 + $0x37c] ss:$36 sps:$4 sm:$0xff]  }
 0x91c   :  { %2833 = vmatprep.subr.bf16.mxu0 %v6512_v46  ;;  %2874 = vmatprep.subr.bf16.mxu1 %v6515_v55  ;;  %8029 = vst [vmem:[#allocation34_spill] sm:$0xff] %v6527_v62  ;;  %v6533_v55 = vld [vmem:[#allocation4 + $0x378] ss:$36 sps:$4 sm:$0xff]  }
 0x91d   :  { %8030 = vst [vmem:[#allocation25_spill] sm:$0xff] %v6533_v55 }
 0x91f   :  { %2834 = vmatpush1.bf16.msra.mxu0 %v6518_v36  ;;  %2875 = vmatpush1.bf16.msra.mxu1 %v6521_v31  ;;  %v6539_v31 = vld [vmem:[#allocation4 + $0x3c4] ss:$36 sps:$4 sm:$0xff]  }
 0x920   :  { %2835 = vmatprep.subr.bf16.mxu0 %v6524_v7  ;;  %2876 = vmatprep.subr.bf16.mxu1 %v6527_v62  ;;  %8031 = vst [vmem:[#allocation73_spill] sm:$0xff] %v6539_v31  ;;  %v6545_v62 = vld [vmem:[#allocation4 + $0x3c0] ss:$36 sps:$4 sm:$0xff]  }
 0x921   :  { %8032 = vst [vmem:[#allocation35_spill] sm:$0xff] %v6545_v62 }
 0x923   :  { %2836 = vmatpush1.bf16.msra.mxu0 %v6530_v14  ;;  %2877 = vmatpush1.bf16.msra.mxu1 %v6533_v55  ;;  %v6551_v55 = vld [vmem:[#allocation4 + $0x40c] ss:$36 sps:$4 sm:$0xff]  }
 0x924   :  { %2837 = vmatprep.subr.bf16.mxu0 %v6536_v50  ;;  %2878 = vmatprep.subr.bf16.mxu1 %v6539_v31  ;;  %8033 = vst [vmem:[#allocation36_spill] sm:$0xff] %v6551_v55  ;;  %v6557_v31 = vld [vmem:[#allocation4 + $0x408] ss:$36 sps:$4 sm:$0xff]  }
 0x925   :  { %8034 = vst [vmem:[#allocation74_spill] sm:$0xff] %v6557_v31 }
 0x927   :  { %2838 = vmatpush1.bf16.msra.mxu0 %v6542_v11  ;;  %2879 = vmatpush1.bf16.msra.mxu1 %v6545_v62  ;;  %v6563_v62 = vld [vmem:[#allocation4 + $0x454] ss:$36 sps:$4 sm:$0xff]  }
 0x928   :  { %2839 = vmatprep.subr.bf16.mxu0 %v6548_v63  ;;  %2880 = vmatprep.subr.bf16.mxu1 %v6551_v55  ;;  %8035 = vst [vmem:[#allocation75_spill] sm:$0xff] %v6563_v62  ;;  %v6569_v55 = vld [vmem:[#allocation4 + $0x450] ss:$36 sps:$4 sm:$0xff]  }
 0x929   :  { %8036 = vst [vmem:[#allocation37_spill] sm:$0xff] %v6569_v55 }
 0x92b   :  { %2840 = vmatpush1.bf16.msra.mxu0 %v6554_v20  ;;  %2881 = vmatpush1.bf16.msra.mxu1 %v6557_v31  ;;  %v4287_v31 = vld [vmem:[#allocation4 + $0xc] ss:$36 sps:$4 sm:$0xff]  }
 0x92c   :  { %2841 = vmatprep.subr.bf16.mxu0 %v6560_v25  ;;  %2882 = vmatprep.subr.bf16.mxu1 %v6563_v62  ;;  %v6581_v62 = vld [vmem:[#allocation4 + $0x2a8] ss:$36 sps:$4 sm:$0xff]  }
 0x92d   :  { %8038 = vst [vmem:[#allocation76_spill] sm:$0xff] %v6581_v62 }
 0x92f   :  { %2842 = vmatpush1.bf16.msra.mxu0 %v6566_v2  ;;  %2883 = vmatpush1.bf16.msra.mxu1 %v6569_v55  ;;  %v4290_v55 = vld [vmem:[#allocation4 + $0x8] ss:$36 sps:$4 sm:$0xff]  }
 0x930   :  { %3566 = vmatprep.subr.bf16.mxu0 %v6572_v10  ;;  %2980 = vmatprep.subr.bf16.mxu1 %v4287_v31  ;;  %v6587_v31 = vld [vmem:[#allocation4 + $0x2f0] ss:$36 sps:$4 sm:$0xff]  }
 0x931   :  { %8040 = vst [vmem:[#allocation39_spill] sm:$0xff] %v6587_v31 }
 0x932   :  { %2844 = vmatmul.mubr.bf16.vlgmr.msra.gmra.mrb[80].mxu0 %v6450_v12  ;;  %2885 = vmatmul.mubr.bf16.vlgmr.msra.gmra.mrb[72].mxu1 %v6450_v12 }
 0x933   :  { %3567 = vmatpush3.bf16.msra.mxu0 %v6577_v60  ;;  %2925 = vmatprep.mubr.bf16.mxu0 %v6446_v53  ;;  %v4295_v60 = vld [vmem:[#allocation4 + $0x9c] ss:$36 sps:$4 sm:$0xff]   ;;  %v6590_v53 = vld [vmem:[#allocation4 + $0xb0] ss:$36 sps:$4 sm:$0xff]  }
 0x934   :  { %3568 = vmatprep.subr.bf16.mxu0 %v6581_v62  ;;  %2981 = vmatpush1.bf16.msra.mxu1 %v4290_v55  ;;  %v6593_v62 = vld [vmem:[#allocation4 + $0x338] ss:$36 sps:$4 sm:$0xff]   ;;  %v4299_v55 = vld [vmem:[#allocation4 + $0xe4] ss:$36 sps:$4 sm:$0xff]  }
 0x935   :  { %2982 = vmatprep.subr.bf16.mxu1 %v4291_v4  ;;  %v4298_v4 = vld [vmem:[#allocation4 + $0x98] ss:$36 sps:$4 sm:$0xff]  }
 0x937   :  { %3569 = vmatpush3.bf16.msra.mxu0 %v6584_v43  ;;  %v6596_v43 = vld [vmem:[#allocation4 + $0xf8] ss:$36 sps:$4 sm:$0xff]  }
 0x938   :  { %3570 = vmatprep.subr.bf16.mxu0 %v6587_v31  ;;  %2983 = vmatpush1.bf16.msra.mxu1 %v4294_v21  ;;  %v6599_v31 = vld [vmem:[#allocation4 + $0x380] ss:$36 sps:$4 sm:$0xff]  }
 0x939   :  { %2984 = vmatprep.subr.bf16.mxu1 %v4295_v60  ;;  %v6604_v21 = vld [vmem:[#allocation4 + $0x140] ss:$36 sps:$4 sm:$0xff]   ;;  %v6607_v60 = vld [vmem:[#allocation4 + $0x3c8] ss:$36 sps:$4 sm:$0xff]  }
 0x93b   :  { %3571 = vmatpush3.bf16.msra.mxu0 %v6590_v53 }
 0x93c   :  { %3572 = vmatprep.subr.bf16.mxu0 %v6593_v62  ;;  %2985 = vmatpush1.bf16.msra.mxu1 %v4298_v4  ;;  %v6612_v4 = vld [vmem:[#allocation4 + $0x188] ss:$36 sps:$4 sm:$0xff]  }
 0x93d   :  { %2986 = vmatprep.subr.bf16.mxu1 %v4299_v55  ;;  %v6615_v55 = vld [vmem:[#allocation4 + $0x410] ss:$36 sps:$4 sm:$0xff]  }
 0x93f   :  { %3573 = vmatpush3.bf16.msra.mxu0 %v6596_v43 }
 0x940   :  { %3574 = vmatprep.subr.bf16.mxu0 %v6599_v31  ;;  %2987 = vmatpush1.bf16.msra.mxu1 %v7968_v47  ;;  %v6620_v47 = vld [vmem:[#allocation4 + $0x1d0] ss:$36 sps:$4 sm:$0xff]  }
 0x941   :  { %2988 = vmatprep.subr.bf16.mxu1 %v7969_v5  ;;  %v6623_v5 = vld [vmem:[#allocation4 + $0x458] ss:$36 sps:$4 sm:$0xff]  }
 0x943   :  { %3575 = vmatpush3.bf16.msra.mxu0 %v6604_v21 }
 0x944   :  { %3576 = vmatprep.subr.bf16.mxu0 %v6607_v60  ;;  %2989 = vmatpush1.bf16.msra.mxu1 %v7972_v56  ;;  %v6628_v56 = vld [vmem:[#allocation4 + $0x218] ss:$36 sps:$4 sm:$0xff]  }
 0x945   :  { %2990 = vmatprep.subr.bf16.mxu1 %v7973_v34  ;;  %v8048_v34 = vld [vmem:[#allocation11_spill] sm:$0xff] }
 0x947   :  { %3577 = vmatpush3.bf16.msra.mxu0 %v6612_v4 }
 0x948   :  { %3578 = vmatprep.subr.bf16.mxu0 %v6615_v55  ;;  %2991 = vmatpush1.bf16.msra.mxu1 %v7976_v38  ;;  %v8049_v38 = vld [vmem:[#allocation12_spill] sm:$0xff] }
 0x949   :  { %2992 = vmatprep.subr.bf16.mxu1 %v7977_v42 }
 0x94b   :  { %3579 = vmatpush3.bf16.msra.mxu0 %v6620_v47 }
 0x94c   :  { %3580 = vmatprep.subr.bf16.mxu0 %v6623_v5  ;;  %2993 = vmatpush1.bf16.msra.mxu1 %v7980_v22 }
 0x94d   :  { %2994 = vmatprep.subr.bf16.mxu1 %v7981_v32 }
 0x94f   :  { %3581 = vmatpush3.bf16.msra.mxu0 %v6628_v56 }
 0x950   :  { %3020 = vmatprep.subr.bf16.mxu0 %v6403_v29  ;;  %2995 = vmatpush1.bf16.msra.mxu1 %v7983_v19 }
 0x951   :  { %2996 = vmatprep.subr.bf16.mxu1 %v7984_v52 }
 0x952   :  { %2926 = vmatmul.mubr.bf16.vlgmr.msra.gmra.mrb[84].mxu0 %v6450_v12  ;;  %v8053_v12 = vld [vmem:[#allocation93_spill] sm:$0xff] }
 0x953   :  { %3021 = vmatpush1.bf16.msra.mxu0 %v6200_v35  ;;  %v8041_v35 = vld [vmem:[#allocation8_spill] sm:$0xff] }
 0x954   :  { %3022 = vmatprep.subr.bf16.mxu0 %v6208_v61  ;;  %2997 = vmatpush1.bf16.msra.mxu1 %v7985_v23  ;;  %v8042_v61 = vld [vmem:[#allocation99_spill] sm:$0xff] }
 0x955   :  { %2998 = vmatprep.subr.bf16.mxu1 %v7986_v58 }
 0x957   :  { %3023 = vmatpush1.bf16.msra.mxu0 %v6214_v49  ;;  %v8043_v49 = vld [vmem:[#allocation28_spill] sm:$0xff] }
 0x958   :  { %3024 = vmatprep.subr.bf16.mxu0 %v6220_v1  ;;  %2999 = vmatpush1.bf16.msra.mxu1 %v7987_v30  ;;  %v8044_v1 = vld [vmem:[#allocation29_spill] sm:$0xff] }
 0x959   :  { %3000 = vmatprep.subr.bf16.mxu1 %v7988_v48 }
 0x95b   :  { %3025 = vmatpush1.bf16.msra.mxu0 %v6226_v16  ;;  %v8045_v16 = vld [vmem:[#allocation90_spill] sm:$0xff] }
 0x95c   :  { %3026 = vmatprep.subr.bf16.mxu0 %v6232_v39  ;;  %3001 = vmatpush1.bf16.msra.mxu1 %v7989_v28  ;;  %v8046_v39 = vld [vmem:[#allocation9_spill] sm:$0xff] }
 0x95d   :  { %3002 = vmatprep.subr.bf16.mxu1 %v7990_v17 }
 0x95f   :  { %3027 = vmatpush1.bf16.msra.mxu0 %v6238_v24  ;;  %v8047_v24 = vld [vmem:[#allocation10_spill] sm:$0xff] }
 0x960   :  { %3028 = vmatprep.subr.bf16.mxu0 %v8008_v0  ;;  %3003 = vmatpush1.bf16.msra.mxu1 %v7991_v15  ;;  %v8054_v0 = vld [vmem:[#allocation32_spill] sm:$0xff] }
 0x961   :  { %3004 = vmatprep.subr.bf16.mxu1 %v8041_v35 }
 0x963   :  { %3029 = vmatpush1.bf16.msra.mxu0 %v8010_v54 }
 0x964   :  { %3030 = vmatprep.subr.bf16.mxu0 %v8012_v26  ;;  %3005 = vmatpush1.bf16.msra.mxu1 %v8042_v61 }
 0x965   :  { %3006 = vmatprep.subr.bf16.mxu1 %v8043_v49 }
 0x967   :  { %3031 = vmatpush1.bf16.msra.mxu0 %v8014_v40 }
 0x968   :  { %3032 = vmatprep.subr.bf16.mxu0 %v8016_v44  ;;  %3007 = vmatpush1.bf16.msra.mxu1 %v8044_v1 }
 0x969   :  { %3008 = vmatprep.subr.bf16.mxu1 %v8045_v16 }
 0x96b   :  { %3033 = vmatpush1.bf16.msra.mxu0 %v8018_v37 }
 0x96c   :  { %3034 = vmatprep.subr.bf16.mxu0 %v8020_v27  ;;  %3009 = vmatpush1.bf16.msra.mxu1 %v8046_v39 }
 0x96d   :  { %3010 = vmatprep.subr.bf16.mxu1 %v8047_v24 }
 0x96f   :  { %3035 = vmatpush1.bf16.msra.mxu0 %v8022_v41 }
 0x970   :  { %3036 = vmatprep.subr.bf16.mxu0 %v6292_v33  ;;  %3011 = vmatpush1.bf16.msra.mxu1 %v8048_v34  ;;  %v8052_v33 = vld [vmem:[#allocation102_spill] sm:$0xff] }
 0x971   :  { %3061 = vmatprep.subr.bf16.mxu1 %v8049_v38 }
 0x973   :  { %3037 = vmatpush1.bf16.msra.mxu0 %v6298_v45  ;;  %v8050_v45 = vld [vmem:[#allocation100_spill] sm:$0xff] }
 0x974   :  { %3038 = vmatprep.subr.bf16.mxu0 %v6304_v18  ;;  %v8051_v18 = vld [vmem:[#allocation22_spill] sm:$0xff] }
 0x975   :  { %v182_v42 = vadd.f32 %v8052_v33, %v8051_v18 }
 0x977   :  { %3039 = vmatpush1.bf16.msra.mxu0 %v6494_v13 }
 0x978   :  { %3040 = vmatprep.subr.bf16.mxu0 %v6500_v57 }
 0x97b   :  { %3041 = vmatpush1.bf16.msra.mxu0 %v6506_v6  ;;  %v180_v6 = vadd.f32 %v8050_v45, %v8001_v3 }
 0x97c   :  { %3042 = vmatprep.subr.bf16.mxu0 %v6512_v46 }
 0x97f   :  { %3043 = vmatpush1.bf16.msra.mxu0 %v6518_v36  ;;  %v8056_v36 = vld [vmem:[#allocation7_spill] sm:$0xff] }
 0x980   :  { %3044 = vmatprep.subr.bf16.mxu0 %v6524_v7 }
 0x983   :  { %3045 = vmatpush1.bf16.msra.mxu0 %v6530_v14 }
 0x984   :  { %3046 = vmatprep.subr.bf16.mxu0 %v6536_v50 }
 0x987   :  { %3047 = vmatpush1.bf16.msra.mxu0 %v6542_v11 }
 0x988   :  { %3048 = vmatprep.subr.bf16.mxu0 %v6548_v63 }
 0x98b   :  { %3049 = vmatpush1.bf16.msra.mxu0 %v6554_v20  ;;  %v8055_v20 = vld [vmem:[#allocation101_spill] sm:$0xff] }
 0x98c   :  { %3050 = vmatprep.subr.bf16.mxu0 %v6560_v25  ;;  %v246_v54 = vadd.f32 %v8055_v20, %v8054_v0  ;;  %v8057_v20 = vld [vmem:[#allocation13_spill] sm:$0xff] }
 0x98f   :  { %3051 = vmatpush1.bf16.msra.mxu0 %v6566_v2 }
 0x990   :  { %3588 = vmatprep.subr.bf16.mxu0 %v6572_v10 }
 0x9c5   :  { %v2763_v22 = vpop.f32.mrb[76].mxu0  ;;  %v2804_v32 = vpop.f32.mrb[68].mxu1 }
 0x9c6   :  { %v2942_v19 = vadd.f32 %v2763_v22, %v180_v6  ;;  %v2765_v52 = vpop.f32.mrb[77].mxu0  ;;  %v2806_v29 = vpop.f32.mrb[69].mxu1  ;;  %v2952_v25 = vadd.f32 %v8053_v12, %v2804_v32 }
 0x9c7   :  { %v2947_v23 = vadd.f32 %v2765_v52, %v182_v42  ;;  %v2767_v58 = vpop.f32.mrb[78].mxu0  ;;  %v2808_v30 = vpop.f32.mrb[70].mxu1  ;;  %v2933_v41 = vadd.f32 %v2806_v29, %v8056_v36  ;;  %v6696_v52 = vld [vmem:[%s6821_s6] ss:$0 sm:$0xff] }
 0x9c8   :  { %v2943_v48 = vmul.f32 0.5, %v2942_v19  ;;  %v2768_v28 = vpop.f32.mrb[79].mxu0  ;;  %v2809_v17 = vpop.f32.mrb[71].mxu1 }
 0x9c9   :  { %v2948_v2 = vmul.f32 0.5, %v2947_v23 }
 0x9ca   :  { %3993 = vtanh.f32 %v2943_v48 }
 0x9cb   :  { %3995 = vtanh.f32 %v2948_v2 }
 0x9d4   :  { %v3994_v10 = vpop.eup %3993 }
 0x9d5   :  { %v2945_v15 = vmul.f32 0.5, %v3994_v10  ;;  %v3996_v26 = vpop.eup %3995 }
 0x9d6   :  { %v2950_v40 = vmul.f32 0.5, %v3996_v26  ;;  %v8061_v26 = vld [vmem:[#allocation15_spill] sm:$0xff] }
 0x9d7   :  { %v2946_v3 = vadd.f32 0.5, %v2945_v15 }
 0x9d8   :  { %v2951_v50 = vadd.f32 0.5, %v2950_v40  ;;  %v8063_v40 = vld [vmem:[#allocation16_spill] sm:$0xff] }
 0x9d9   :  { %v2953_v63 = vmul.f32 %v2952_v25, %v2946_v3 }
 0x9da   :  { %v2956_v44 = vsub.f32 1.0, %v2951_v50  ;;  %v2958_v7 = vmul.f32 %v2951_v50, %v6435_v59  ;;  %v8064_v50 = vld [vmem:[#allocation39_spill] sm:$0xff] }
 0x9db   :  { %v2954_v11 = vadd.f32 %v2953_v63, %v246_v54  ;;  %v8058_v54 = vld [vmem:[#allocation38_spill] sm:$0xff] }
 0x9dc   :  { %v8059_v63 = vld [vmem:[#allocation14_spill] sm:$0xff] }
 0x9dd   :  { %3997 = vtanh.f32 %v2954_v11  ;;  %v8062_v11 = vld [vmem:[#allocation77_spill] sm:$0xff] }
 0x9e7   :  { %v3998_v14 = vpop.eup %3997 }
 0x9e8   :  { %v2957_v37 = vmul.f32 %v3998_v14, %v2956_v44  ;;  %v8065_v44 = vld [vmem:[#allocation17_spill] sm:$0xff]  ;;  %v8066_v14 = vld [vmem:[#allocation18_spill] sm:$0xff] }
 0x9ea   :  { %v2959_v27 = vadd.f32 %v2958_v7, %v2957_v37  ;;  %v8067_v37 = vld [vmem:[#allocation104_spill] sm:$0xff] }
 0x9eb   :  { %v8068_v7 = vld [vmem:[#allocation24_spill] sm:$0xff] }
 0x9ec   :  { %v2978_v0 = vpack.c.bf16 %v2959_v27, %v2959_v27  ;;  %v8069_v27 = vld [vmem:[#allocation106_spill] sm:$0xff] }
 0xa05   :  { %v2845_v46 = vpop.f32.mrb[80].mxu0  ;;  %v2886_v13 = vpop.f32.mrb[72].mxu1 }
 0xa06   :  { %v2934_v57 = vadd.f32 %v2845_v46, %v5045_v9  ;;  %v2960_v35 = vadd.f32 %v2933_v41, %v2886_v13  ;;  %v2847_v61 = vpop.f32.mrb[81].mxu0  ;;  %v2888_v49 = vpop.f32.mrb[73].mxu1  ;;  %v8070_v41 = vld [vmem:[#allocation27_spill] sm:$0xff]  ;;  %v8077_v46 = vmov 0.0|0.0   ;;  %v8080_v13 = vld [vmem:[#allocation94_spill] sm:$0xff] }
 0xa07   :  { %v2849_v1 = vpop.f32.mrb[82].mxu0  ;;  %v2890_v16 = vpop.f32.mrb[74].mxu1  ;;  %v2935_v23 = vadd.f32 %v2847_v61, %v5056_v8  ;;  %v8086_v61 = vld [vmem:[#allocation25_spill] sm:$0xff] }
 0xa08   :  { %v2965_v39 = vadd.f32 %v2934_v57, %v2888_v49  ;;  %v2850_v24 = vpop.f32.mrb[83].mxu0  ;;  %v2891_v34 = vpop.f32.mrb[75].mxu1  ;;  %v2961_v38 = vmul.f32 0.5, %v2960_v35  ;;  %v8082_v57 = vld [vmem:[#allocation30_spill] sm:$0xff]  ;;  %v8084_v35 = vld [vmem:[#allocation95_spill] sm:$0xff]  ;;  %v8087_v49 = vld [vmem:[#allocation73_spill] sm:$0xff] }
 0xa09   :  { %v8088_v1 = vld [vmem:[#allocation35_spill] sm:$0xff]  ;;  %v8089_v16 = vld [vmem:[#allocation36_spill] sm:$0xff]  ;;  %v8092_v34 = vld [vmem:[#allocation37_spill] sm:$0xff] }
 0xa0a   :  { %3999 = vtanh.f32 %v2961_v38  ;;  %v2966_v45 = vmul.f32 0.5, %v2965_v39  ;;  %v8090_v39 = vld [vmem:[#allocation74_spill] sm:$0xff]  ;;  %v8091_v24 = vld [vmem:[#allocation75_spill] sm:$0xff] }
 0xa0b   :  { %v3163_v38 = vld [vmem:[%s6822_s7] sm:$0xff] }
 0xa0c   :  { %4001 = vtanh.f32 %v2966_v45  ;;  %v3164_v45 = vld [vmem:[%s6822_s7 + $0x8] sm:$0xff] }
 0xa14   :  { %v4000_v6 = vpop.eup %3999 }
 0xa15   :  { %v2963_v59 = vmul.f32 0.5, %v4000_v6  ;;  %v3673_v6 = vpack.c.bf16 %v3164_v45, %v3163_v38 }
 0xa16   :  { %v4002_v30 = vpop.eup %4001 }
 0xa17   :  { %v2964_v19 = vadd.f32 0.5, %v2963_v59  ;;  %v2968_v28 = vmul.f32 0.5, %v4002_v30  ;;  %v3165_v59 = vld [vmem:[%s6822_s7 + $0x10] sm:$0xff]  ;;  %v3172_v30 = vld [vmem:[%s6822_s7 + $0x48] sm:$0xff] }
 0xa19   :  { %v2969_v17 = vadd.f32 0.5, %v2968_v28  ;;  %v3173_v28 = vld [vmem:[%s6822_s7 + $0x50] sm:$0xff] }
 0xa1b   :  { %v2974_v2 = vsub.f32 1.0, %v2969_v17  ;;  %v2976_v15 = vmul.f32 %v2969_v17, %v6442_v51  ;;  %v8060_v51 = vld [vmem:[#allocation76_spill] sm:$0xff]  ;;  %v3174_v17 = vld [vmem:[%s6822_s7 + $0x58] sm:$0xff] }
 0xa25   :  { %v3582_v18 = vpop.f32.mrb[84].mxu0 }
 0xa26   :  { %v3583_v33 = vpop.f32.mrb[85].mxu0 }
 0xa27   :  { %v3584_v42 = vadd.f32 %v3583_v33, %v3582_v18  ;;  %v3585_v22 = vpop.f32.mrb[86].mxu0  ;;  %v3166_v18 = vld [vmem:[%s6822_s7 + $0x18] sm:$0xff] }
 0xa28   :  { %v3586_v32 = vpop.f32.mrb[87].mxu0  ;;  %v3676_v33 = vpack.c.bf16 %v3166_v18, %v3165_v59  ;;  %v3168_v22 = vld [vmem:[%s6822_s7 + $0x28] sm:$0xff] }
 0xa29   :  { %v2970_v29 = vadd.f32 %v6696_v52, %v3584_v42  ;;  %v3167_v42 = vld [vmem:[%s6822_s7 + $0x20] sm:$0xff] }
 0xa2a   :  { %v3679_v32 = vpack.c.bf16 %v3168_v22, %v3167_v42 }
 0xa2b   :  { %v2971_v58 = vmul.f32 %v2970_v29, %v2964_v19  ;;  %v3169_v19 = vld [vmem:[%s6822_s7 + $0x30] sm:$0xff]  ;;  %v3170_v29 = vld [vmem:[%s6822_s7 + $0x38] sm:$0xff] }
 0xa2d   :  { %v2972_v48 = vadd.f32 %v2971_v58, %v2935_v23  ;;  %v3682_v23 = vpack.c.bf16 %v3170_v29, %v3169_v19  ;;  %v3171_v58 = vld [vmem:[%s6822_s7 + $0x40] sm:$0xff] }
 0xa2f   :  { %4003 = vtanh.f32 %v2972_v48  ;;  %v3685_v48 = vpack.c.bf16 %v3172_v30, %v3171_v58 }
 0xa39   :  { %v4004_v10 = vpop.eup %4003 }
 0xa3a   :  { %v2975_v3 = vmul.f32 %v4004_v10, %v2974_v2  ;;  %v3688_v2 = vpack.c.bf16 %v3174_v17, %v3173_v28  ;;  %v3175_v10 = vld [vmem:[%s6822_s7 + $0x60] sm:$0xff] }
 0xa3c   :  { %v6701_v12 = vadd.f32 %v2976_v15, %v2975_v3  ;;  %v3176_v15 = vld [vmem:[%s6822_s7 + $0x68] sm:$0xff] }
 0xa3d   :  { %v3691_v3 = vpack.c.bf16 %v3176_v15, %v3175_v10 }
 0xa3e   :  { %v2979_v25 = vpack.c.bf16 %v6701_v12, %v6701_v12 }
 0xa40   :  { %3012 = vmatprep.mubr.bf16.mxu1 %v2979_v25  ;;  %3052 = vmatprep.mubr.bf16.mxu0 %v2979_v25 }
 0xa41   :  { %3013 = vmatmul.mubr.bf16.vlgmr.msra.gmra.mrb[76].mxu1 %v2978_v0  ;;  %3053 = vmatmul.mubr.bf16.vlgmr.msra.gmra.mrb[88].mxu0 %v2978_v0 }
 0xa42   :  { %3062 = vmatpush1.bf16.msra.mxu1 %v8057_v20  ;;  %3589 = vmatpush3.bf16.msra.mxu0 %v8058_v54  ;;  %v4340_v54 = vmov 0.0  }
 0xa43   :  { %3093 = vmatprep.mubr.bf16.mxu1 %v2979_v25  ;;  %3134 = vmatprep.mubr.bf16.mxu0 %v2979_v25  ;;  %v3177_v25 = vld [vmem:[%s6822_s7 + $0x70] sm:$0xff] }
 0xa44   :  { %3063 = vmatprep.subr.bf16.mxu1 %v8059_v63  ;;  %3590 = vmatprep.subr.bf16.mxu0 %v8060_v51 }
 0xa46   :  { %3064 = vmatpush1.bf16.msra.mxu1 %v8061_v26  ;;  %3591 = vmatpush3.bf16.msra.mxu0 %v8062_v11 }
 0xa47   :  { %3065 = vmatprep.subr.bf16.mxu1 %v8063_v40  ;;  %3592 = vmatprep.subr.bf16.mxu0 %v8064_v50 }
 0xa4a   :  { %3066 = vmatpush1.bf16.msra.mxu1 %v8065_v44  ;;  %3593 = vmatpush3.bf16.msra.mxu0 %v6590_v53  ;;  %v8071_v53 = vld [vmem:[#allocation108_spill] sm:$0xff] }
 0xa4b   :  { %3067 = vmatprep.subr.bf16.mxu1 %v8066_v14  ;;  %3594 = vmatprep.subr.bf16.mxu0 %v6593_v62  ;;  %v8072_v62 = vld [vmem:[#allocation33_spill] sm:$0xff] }
 0xa4e   :  { %3068 = vmatpush1.bf16.msra.mxu1 %v8067_v37  ;;  %3595 = vmatpush3.bf16.msra.mxu0 %v6596_v43  ;;  %v8073_v43 = vld [vmem:[#allocation110_spill] sm:$0xff] }
 0xa4f   :  { %3069 = vmatprep.subr.bf16.mxu1 %v8068_v7  ;;  %3596 = vmatprep.subr.bf16.mxu0 %v6599_v31  ;;  %v8074_v31 = vld [vmem:[#allocation112_spill] sm:$0xff] }
 0xa52   :  { %3070 = vmatpush1.bf16.msra.mxu1 %v8069_v27  ;;  %3597 = vmatpush3.bf16.msra.mxu0 %v6604_v21  ;;  %v8075_v21 = vld [vmem:[#allocation114_spill] sm:$0xff] }
 0xa53   :  { %3071 = vmatprep.subr.bf16.mxu1 %v8070_v41  ;;  %3598 = vmatprep.subr.bf16.mxu0 %v6607_v60  ;;  %v8076_v60 = vld [vmem:[#allocation23_spill] sm:$0xff] }
 0xa56   :  { %3072 = vmatpush1.bf16.msra.mxu1 %v8071_v53  ;;  %3599 = vmatpush3.bf16.msra.mxu0 %v6612_v4  ;;  %v8078_v4 = vld [vmem:[#allocation86_spill] sm:$0xff] }
 0xa57   :  { %3073 = vmatprep.subr.bf16.mxu1 %v8072_v62  ;;  %3600 = vmatprep.subr.bf16.mxu0 %v6615_v55  ;;  %v8079_v55 = vld [vmem:[#allocation88_spill] sm:$0xff] }
 0xa5a   :  { %3074 = vmatpush1.bf16.msra.mxu1 %v8073_v43  ;;  %3601 = vmatpush3.bf16.msra.mxu0 %v6620_v47  ;;  %v8081_v47 = vld [vmem:[#allocation103_spill] sm:$0xff] }
 0xa5b   :  { %3075 = vmatprep.subr.bf16.mxu1 %v8074_v31  ;;  %3602 = vmatprep.subr.bf16.mxu0 %v6623_v5  ;;  %v8083_v5 = vld [vmem:[#allocation31_spill] sm:$0xff] }
 0xa5e   :  { %3076 = vmatpush1.bf16.msra.mxu1 %v8075_v21  ;;  %3603 = vmatpush3.bf16.msra.mxu0 %v6628_v56  ;;  %v8085_v56 = vld [vmem:[#allocation34_spill] sm:$0xff] }
 0xa5f   :  { %3077 = vmatprep.subr.bf16.mxu1 %v8076_v60  ;;  %3672 = vmatprep.subr.bf16.mxu0 %v8077_v46 }
 0xa61   :  { %3135 = vmatmul.mubr.bf16.vlgmr.msra.gmra.mrb[92].mxu0 %v2978_v0 }
 0xa62   :  { %3078 = vmatpush1.bf16.msra.mxu1 %v8078_v4  ;;  %3674 = vmatpush3.bf16.msra.mxu0 %v3673_v6  ;;  %v3428_v6 = vld [vmem:[#allocation3] ss:$0 sm:$0xff] }
 0xa63   :  { %3079 = vmatprep.subr.bf16.mxu1 %v8079_v55  ;;  %3675 = vmatprep.subr.bf16.mxu0 %v8077_v46 }
 0xa64   :  { %3669 = vmatprep.mubr.msk.f32.mxu0 %vm4339_vm2, %v4340_v54 }
 0xa66   :  { %3080 = vmatpush1.bf16.msra.mxu1 %v8080_v13  ;;  %3677 = vmatpush3.bf16.msra.mxu0 %v3676_v33 }
 0xa67   :  { %3081 = vmatprep.subr.bf16.mxu1 %v8081_v47  ;;  %3678 = vmatprep.subr.bf16.mxu0 %v8077_v46 }
 0xa6a   :  { %3082 = vmatpush1.bf16.msra.mxu1 %v8082_v57  ;;  %3680 = vmatpush3.bf16.msra.mxu0 %v3679_v32 }
 0xa6b   :  { %3083 = vmatprep.subr.bf16.mxu1 %v8083_v5  ;;  %3681 = vmatprep.subr.bf16.mxu0 %v8077_v46 }
 0xa6e   :  { %3084 = vmatpush1.bf16.msra.mxu1 %v8084_v35  ;;  %3683 = vmatpush3.bf16.msra.mxu0 %v3682_v23 }
 0xa6f   :  { %3085 = vmatprep.subr.bf16.mxu1 %v8085_v56  ;;  %3684 = vmatprep.subr.bf16.mxu0 %v8077_v46 }
 0xa72   :  { %3086 = vmatpush1.bf16.msra.mxu1 %v8086_v61  ;;  %3686 = vmatpush3.bf16.msra.mxu0 %v3685_v48 }
 0xa73   :  { %3087 = vmatprep.subr.bf16.mxu1 %v8087_v49  ;;  %3687 = vmatprep.subr.bf16.mxu0 %v8077_v46 }
 0xa76   :  { %3088 = vmatpush1.bf16.msra.mxu1 %v8088_v1  ;;  %3689 = vmatpush3.bf16.msra.mxu0 %v3688_v2 }
 0xa77   :  { %3089 = vmatprep.subr.bf16.mxu1 %v8089_v16  ;;  %3690 = vmatprep.subr.bf16.mxu0 %v8077_v46 }
 0xa7a   :  { %3090 = vmatpush1.bf16.msra.mxu1 %v8090_v39  ;;  %3692 = vmatpush3.bf16.msra.mxu0 %v3691_v3 }
 0xa7b   :  { %3091 = vmatprep.subr.bf16.mxu1 %v8091_v24  ;;  %3693 = vmatprep.subr.bf16.mxu0 %v8077_v46 }
 0xa7e   :  { %3092 = vmatpush1.bf16.msra.mxu1 %v8092_v34 }
 0xa81   :  { %3094 = vmatmul.mubr.bf16.vlgmr.msra.gmra.mrb[80].mxu1 %v2978_v0  ;;  %v3178_v0 = vld [vmem:[%s6822_s7 + $0x78] sm:$0xff] }
 0xa82   :  { %v3694_v20 = vpack.c.bf16 %v3178_v0, %v3177_v25 }
 0xa84   :  { %3695 = vmatpush3.bf16.msra.mxu0 %v3694_v20 }
 0xb14   :  { %v3014_v63 = vpop.f32.mrb[76].mxu1  ;;  %v3054_v51 = vpop.f32.mrb[88].mxu0 }
 0xb15   :  { %v3015_v26 = vpop.f32.mrb[77].mxu1  ;;  %v3056_v11 = vpop.f32.mrb[89].mxu0  ;;  %v3143_v43 = vadd.f32 %v3054_v51, %v5045_v9 }
 0xb16   :  { %v3017_v40 = vpop.f32.mrb[78].mxu1  ;;  %v3058_v50 = vpop.f32.mrb[90].mxu0  ;;  %v3142_v62 = vadd.f32 %v3015_v26, %v8056_v36  ;;  %v3144_v61 = vadd.f32 %v3056_v11, %v5056_v8 }
 0xb17   :  { %v3018_v44 = vpop.f32.mrb[79].mxu1  ;;  %v3059_v14 = vpop.f32.mrb[91].mxu0 }
 0xb34   :  { %v3604_v37 = vpop.f32.mrb[92].mxu0 }
 0xb35   :  { %v3605_v7 = vpop.f32.mrb[93].mxu0 }
 0xb36   :  { %v3606_v27 = vadd.f32 %v3605_v7, %v3604_v37  ;;  %v3607_v41 = vpop.f32.mrb[94].mxu0 }
 0xb37   :  { %v3608_v53 = vpop.f32.mrb[95].mxu0 }
 0xb38   :  { %v3155_v35 = vadd.f32 %v6696_v52, %v3606_v27 }
 0xb54   :  { %v3095_v31 = vpop.f32.mrb[80].mxu1 }
 0xb55   :  { %v3145_v21 = vadd.f32 %v3142_v62, %v3095_v31  ;;  %v3097_v60 = vpop.f32.mrb[81].mxu1 }
 0xb56   :  { %v3150_v46 = vadd.f32 %v3143_v43, %v3097_v60  ;;  %v3099_v4 = vpop.f32.mrb[82].mxu1 }
 0xb57   :  { %v3146_v55 = vmul.f32 0.5, %v3145_v21  ;;  %v3100_v13 = vpop.f32.mrb[83].mxu1 }
 0xb58   :  { %v3151_v47 = vmul.f32 0.5, %v3150_v46 }
 0xb59   :  { %4005 = vtanh.f32 %v3146_v55 }
 0xb5a   :  { %4007 = vtanh.f32 %v3151_v47 }
 0xb63   :  { %v4006_v57 = vpop.eup %4005 }
 0xb64   :  { %v3148_v5 = vmul.f32 0.5, %v4006_v57  ;;  %v4008_v49 = vpop.eup %4007 }
 0xb65   :  { %v3153_v1 = vmul.f32 0.5, %v4008_v49 }
 0xb66   :  { %v3149_v56 = vadd.f32 0.5, %v3148_v5 }
 0xb67   :  { %v3154_v16 = vadd.f32 0.5, %v3153_v1 }
 0xb68   :  { %v3156_v36 = vmul.f32 %v3155_v35, %v3149_v56 }
 0xb69   :  { %v3159_v39 = vsub.f32 1.0, %v3154_v16  ;;  %v3161_v38 = vmul.f32 %v3154_v16, %v6701_v12 }
 0xb6a   :  { %v3157_v9 = vadd.f32 %v3156_v36, %v3144_v61 }
 0xb6c   :  { %4009 = vtanh.f32 %v3157_v9 }
 0xb76   :  { %v4010_v24 = vpop.eup %4009 }
 0xb77   :  { %v3160_v34 = vmul.f32 %v4010_v24, %v3159_v39 }
 0xb79   :  { %v3162_v45 = vadd.f32 %v3161_v38, %v3160_v34 }
 0xb7b   :  { %3670 = vmatmul.mubr.f32.vlgmr.msra.gmra.mrb[96].mxu0 %v3162_v45 }
 0xc4e   :  { %v3252_v59 = vpop.f32.mrb[96].mxu0 }
 0xc4f   :  { %v3253_v52 = vadd.f32 %v3428_v6, %v3252_v59  ;;  %v3671_v18 = vpop.f32.mrb[97].mxu0 }
 0xc51   :  { %3257 = vst.msk [vmem:[%s6824_s9] sm:$0xff] %vm3256_vm3, %v3253_v52 }
 0xc52   :  { %3262 = vsyncpa [#allocation5], 1 }

</bundles_post_ra>
